<compile_context>
chip_gen: v5e
topology: v5e:2x2
jax: 0.10.0
libtpu: 0.0.40
codegen_flags: <defaults>
</compile_context>

<pallas_src>
import functools

import jax
import jax.numpy as jnp
import numpy as np
from jax import lax
from jax.experimental import pallas as pl
from jax.experimental.pallas import tpu as pltpu


def _round_up(x, m):
    return ((x + m - 1) // m) * m


def _softmax_last(x, approx):
    m = jnp.max(x, axis=-1, keepdims=True)
    e = jnp.exp(x - m)
    # One reciprocal per row + broadcast multiply instead of a full-plane divide.
    return e * pl.reciprocal(jnp.sum(e, axis=-1, keepdims=True), approx=approx)


def _attn_kernel(l1s_ref, l2s_ref,                                    # scalar prefetch (SMEM)
                 k1_ref, p1_ref, v1_ref, k2_ref, p2_ref, v2_ref,      # (Bb, Lp, D) blocks
                 w1k_ref, w1p_ref, b1_ref, w2k_ref, w2p_ref, b2_ref,  # resident weights
                 o1_ref, o2_ref, w1_ref, w2_ref,                      # outputs
                 k1a_s, pk1_s, k2a_s, pk2_s,                          # VMEM scratch
                 *, block_b, attn_dim, l1_full, l2_full,
                 compute_dtype, approx_recip):
    f32 = jnp.float32
    cd = compute_dtype
    A = attn_dim
    base = pl.program_id(0) * block_b
    Bb, L1p, _ = k1_ref.shape
    _, L2p, _ = k2_ref.shape

    # ---- fused projections over the whole batch block -----------------------
    # output columns [0:A]  = plain k-layer      (k1a / k2a)
    # output columns [A:2A] = preserved layer    (preserved_k1 / preserved_k2)
    # Split-K (k part + p part) replaces the HBM-materialized concat([k, p]).
    k1f = k1_ref[...].reshape(Bb * L1p, -1).astype(cd)
    p1f = p1_ref[...].reshape(Bb * L1p, -1).astype(cd)
    k2f = k2_ref[...].reshape(Bb * L2p, -1).astype(cd)
    p2f = p2_ref[...].reshape(Bb * L2p, -1).astype(cd)

    proj1 = (jnp.dot(k1f, w1k_ref[...], preferred_element_type=f32)
             + jnp.dot(p1f, w1p_ref[...], preferred_element_type=f32)
             + b1_ref[...])
    proj2 = (jnp.dot(k2f, w2k_ref[...], preferred_element_type=f32)
             + jnp.dot(p2f, w2p_ref[...], preferred_element_type=f32)
             + b2_ref[...])

    # Park per-block projections in VMEM scratch so each example is re-read
    # with a dynamic pl.ds row slice (works identically for the fori_loop path).
    k1a_s[...] = proj1[:, :A].astype(cd)
    pk1_s[...] = proj1[:, A:].astype(cd)
    k2a_s[...] = proj2[:, :A].astype(cd)
    pk2_s[...] = proj2[:, A:].astype(cd)

    # 1-D position vectors for the padding mask (no full-plane int32 iota).
    i_row = lax.broadcasted_iota(jnp.int32, (L1p, 1), 0)
    i_col = lax.broadcasted_iota(jnp.int32, (1, L1p), 1)
    j_row = lax.broadcasted_iota(jnp.int32, (L2p, 1), 0)
    j_col = lax.broadcasted_iota(jnp.int32, (1, L2p), 1)
    # Columns introduced by the wrapper's lane padding are always masked out so
    # they never contribute to rows that are returned.
    pad_c1 = i_col >= l1_full          # (1, L1p)
    pad_c2 = j_col >= l2_full          # (1, L2p)

    contract_a = (((1,), (1,)), ((), ()))   # contract over the attention dim A
    neg_inf = jnp.float32(-jnp.inf)

    def one_example(bb):
        l1 = l1s_ref[base + bb]
        l2 = l2s_ref[base + bb]
        s1 = bb * L1p
        s2 = bb * L2p
        if not isinstance(bb, int):
            s1 = pl.multiple_of(s1, 8)
            s2 = pl.multiple_of(s2, 8)

        k1a = k1a_s[pl.ds(s1, L1p), :]
        pk1 = pk1_s[pl.ds(s1, L1p), :]
        k2a = k2a_s[pl.ds(s2, L2p), :]
        pk2 = pk2_s[pl.ds(s2, L2p), :]

        # score_1^T, (L2p, L1p): [j, i] = preserved_k1[i] . k2[j]
        # (computed transposed directly on the MXU -- no XLU transpose)
        s1t = lax.dot_general(k2a, pk1, contract_a, preferred_element_type=jnp.float32)
        # score_2,   (L1p, L2p): [i, j] = k1[i] . preserved_k2[j]
        s2m = lax.dot_general(k1a, pk2, contract_a, preferred_element_type=jnp.float32)

        # PyTorch masks entries where exactly one of (row OOB, col OOB) holds.
        i_oob_r = i_row >= l1            # (L1p, 1)
        i_oob_c = i_col >= l1            # (1, L1p)
        j_oob_r = j_row >= l2            # (L2p, 1)
        j_oob_c = j_col >= l2            # (1, L2p)
        mask_12 = jnp.logical_xor(i_oob_r, j_oob_c) | pad_c2    # (L1p, L2p)
        mask_21 = jnp.logical_xor(j_oob_r, i_oob_c) | pad_c1    # (L2p, L1p)

        w1 = _softmax_last(jnp.where(mask_21, neg_inf, s1t), approx_recip)  # (L2p, L1p)
        w2 = _softmax_last(jnp.where(mask_12, neg_inf, s2m), approx_recip)  # (L1p, L2p)

        o1 = jnp.dot(w1.astype(cd), v1_ref[bb].astype(cd), preferred_element_type=jnp.float32)
        o2 = jnp.dot(w2.astype(cd), v2_ref[bb].astype(cd), preferred_element_type=jnp.float32)

        o1_ref[bb] = o1.astype(o1_ref.dtype)
        o2_ref[bb] = o2.astype(o2_ref.dtype)
        w1_ref[bb] = w1.astype(w1_ref.dtype)
        w2_ref[bb] = w2.astype(w2_ref.dtype)

    if block_b <= 2:
        # Tiny block: static unroll keeps the live set small anyway.
        for bb in range(block_b):
            one_example(bb)
    else:
        # Larger blocks: fori_loop bounds the live range to one example's
        # score/weight temporaries (avoids vreg/VMEM blowup from unrolling).
        def body(bb, carry):
            one_example(bb)
            return carry
        lax.fori_loop(0, block_b, body, 0)


def preserved_bidirectional_attention(params, k1, k2, p1, p2, v1, v2,
                                      k1_lengths, k2_lengths, *,
                                      block_b=None,
                                      compute_dtype=jnp.bfloat16,
                                      weights_dtype=jnp.bfloat16):
    """Forward pass. Returns (o1, o2, w1_full, w2_full) with
    o1:(B,L2,Dv1), o2:(B,L1,Dv2), w1_full:(B,L2,L1), w2_full:(B,L1,L2).
    The PyTorch module's ragged per-example cropping of w1/w2 is host glue."""
    B, L1, Dk1 = k1.shape
    _, L2, Dk2 = k2.shape
    Dp1, Dp2 = p1.shape[-1], p2.shape[-1]
    Dv1, Dv2 = v1.shape[-1], v2.shape[-1]
    A = params["w_k1"].shape[-1]

    # ---- lane/sublane-friendly padding (lane-dense output stores) ----------
    L1p, L2p = _round_up(L1, 128), _round_up(L2, 128)
    Dv1p, Dv2p = _round_up(Dv1, 128), _round_up(Dv2, 128)

    def pad3(x, rows, cols):
        pr, pc = rows - x.shape[1], cols - x.shape[2]
        return x if (pr == 0 and pc == 0) else jnp.pad(x, ((0, 0), (0, pr), (0, pc)))

    k1p, p1p, v1p = pad3(k1, L1p, Dk1), pad3(p1, L1p, Dp1), pad3(v1, L1p, Dv1p)
    k2p, p2p, v2p = pad3(k2, L2p, Dk2), pad3(p2, L2p, Dp2), pad3(v2, L2p, Dv2p)

    # ---- fused projection weights: [k-layer | preserved-layer] along N ------
    wk1, bk1 = params["w_k1"], params["b_k1"]
    wk2, bk2 = params["w_k2"], params["b_k2"]
    wp1, bp1 = params["w_pk1"], params["b_pk1"]
    wp2, bp2 = params["w_pk2"], params["b_pk2"]
    W1k = jnp.concatenate([wk1, wp1[:Dk1]], axis=1).astype(compute_dtype)               # (Dk1,  2A)
    W1p = jnp.concatenate([jnp.zeros((Dp1, A), wp1.dtype), wp1[Dk1:]], axis=1
                          ).astype(compute_dtype)                                       # (Dp1,  2A)
    W2k = jnp.concatenate([wk2, wp2[:Dk2]], axis=1).astype(compute_dtype)               # (Dk2,  2A)
    W2p = jnp.concatenate([jnp.zeros((Dp2, A), wp2.dtype), wp2[Dk2:]], axis=1
                          ).astype(compute_dtype)                                       # (Dp2,  2A)
    b1 = jnp.concatenate([jnp.reshape(bk1, (1, A)), jnp.reshape(bp1, (1, A))],
                         axis=1).astype(jnp.float32)                                    # (1, 2A)
    b2 = jnp.concatenate([jnp.reshape(bk2, (1, A)), jnp.reshape(bp2, (1, A))],
                         axis=1).astype(jnp.float32)                                    # (1, 2A)

    l1s = jnp.asarray(k1_lengths, jnp.int32)
    l2s = jnp.asarray(k2_lengths, jnp.int32)

    # ---- generation-aware VMEM budget & batch-block selection ----------------
    try:
        vmem_phys = int(pltpu.get_tpu_info().vmem_capacity_bytes)
    except Exception:
        vmem_phys = 64 << 20            # conservative fallback: v7x per-TC VMEM
    vmem_cap = int(vmem_phys * 0.70)    # <= ~48 MiB on v7x, <= ~90 MiB on v5e/v6e

    csz = jnp.dtype(compute_dtype).itemsize
    wsz = jnp.dtype(weights_dtype).itemsize

    def vmem_est(bb):
        in_b = 4 * bb * (L1p * (Dk1 + Dp1 + Dv1p) + L2p * (Dk2 + Dp2 + Dv2p))
        out_b = bb * (4 * (L2p * Dv1p + L1p * Dv2p) + wsz * 2 * L1p * L2p)
        wt_b = csz * 2 * A * (Dk1 + Dp1 + Dk2 + Dp2) + 4 * 4 * A
        scratch_b = csz * 2 * A * bb * (L1p + L2p)
        live = bb if bb <= 2 else 1                      # unrolled vs fori_loop
        tmp_b = 4 * bb * (L1p + L2p) * 2 * A + 4 * 8 * L1p * L2p * live
        return 2 * (in_b + out_b + wt_b) + scratch_b + tmp_b   # x2: double buffers

    if block_b is None:
        block_b = 1
        for d in sorted((d for d in range(1, B + 1) if B % d == 0), reverse=True):
            # keep >= 2 grid steps so the "parallel" axis can use both v7x cores
            if B >= 2 and B // d < 2:
                continue
            if vmem_est(d) <= vmem_cap // 2:
                block_b = d
                break
    assert B % block_b == 0, "block_b must divide the batch size"
    grid = (B // block_b,)
    vmem_limit = int(min(vmem_cap, max(32 << 20, 2 * vmem_est(block_b))))

    def seq_spec(L, D):
        return pl.BlockSpec((block_b, L, D), lambda b, l1r, l2r: (b, 0, 0))

    def full_spec(shape):
        return pl.BlockSpec(shape, lambda b, l1r, l2r: (0,) * len(shape))

    grid_spec = pltpu.PrefetchScalarGridSpec(
        num_scalar_prefetch=2,
        grid=grid,
        in_specs=[
            seq_spec(L1p, Dk1), seq_spec(L1p, Dp1), seq_spec(L1p, Dv1p),
            seq_spec(L2p, Dk2), seq_spec(L2p, Dp2), seq_spec(L2p, Dv2p),
            full_spec(W1k.shape), full_spec(W1p.shape), full_spec(b1.shape),
            full_spec(W2k.shape), full_spec(W2p.shape), full_spec(b2.shape),
        ],
        out_specs=(
            seq_spec(L2p, Dv1p),   # o1
            seq_spec(L1p, Dv2p),   # o2
            seq_spec(L2p, L1p),    # w1 = softmax(score_1^T), pre-crop
            seq_spec(L1p, L2p),    # w2 = softmax(score_2),   pre-crop
        ),
        scratch_shapes=[
            pltpu.VMEM((block_b * L1p, A), compute_dtype),   # k1a
            pltpu.VMEM((block_b * L1p, A), compute_dtype),   # preserved_k1
            pltpu.VMEM((block_b * L2p, A), compute_dtype),   # k2a
            pltpu.VMEM((block_b * L2p, A), compute_dtype),   # preserved_k2
        ],
    )

    out_shape = (
        jax.ShapeDtypeStruct((B, L2p, Dv1p), jnp.float32),
        jax.ShapeDtypeStruct((B, L1p, Dv2p), jnp.float32),
        jax.ShapeDtypeStruct((B, L2p, L1p), weights_dtype),
        jax.ShapeDtypeStruct((B, L1p, L2p), weights_dtype),
    )

    fn = pl.pallas_call(
        functools.partial(_attn_kernel, block_b=block_b, attn_dim=A,
                          l1_full=L1, l2_full=L2,
                          compute_dtype=compute_dtype,
                          approx_recip=bool(jnp.dtype(weights_dtype) != jnp.dtype(jnp.float32))),
        grid_spec=grid_spec,
        out_shape=out_shape,
        compiler_params=pltpu.CompilerParams(
            dimension_semantics=("parallel",),   # independent batch blocks
            vmem_limit_bytes=vmem_limit,
        ),
    )

    o1, o2, w1f, w2f = fn(l1s, l2s,
                          k1p, p1p, v1p, k2p, p2p, v2p,
                          W1k, W1p, b1, W2k, W2p, b2)

    # Crop the wrapper padding back to the module's shapes.
    if (L2p, Dv1p) != (L2, Dv1):
        o1 = o1[:, :L2, :Dv1]
    if (L1p, Dv2p) != (L1, Dv2):
        o2 = o2[:, :L1, :Dv2]
    if (L2p, L1p) != (L2, L1):
        w1f = w1f[:, :L2, :L1]
    if (L1p, L2p) != (L1, L2):
        w2f = w2f[:, :L1, :L2]
    return o1, o2, w1f, w2f


def _reference(params, k1, k2, p1, p2, v1, v2, l1s, l2s):
    """Pure-JAX f32 reference mirroring the PyTorch forward."""
    pk1 = jnp.concatenate([k1, p1], -1) @ params["w_pk1"] + params["b_pk1"]
    pk2 = jnp.concatenate([k2, p2], -1) @ params["w_pk2"] + params["b_pk2"]
    k1a = k1 @ params["w_k1"] + params["b_k1"]
    k2a = k2 @ params["w_k2"] + params["b_k2"]
    s1 = jnp.einsum("bia,bja->bij", pk1, k2a)      # (B, L1, L2)
    s2 = jnp.einsum("bia,bja->bij", k1a, pk2)      # (B, L1, L2)
    B, L1, L2 = s1.shape
    rows = lax.broadcasted_iota(jnp.int32, (B, L1, L2), 1)
    cols = lax.broadcasted_iota(jnp.int32, (B, L1, L2), 2)
    cnt = ((rows >= l1s[:, None, None]).astype(jnp.int32)
           + (cols >= l2s[:, None, None]).astype(jnp.int32))
    mask = cnt == 1
    s1 = jnp.where(mask, -jnp.inf, s1)
    s2 = jnp.where(mask, -jnp.inf, s2)
    w1 = jax.nn.softmax(jnp.swapaxes(s1, 1, 2), axis=-1)   # (B, L2, L1)
    w2 = jax.nn.softmax(s2, axis=-1)                        # (B, L1, L2)
    o1 = jnp.einsum("bij,bjd->bid", w1, v1)                 # (B, L2, Dv1)
    o2 = jnp.einsum("bij,bjd->bid", w2, v2)                 # (B, L1, Dv2)
    return o1, o2, w1, w2


if __name__ == "__main__":
    # Small, deterministic demo shapes.
    B = 8
    L1, L2 = 8, 16
    Dk1, Dk2 = 16, 24
    Dp1, Dp2 = 8, 8
    A = 32
    Dv1, Dv2 = 16, 24

    key = jax.random.PRNGKey(0)
    ks = jax.random.split(key, 16)

    def lin(kw, kb, din, dout):
        bound = 1.0 / np.sqrt(din)
        w = jax.random.uniform(kw, (din, dout), jnp.float32, -bound, bound)
        b = jax.random.uniform(kb, (1, dout), jnp.float32, -bound, bound)
        return w, b

    w_k1, b_k1 = lin(ks[0], ks[1], Dk1, A)
    w_k2, b_k2 = lin(ks[2], ks[3], Dk2, A)
    w_pk1, b_pk1 = lin(ks[4], ks[5], Dk1 + Dp1, A)
    w_pk2, b_pk2 = lin(ks[6], ks[7], Dk2 + Dp2, A)
    params = dict(w_k1=w_k1, b_k1=b_k1, w_k2=w_k2, b_k2=b_k2,
                  w_pk1=w_pk1, b_pk1=b_pk1, w_pk2=w_pk2, b_pk2=b_pk2)

    k1 = jax.random.normal(ks[8], (B, L1, Dk1), jnp.float32)
    k2 = jax.random.normal(ks[9], (B, L2, Dk2), jnp.float32)
    p1 = jax.random.normal(ks[10], (B, L1, Dp1), jnp.float32)
    p2 = jax.random.normal(ks[11], (B, L2, Dp2), jnp.float32)
    v1 = jax.random.normal(ks[12], (B, L1, Dv1), jnp.float32)
    v2 = jax.random.normal(ks[13], (B, L2, Dv2), jnp.float32)

    k1_lengths_py = [6, 7, 3, 5, 4, 7, 2, 6]       # all < L1 (keeps outputs NaN-free)
    k2_lengths_py = [5, 9, 12, 7, 15, 3, 10, 8]    # all < L2
    k1_lengths = jnp.array(k1_lengths_py, jnp.int32)
    k2_lengths = jnp.array(k2_lengths_py, jnp.int32)

    with jax.default_matmul_precision("highest"):   # true-f32 reference matmuls
        ro1, ro2, rw1, rw2 = _reference(params, k1, k2, p1, p2, v1, v2,
                                        k1_lengths, k2_lengths)
    jax.block_until_ready((ro1, ro2, rw1, rw2))

    configs = [
        # (compute_dtype, weights_dtype, block_b, atol, rtol)
        (jnp.float32,  jnp.float32,  1,    1e-4, 1e-4),   # f32-exact, unrolled
        (jnp.float32,  jnp.float32,  2,    1e-4, 1e-4),   # f32-exact, 2-wide unroll
        (jnp.float32,  jnp.float32,  4,    1e-4, 1e-4),   # f32-exact, fori_loop body
        (jnp.bfloat16, jnp.bfloat16, None, 5e-2, 1e-1),   # perf path: bf16 MXU + bf16 w
    ]
    for cd, wd, bb, atol, rtol in configs:
        o1, o2, w1f, w2f = preserved_bidirectional_attention(
            params, k1, k2, p1, p2, v1, v2, k1_lengths, k2_lengths,
            block_b=bb, compute_dtype=cd, weights_dtype=wd)
        jax.block_until_ready((o1, o2, w1f, w2f))
        np.testing.assert_allclose(np.asarray(o1.astype(jnp.float32)), np.asarray(ro1),
                                   atol=atol, rtol=rtol)
        np.testing.assert_allclose(np.asarray(o2.astype(jnp.float32)), np.asarray(ro2),
                                   atol=atol, rtol=rtol)
        np.testing.assert_allclose(np.asarray(w1f.astype(jnp.float32)), np.asarray(rw1),
                                   atol=atol, rtol=rtol)
        np.testing.assert_allclose(np.asarray(w2f.astype(jnp.float32)), np.asarray(rw2),
                                   atol=atol, rtol=rtol)

    # Final per-example cropping (PyTorch returns Python lists of ragged
    # tensors) — done in host glue with the static lengths.
    # TODO(synk): ragged list outputs have no array-typed Pallas equivalent.
    w1_list = [np.asarray(w1f[i][:l2, :l1].astype(jnp.float32))
               for i, (l1, l2) in enumerate(zip(k1_lengths_py, k2_lengths_py))]
    w2_list = [np.asarray(w2f[i][:l1, :l2].astype(jnp.float32))
               for i, (l1, l2) in enumerate(zip(k1_lengths_py, k2_lengths_py))]
    del w1_list, w2_list

    print("KERNEL_OK")
</pallas_src>

<mosaic_0001>
module attributes {stable_mosaic.version = 11 : i64} {
  func.func @_attn_kernel(%arg0: i32, %arg1: memref<8xi32, #tpu.memory_space<smem>>, %arg2: memref<8xi32, #tpu.memory_space<smem>>, %arg3: memref<1x128x16xf32, #tpu.memory_space<vmem>>, %arg4: memref<1x128x8xf32, #tpu.memory_space<vmem>>, %arg5: memref<1x128x128xf32, #tpu.memory_space<vmem>>, %arg6: memref<1x128x24xf32, #tpu.memory_space<vmem>>, %arg7: memref<1x128x8xf32, #tpu.memory_space<vmem>>, %arg8: memref<1x128x128xf32, #tpu.memory_space<vmem>>, %arg9: memref<16x64xf32, #tpu.memory_space<vmem>>, %arg10: memref<8x64xf32, #tpu.memory_space<vmem>>, %arg11: memref<1x64xf32, #tpu.memory_space<vmem>>, %arg12: memref<24x64xf32, #tpu.memory_space<vmem>>, %arg13: memref<8x64xf32, #tpu.memory_space<vmem>>, %arg14: memref<1x64xf32, #tpu.memory_space<vmem>>, %arg15: memref<1x128x128xf32, #tpu.memory_space<vmem>>, %arg16: memref<1x128x128xf32, #tpu.memory_space<vmem>>, %arg17: memref<1x128x128xf32, #tpu.memory_space<vmem>>, %arg18: memref<1x128x128xf32, #tpu.memory_space<vmem>>, %arg19: memref<128x32xf32, #tpu.memory_space<vmem>>, %arg20: memref<128x32xf32, #tpu.memory_space<vmem>>, %arg21: memref<128x32xf32, #tpu.memory_space<vmem>>, %arg22: memref<128x32xf32, #tpu.memory_space<vmem>>) attributes {dimension_semantics = [#tpu.dimension_semantics<parallel>], iteration_bounds = array<i64: 8>, scalar_prefetch = 2 : i64, scratch_operands = 4 : i64, tpu.core_type = #tpu.core_type<tc>, window_params = [{transform_indices = @transform_0, window_bounds = array<i64: 1, 128, 16>}, {transform_indices = @transform_1, window_bounds = array<i64: 1, 128, 8>}, {transform_indices = @transform_2, window_bounds = array<i64: 1, 128, 128>}, {transform_indices = @transform_3, window_bounds = array<i64: 1, 128, 24>}, {transform_indices = @transform_4, window_bounds = array<i64: 1, 128, 8>}, {transform_indices = @transform_5, window_bounds = array<i64: 1, 128, 128>}, {pipeline_mode = #tpu.pipeline_mode<synchronous>, transform_indices = @transform_6, window_bounds = array<i64: 16, 64>}, {pipeline_mode = #tpu.pipeline_mode<synchronous>, transform_indices = @transform_7, window_bounds = array<i64: 8, 64>}, {pipeline_mode = #tpu.pipeline_mode<synchronous>, transform_indices = @transform_8, window_bounds = array<i64: 1, 64>}, {pipeline_mode = #tpu.pipeline_mode<synchronous>, transform_indices = @transform_9, window_bounds = array<i64: 24, 64>}, {pipeline_mode = #tpu.pipeline_mode<synchronous>, transform_indices = @transform_10, window_bounds = array<i64: 8, 64>}, {pipeline_mode = #tpu.pipeline_mode<synchronous>, transform_indices = @transform_11, window_bounds = array<i64: 1, 64>}, {transform_indices = @transform_12, window_bounds = array<i64: 1, 128, 128>}, {transform_indices = @transform_13, window_bounds = array<i64: 1, 128, 128>}, {transform_indices = @transform_14, window_bounds = array<i64: 1, 128, 128>}, {transform_indices = @transform_15, window_bounds = array<i64: 1, 128, 128>}]} {
    %c1_i32 = arith.constant 1 : i32
    %0 = arith.muli %arg0, %c1_i32 : i32
    %c0 = arith.constant 0 : index
    %c0_0 = arith.constant 0 : index
    %c0_1 = arith.constant 0 : index
    %1 = vector.load %arg3[%c0, %c0_0, %c0_1] : memref<1x128x16xf32, #tpu.memory_space<vmem>>, vector<1x128x16xf32>
    %2 = vector.shape_cast %1 : vector<1x128x16xf32> to vector<128x16xf32>
    %c0_2 = arith.constant 0 : index
    %c0_3 = arith.constant 0 : index
    %c0_4 = arith.constant 0 : index
    %3 = vector.load %arg4[%c0_2, %c0_3, %c0_4] : memref<1x128x8xf32, #tpu.memory_space<vmem>>, vector<1x128x8xf32>
    %4 = vector.shape_cast %3 : vector<1x128x8xf32> to vector<128x8xf32>
    %c0_5 = arith.constant 0 : index
    %c0_6 = arith.constant 0 : index
    %c0_7 = arith.constant 0 : index
    %5 = vector.load %arg6[%c0_5, %c0_6, %c0_7] : memref<1x128x24xf32, #tpu.memory_space<vmem>>, vector<1x128x24xf32>
    %6 = vector.shape_cast %5 : vector<1x128x24xf32> to vector<128x24xf32>
    %c0_8 = arith.constant 0 : index
    %c0_9 = arith.constant 0 : index
    %c0_10 = arith.constant 0 : index
    %7 = vector.load %arg7[%c0_8, %c0_9, %c0_10] : memref<1x128x8xf32, #tpu.memory_space<vmem>>, vector<1x128x8xf32>
    %8 = vector.shape_cast %7 : vector<1x128x8xf32> to vector<128x8xf32>
    %c0_11 = arith.constant 0 : index
    %c0_12 = arith.constant 0 : index
    %9 = vector.load %arg9[%c0_11, %c0_12] : memref<16x64xf32, #tpu.memory_space<vmem>>, vector<16x64xf32>
    %cst = arith.constant dense<0.000000e+00> : vector<128x64xf32>
    %10 = tpu.matmul %2, %9, %cst {dimension_numbers = #tpu.dot_dimension_numbers<[1], [0], [0], [1], [0, 0, 1, 1], [], []>} : vector<128x16xf32>, vector<16x64xf32>, vector<128x64xf32> -> vector<128x64xf32>
    %c0_13 = arith.constant 0 : index
    %c0_14 = arith.constant 0 : index
    %11 = vector.load %arg10[%c0_13, %c0_14] : memref<8x64xf32, #tpu.memory_space<vmem>>, vector<8x64xf32>
    %cst_15 = arith.constant dense<0.000000e+00> : vector<128x64xf32>
    %12 = tpu.matmul %4, %11, %cst_15 {dimension_numbers = #tpu.dot_dimension_numbers<[1], [0], [0], [1], [0, 0, 1, 1], [], []>} : vector<128x8xf32>, vector<8x64xf32>, vector<128x64xf32> -> vector<128x64xf32>
    %13 = arith.addf %10, %12 : vector<128x64xf32>
    %c0_16 = arith.constant 0 : index
    %c0_17 = arith.constant 0 : index
    %14 = vector.load %arg11[%c0_16, %c0_17] : memref<1x64xf32, #tpu.memory_space<vmem>>, vector<1x64xf32>
    %15 = vector.broadcast %14 : vector<1x64xf32> to vector<128x64xf32>
    %16 = arith.addf %13, %15 : vector<128x64xf32>
    %c0_18 = arith.constant 0 : index
    %c0_19 = arith.constant 0 : index
    %17 = vector.load %arg12[%c0_18, %c0_19] : memref<24x64xf32, #tpu.memory_space<vmem>>, vector<24x64xf32>
    %cst_20 = arith.constant dense<0.000000e+00> : vector<128x64xf32>
    %18 = tpu.matmul %6, %17, %cst_20 {dimension_numbers = #tpu.dot_dimension_numbers<[1], [0], [0], [1], [0, 0, 1, 1], [], []>} : vector<128x24xf32>, vector<24x64xf32>, vector<128x64xf32> -> vector<128x64xf32>
    %c0_21 = arith.constant 0 : index
    %c0_22 = arith.constant 0 : index
    %19 = vector.load %arg13[%c0_21, %c0_22] : memref<8x64xf32, #tpu.memory_space<vmem>>, vector<8x64xf32>
    %cst_23 = arith.constant dense<0.000000e+00> : vector<128x64xf32>
    %20 = tpu.matmul %8, %19, %cst_23 {dimension_numbers = #tpu.dot_dimension_numbers<[1], [0], [0], [1], [0, 0, 1, 1], [], []>} : vector<128x8xf32>, vector<8x64xf32>, vector<128x64xf32> -> vector<128x64xf32>
    %21 = arith.addf %18, %20 : vector<128x64xf32>
    %c0_24 = arith.constant 0 : index
    %c0_25 = arith.constant 0 : index
    %22 = vector.load %arg14[%c0_24, %c0_25] : memref<1x64xf32, #tpu.memory_space<vmem>>, vector<1x64xf32>
    %23 = vector.broadcast %22 : vector<1x64xf32> to vector<128x64xf32>
    %24 = arith.addf %21, %23 : vector<128x64xf32>
    %25 = vector.extract_strided_slice %16 {offsets = [0, 0], sizes = [128, 32], strides = [1, 1]} : vector<128x64xf32> to vector<128x32xf32>
    %c0_26 = arith.constant 0 : index
    %c0_27 = arith.constant 0 : index
    %26 = vector.load %arg19[%c0_26, %c0_27] : memref<128x32xf32, #tpu.memory_space<vmem>>, vector<128x32xf32>
    tpu.vector_store %arg19[%c0_26, %c0_27], %25 {strides = array<i32>} : memref<128x32xf32, #tpu.memory_space<vmem>>, vector<128x32xf32>,
    %27 = vector.extract_strided_slice %16 {offsets = [0, 32], sizes = [128, 32], strides = [1, 1]} : vector<128x64xf32> to vector<128x32xf32>
    %c0_28 = arith.constant 0 : index
    %c0_29 = arith.constant 0 : index
    %28 = vector.load %arg20[%c0_28, %c0_29] : memref<128x32xf32, #tpu.memory_space<vmem>>, vector<128x32xf32>
    tpu.vector_store %arg20[%c0_28, %c0_29], %27 {strides = array<i32>} : memref<128x32xf32, #tpu.memory_space<vmem>>, vector<128x32xf32>,
    %29 = vector.extract_strided_slice %24 {offsets = [0, 0], sizes = [128, 32], strides = [1, 1]} : vector<128x64xf32> to vector<128x32xf32>
    %c0_30 = arith.constant 0 : index
    %c0_31 = arith.constant 0 : index
    %30 = vector.load %arg21[%c0_30, %c0_31] : memref<128x32xf32, #tpu.memory_space<vmem>>, vector<128x32xf32>
    tpu.vector_store %arg21[%c0_30, %c0_31], %29 {strides = array<i32>} : memref<128x32xf32, #tpu.memory_space<vmem>>, vector<128x32xf32>,
    %31 = vector.extract_strided_slice %24 {offsets = [0, 32], sizes = [128, 32], strides = [1, 1]} : vector<128x64xf32> to vector<128x32xf32>
    %c0_32 = arith.constant 0 : index
    %c0_33 = arith.constant 0 : index
    %32 = vector.load %arg22[%c0_32, %c0_33] : memref<128x32xf32, #tpu.memory_space<vmem>>, vector<128x32xf32>
    tpu.vector_store %arg22[%c0_32, %c0_33], %31 {strides = array<i32>} : memref<128x32xf32, #tpu.memory_space<vmem>>, vector<128x32xf32>,
    %33 = tpu.iota {dimensions = array<i32: 0>} : vector<128x1xi32>
    %34 = tpu.iota {dimensions = array<i32: 1>} : vector<1x128xi32>
    %35 = tpu.iota {dimensions = array<i32: 0>} : vector<128x1xi32>
    %36 = tpu.iota {dimensions = array<i32: 1>} : vector<1x128xi32>
    %c8_i32 = arith.constant 8 : i32
    %37 = vector.broadcast %c8_i32 : i32 to vector<1x128xi32>
    %38 = arith.cmpi sge, %34, %37 : vector<1x128xi32>
    %c16_i32 = arith.constant 16 : i32
    %39 = vector.broadcast %c16_i32 : i32 to vector<1x128xi32>
    %40 = arith.cmpi sge, %36, %39 : vector<1x128xi32>
    %c0_i32 = arith.constant 0 : i32
    %41 = arith.addi %0, %c0_i32 : i32
    %42 = arith.index_cast %41 : i32 to index
    %43 = memref.load %arg1[%42] : memref<8xi32, #tpu.memory_space<smem>>
    %c0_i32_34 = arith.constant 0 : i32
    %44 = arith.addi %0, %c0_i32_34 : i32
    %45 = arith.index_cast %44 : i32 to index
    %46 = memref.load %arg2[%45] : memref<8xi32, #tpu.memory_space<smem>>
    %c0_35 = arith.constant 0 : index
    %c0_36 = arith.constant 0 : index
    %47 = vector.load %arg19[%c0_35, %c0_36] : memref<128x32xf32, #tpu.memory_space<vmem>>, vector<128x32xf32>
    %c0_37 = arith.constant 0 : index
    %c0_38 = arith.constant 0 : index
    %48 = vector.load %arg20[%c0_37, %c0_38] : memref<128x32xf32, #tpu.memory_space<vmem>>, vector<128x32xf32>
    %c0_39 = arith.constant 0 : index
    %c0_40 = arith.constant 0 : index
    %49 = vector.load %arg21[%c0_39, %c0_40] : memref<128x32xf32, #tpu.memory_space<vmem>>, vector<128x32xf32>
    %c0_41 = arith.constant 0 : index
    %c0_42 = arith.constant 0 : index
    %50 = vector.load %arg22[%c0_41, %c0_42] : memref<128x32xf32, #tpu.memory_space<vmem>>, vector<128x32xf32>
    %cst_43 = arith.constant dense<0.000000e+00> : vector<128x128xf32>
    %51 = tpu.matmul %49, %48, %cst_43 {dimension_numbers = #tpu.dot_dimension_numbers<[1], [1], [0], [0], [0, 0, 1, 0], [], []>} : vector<128x32xf32>, vector<128x32xf32>, vector<128x128xf32> -> vector<128x128xf32>
    %cst_44 = arith.constant dense<0.000000e+00> : vector<128x128xf32>
    %52 = tpu.matmul %47, %50, %cst_44 {dimension_numbers = #tpu.dot_dimension_numbers<[1], [1], [0], [0], [0, 0, 1, 0], [], []>} : vector<128x32xf32>, vector<128x32xf32>, vector<128x128xf32> -> vector<128x128xf32>
    %53 = vector.broadcast %43 : i32 to vector<128x1xi32>
    %54 = arith.cmpi sge, %33, %53 : vector<128x1xi32>
    %55 = vector.broadcast %43 : i32 to vector<1x128xi32>
    %56 = arith.cmpi sge, %34, %55 : vector<1x128xi32>
    %57 = vector.broadcast %46 : i32 to vector<128x1xi32>
    %58 = arith.cmpi sge, %35, %57 : vector<128x1xi32>
    %59 = vector.broadcast %46 : i32 to vector<1x128xi32>
    %60 = arith.cmpi sge, %36, %59 : vector<1x128xi32>
    %61 = vector.broadcast %54 : vector<128x1xi1> to vector<128x128xi1>
    %62 = vector.broadcast %60 : vector<1x128xi1> to vector<128x128xi1>
    %63 = arith.xori %61, %62 : vector<128x128xi1>
    %64 = vector.broadcast %40 : vector<1x128xi1> to vector<128x128xi1>
    %65 = arith.ori %63, %64 : vector<128x128xi1>
    %66 = vector.broadcast %58 : vector<128x1xi1> to vector<128x128xi1>
    %67 = vector.broadcast %56 : vector<1x128xi1> to vector<128x128xi1>
    %68 = arith.xori %66, %67 : vector<128x128xi1>
    %69 = vector.broadcast %38 : vector<1x128xi1> to vector<128x128xi1>
    %70 = arith.ori %68, %69 : vector<128x128xi1>
    %cst_45 = arith.constant 0xFF800000 : f32
    %71 = vector.broadcast %cst_45 : f32 to vector<128x128xf32>
    %72 = arith.select %70, %71, %51 : vector<128x128xi1>, vector<128x128xf32>
    %cst_46 = arith.constant dense<0xFF800000> : vector<128xf32>
    %73 = vector.multi_reduction <maximumf>, %72, %cst_46 [1] : vector<128x128xf32> to vector<128xf32>
    %74 = vector.shape_cast %73 : vector<128xf32> to vector<128x1xf32>
    %75 = vector.broadcast %74 : vector<128x1xf32> to vector<128x128xf32>
    %76 = arith.subf %72, %75 : vector<128x128xf32>
    %77 = math.exp %76 : vector<128x128xf32>
    %cst_47 = arith.constant dense<0.000000e+00> : vector<128xf32>
    %78 = vector.multi_reduction <add>, %77, %cst_47 [1] : vector<128x128xf32> to vector<128xf32>
    %79 = vector.shape_cast %78 : vector<128xf32> to vector<128x1xf32>
    %80 = tpu.reciprocal %79 : vector<128x1xf32> -> vector<128x1xf32>
    %81 = vector.broadcast %80 : vector<128x1xf32> to vector<128x128xf32>
    %82 = arith.mulf %77, %81 : vector<128x128xf32>
    %cst_48 = arith.constant 0xFF800000 : f32
    %83 = vector.broadcast %cst_48 : f32 to vector<128x128xf32>
    %84 = arith.select %65, %83, %52 : vector<128x128xi1>, vector<128x128xf32>
    %cst_49 = arith.constant dense<0xFF800000> : vector<128xf32>
    %85 = vector.multi_reduction <maximumf>, %84, %cst_49 [1] : vector<128x128xf32> to vector<128xf32>
    %86 = vector.shape_cast %85 : vector<128xf32> to vector<128x1xf32>
    %87 = vector.broadcast %86 : vector<128x1xf32> to vector<128x128xf32>
    %88 = arith.subf %84, %87 : vector<128x128xf32>
    %89 = math.exp %88 : vector<128x128xf32>
    %cst_50 = arith.constant dense<0.000000e+00> : vector<128xf32>
    %90 = vector.multi_reduction <add>, %89, %cst_50 [1] : vector<128x128xf32> to vector<128xf32>
    %91 = vector.shape_cast %90 : vector<128xf32> to vector<128x1xf32>
    %92 = tpu.reciprocal %91 : vector<128x1xf32> -> vector<128x1xf32>
    %93 = vector.broadcast %92 : vector<128x1xf32> to vector<128x128xf32>
    %94 = arith.mulf %89, %93 : vector<128x128xf32>
    %c0_51 = arith.constant 0 : index
    %c0_52 = arith.constant 0 : index
    %c0_53 = arith.constant 0 : index
    %95 = vector.load %arg5[%c0_51, %c0_52, %c0_53] : memref<1x128x128xf32, #tpu.memory_space<vmem>>, vector<1x128x128xf32>
    %96 = vector.shape_cast %95 : vector<1x128x128xf32> to vector<128x128xf32>
    %cst_54 = arith.constant dense<0.000000e+00> : vector<128x128xf32>
    %97 = tpu.matmul %82, %96, %cst_54 {dimension_numbers = #tpu.dot_dimension_numbers<[1], [0], [0], [1], [0, 0, 1, 1], [], []>} : vector<128x128xf32>, vector<128x128xf32>, vector<128x128xf32> -> vector<128x128xf32>
    %c0_55 = arith.constant 0 : index
    %c0_56 = arith.constant 0 : index
    %c0_57 = arith.constant 0 : index
    %98 = vector.load %arg8[%c0_55, %c0_56, %c0_57] : memref<1x128x128xf32, #tpu.memory_space<vmem>>, vector<1x128x128xf32>
    %99 = vector.shape_cast %98 : vector<1x128x128xf32> to vector<128x128xf32>
    %cst_58 = arith.constant dense<0.000000e+00> : vector<128x128xf32>
    %100 = tpu.matmul %94, %99, %cst_58 {dimension_numbers = #tpu.dot_dimension_numbers<[1], [0], [0], [1], [0, 0, 1, 1], [], []>} : vector<128x128xf32>, vector<128x128xf32>, vector<128x128xf32> -> vector<128x128xf32>
    %c0_59 = arith.constant 0 : index
    %c0_60 = arith.constant 0 : index
    %c0_61 = arith.constant 0 : index
    %101 = vector.load %arg15[%c0_59, %c0_60, %c0_61] : memref<1x128x128xf32, #tpu.memory_space<vmem>>, vector<1x128x128xf32>
    %102 = vector.shape_cast %101 : vector<1x128x128xf32> to vector<128x128xf32>
    %103 = vector.shape_cast %97 : vector<128x128xf32> to vector<1x128x128xf32>
    tpu.vector_store %arg15[%c0_59, %c0_60, %c0_61], %103 {strides = array<i32>} : memref<1x128x128xf32, #tpu.memory_space<vmem>>, vector<1x128x128xf32>,
    %c0_62 = arith.constant 0 : index
    %c0_63 = arith.constant 0 : index
    %c0_64 = arith.constant 0 : index
    %104 = vector.load %arg16[%c0_62, %c0_63, %c0_64] : memref<1x128x128xf32, #tpu.memory_space<vmem>>, vector<1x128x128xf32>
    %105 = vector.shape_cast %104 : vector<1x128x128xf32> to vector<128x128xf32>
    %106 = vector.shape_cast %100 : vector<128x128xf32> to vector<1x128x128xf32>
    tpu.vector_store %arg16[%c0_62, %c0_63, %c0_64], %106 {strides = array<i32>} : memref<1x128x128xf32, #tpu.memory_space<vmem>>, vector<1x128x128xf32>,
    %c0_65 = arith.constant 0 : index
    %c0_66 = arith.constant 0 : index
    %c0_67 = arith.constant 0 : index
    %107 = vector.load %arg17[%c0_65, %c0_66, %c0_67] : memref<1x128x128xf32, #tpu.memory_space<vmem>>, vector<1x128x128xf32>
    %108 = vector.shape_cast %107 : vector<1x128x128xf32> to vector<128x128xf32>
    %109 = vector.shape_cast %82 : vector<128x128xf32> to vector<1x128x128xf32>
    tpu.vector_store %arg17[%c0_65, %c0_66, %c0_67], %109 {strides = array<i32>} : memref<1x128x128xf32, #tpu.memory_space<vmem>>, vector<1x128x128xf32>,
    %c0_68 = arith.constant 0 : index
    %c0_69 = arith.constant 0 : index
    %c0_70 = arith.constant 0 : index
    %110 = vector.load %arg18[%c0_68, %c0_69, %c0_70] : memref<1x128x128xf32, #tpu.memory_space<vmem>>, vector<1x128x128xf32>
    %111 = vector.shape_cast %110 : vector<1x128x128xf32> to vector<128x128xf32>
    %112 = vector.shape_cast %94 : vector<128x128xf32> to vector<1x128x128xf32>
    tpu.vector_store %arg18[%c0_68, %c0_69, %c0_70], %112 {strides = array<i32>} : memref<1x128x128xf32, #tpu.memory_space<vmem>>, vector<1x128x128xf32>,
    return
  }
  func.func @transform_0(%arg0: i32, %arg1: memref<8xi32, #tpu.memory_space<smem>>, %arg2: memref<8xi32, #tpu.memory_space<smem>>) -> (i32, i32, i32) {
    %c0_i32 = arith.constant 0 : i32
    %c0_i32_0 = arith.constant 0 : i32
    %c0_i32_1 = arith.constant 0 : i32
    return %arg0, %c0_i32, %c0_i32_0 : i32, i32, i32
  }
  func.func @transform_1(%arg0: i32, %arg1: memref<8xi32, #tpu.memory_space<smem>>, %arg2: memref<8xi32, #tpu.memory_space<smem>>) -> (i32, i32, i32) {
    %c0_i32 = arith.constant 0 : i32
    %c0_i32_0 = arith.constant 0 : i32
    %c0_i32_1 = arith.constant 0 : i32
    return %arg0, %c0_i32, %c0_i32_0 : i32, i32, i32
  }
  func.func @transform_2(%arg0: i32, %arg1: memref<8xi32, #tpu.memory_space<smem>>, %arg2: memref<8xi32, #tpu.memory_space<smem>>) -> (i32, i32, i32) {
    %c0_i32 = arith.constant 0 : i32
    %c0_i32_0 = arith.constant 0 : i32
    %c0_i32_1 = arith.constant 0 : i32
    return %arg0, %c0_i32, %c0_i32_0 : i32, i32, i32
  }
  func.func @transform_3(%arg0: i32, %arg1: memref<8xi32, #tpu.memory_space<smem>>, %arg2: memref<8xi32, #tpu.memory_space<smem>>) -> (i32, i32, i32) {
    %c0_i32 = arith.constant 0 : i32
    %c0_i32_0 = arith.constant 0 : i32
    %c0_i32_1 = arith.constant 0 : i32
    return %arg0, %c0_i32, %c0_i32_0 : i32, i32, i32
  }
  func.func @transform_4(%arg0: i32, %arg1: memref<8xi32, #tpu.memory_space<smem>>, %arg2: memref<8xi32, #tpu.memory_space<smem>>) -> (i32, i32, i32) {
    %c0_i32 = arith.constant 0 : i32
    %c0_i32_0 = arith.constant 0 : i32
    %c0_i32_1 = arith.constant 0 : i32
    return %arg0, %c0_i32, %c0_i32_0 : i32, i32, i32
  }
  func.func @transform_5(%arg0: i32, %arg1: memref<8xi32, #tpu.memory_space<smem>>, %arg2: memref<8xi32, #tpu.memory_space<smem>>) -> (i32, i32, i32) {
    %c0_i32 = arith.constant 0 : i32
    %c0_i32_0 = arith.constant 0 : i32
    %c0_i32_1 = arith.constant 0 : i32
    return %arg0, %c0_i32, %c0_i32_0 : i32, i32, i32
  }
  func.func @transform_6(%arg0: i32, %arg1: memref<8xi32, #tpu.memory_space<smem>>, %arg2: memref<8xi32, #tpu.memory_space<smem>>) -> (i32, i32) {
    %c0_i32 = arith.constant 0 : i32
    %c0_i32_0 = arith.constant 0 : i32
    %c0_i32_1 = arith.constant 0 : i32
    return %c0_i32, %c0_i32_0 : i32, i32
  }
  func.func @transform_7(%arg0: i32, %arg1: memref<8xi32, #tpu.memory_space<smem>>, %arg2: memref<8xi32, #tpu.memory_space<smem>>) -> (i32, i32) {
    %c0_i32 = arith.constant 0 : i32
    %c0_i32_0 = arith.constant 0 : i32
    %c0_i32_1 = arith.constant 0 : i32
    return %c0_i32, %c0_i32_0 : i32, i32
  }
  func.func @transform_8(%arg0: i32, %arg1: memref<8xi32, #tpu.memory_space<smem>>, %arg2: memref<8xi32, #tpu.memory_space<smem>>) -> (i32, i32) {
    %c0_i32 = arith.constant 0 : i32
    %c0_i32_0 = arith.constant 0 : i32
    %c0_i32_1 = arith.constant 0 : i32
    return %c0_i32, %c0_i32_0 : i32, i32
  }
  func.func @transform_9(%arg0: i32, %arg1: memref<8xi32, #tpu.memory_space<smem>>, %arg2: memref<8xi32, #tpu.memory_space<smem>>) -> (i32, i32) {
    %c0_i32 = arith.constant 0 : i32
    %c0_i32_0 = arith.constant 0 : i32
    %c0_i32_1 = arith.constant 0 : i32
    return %c0_i32, %c0_i32_0 : i32, i32
  }
  func.func @transform_10(%arg0: i32, %arg1: memref<8xi32, #tpu.memory_space<smem>>, %arg2: memref<8xi32, #tpu.memory_space<smem>>) -> (i32, i32) {
    %c0_i32 = arith.constant 0 : i32
    %c0_i32_0 = arith.constant 0 : i32
    %c0_i32_1 = arith.constant 0 : i32
    return %c0_i32, %c0_i32_0 : i32, i32
  }
  func.func @transform_11(%arg0: i32, %arg1: memref<8xi32, #tpu.memory_space<smem>>, %arg2: memref<8xi32, #tpu.memory_space<smem>>) -> (i32, i32) {
    %c0_i32 = arith.constant 0 : i32
    %c0_i32_0 = arith.constant 0 : i32
    %c0_i32_1 = arith.constant 0 : i32
    return %c0_i32, %c0_i32_0 : i32, i32
  }
  func.func @transform_12(%arg0: i32, %arg1: memref<8xi32, #tpu.memory_space<smem>>, %arg2: memref<8xi32, #tpu.memory_space<smem>>) -> (i32, i32, i32) {
    %c0_i32 = arith.constant 0 : i32
    %c0_i32_0 = arith.constant 0 : i32
    %c0_i32_1 = arith.constant 0 : i32
    return %arg0, %c0_i32, %c0_i32_0 : i32, i32, i32
  }
  func.func @transform_13(%arg0: i32, %arg1: memref<8xi32, #tpu.memory_space<smem>>, %arg2: memref<8xi32, #tpu.memory_space<smem>>) -> (i32, i32, i32) {
    %c0_i32 = arith.constant 0 : i32
    %c0_i32_0 = arith.constant 0 : i32
    %c0_i32_1 = arith.constant 0 : i32
    return %arg0, %c0_i32, %c0_i32_0 : i32, i32, i32
  }
  func.func @transform_14(%arg0: i32, %arg1: memref<8xi32, #tpu.memory_space<smem>>, %arg2: memref<8xi32, #tpu.memory_space<smem>>) -> (i32, i32, i32) {
    %c0_i32 = arith.constant 0 : i32
    %c0_i32_0 = arith.constant 0 : i32
    %c0_i32_1 = arith.constant 0 : i32
    return %arg0, %c0_i32, %c0_i32_0 : i32, i32, i32
  }
  func.func @transform_15(%arg0: i32, %arg1: memref<8xi32, #tpu.memory_space<smem>>, %arg2: memref<8xi32, #tpu.memory_space<smem>>) -> (i32, i32, i32) {
    %c0_i32 = arith.constant 0 : i32
    %c0_i32_0 = arith.constant 0 : i32
    %c0_i32_1 = arith.constant 0 : i32
    return %arg0, %c0_i32, %c0_i32_0 : i32, i32, i32
  }
}

</mosaic_0001>

<bundles_post_ra>
// kernel: tpu_custom_call.1
= control target key start
LH: loop header
LB: loop body
LE: loop exit
PB: predicated region body
PF: predicated region fallthrough
CT: control target
= control target key end

     0   :  { %s3782_s30 = smov [#allocation8]   ;;  %s5334_s0 = inlined_call_operand.vmem [shape: s32[8], index: 0, kind: input, shape index: {}]   ;;  %s5335_s2 = inlined_call_operand.vmem [shape: f32[8,128,16], index: 2, kind: input, shape index: {}]   ;;  %s5336_s3 = inlined_call_operand.vmem [shape: f32[8,128,8], index: 3, kind: input, shape index: {}]   ;;  %s5337_s4 = inlined_call_operand.vmem [shape: f32[8,128,128], index: 4, kind: input, shape index: {}]   ;;  %s5338_s5 = inlined_call_operand.vmem [shape: f32[8,128,24], index: 5, kind: input, shape index: {}]   ;;  %s5339_s6 = inlined_call_operand.vmem [shape: f32[8,128,8], index: 6, kind: input, shape index: {}]   ;;  %s5340_s7 = inlined_call_operand.vmem [shape: f32[8,128,128], index: 7, kind: input, shape index: {}]   ;;  %s5341_s8 = inlined_call_operand.vmem [shape: f32[16,64], index: 8, kind: input, shape index: {}]   ;;  %s5342_s9 = inlined_call_operand.vmem [shape: f32[8,64], index: 9, kind: input, shape index: {}]   ;;  %s5343_s10 = inlined_call_operand.vmem [shape: f32[1,64], index: 10, kind: input, shape index: {}]   ;;  %s5344_s11 = inlined_call_operand.vmem [shape: f32[24,64], index: 11, kind: input, shape index: {}]   ;;  %s5345_s12 = inlined_call_operand.vmem [shape: f32[8,64], index: 12, kind: input, shape index: {}]   ;;  %s5346_s13 = inlined_call_operand.vmem [shape: f32[1,64], index: 13, kind: input, shape index: {}]   ;;  %s5347_s14 = inlined_call_operand.hbm [shape: f32[8,128,128], index: 14, kind: output, shape index: {0}]   ;;  %s5348_s15 = inlined_call_operand.hbm [shape: f32[8,128,128], index: 15, kind: output, shape index: {1}]   ;;  %s5349_s16 = inlined_call_operand.hbm [shape: f32[8,128,128], index: 16, kind: output, shape index: {2}]   ;;  %s5350_s17 = inlined_call_operand.hbm [shape: f32[8,128,128], index: 17, kind: output, shape index: {3}]   ;;  %s5351_s1 = inlined_call_operand.vmem [shape: s32[8], index: 1, kind: input, shape index: {}]  }
   0x1   :  { %5358 = sst [smem:[#allocation22_spill]] %s5334_s0  ;;  %s29_s29 = sshll.u32 %s5351_s1, 4  ;;  %s30_s29 = int_to_ptr.vmem [resolvable:$true] %s29_s29 }
   0x2   :  { %5359 = sst [smem:[#allocation23_spill]] %s5335_s2  ;;  %s3781_s0 = smov [#allocation7]  }
   0x3   :  { %5360 = sst [smem:[#allocation24_spill]] %s5336_s3 }
   0x4   :  { %5361 = sst [smem:[#allocation25_spill]] %s5337_s4 }
   0x5   :  { %5362 = sst [smem:[#allocation26_spill]] %s5338_s5 }
   0x6   :  { %5363 = sst [smem:[#allocation27_spill]] %s5339_s6 }
   0x7   :  { %5364 = sst [smem:[#allocation28_spill]] %s5340_s7 }
   0x8   :  { %5365 = sst [smem:[#allocation29_spill]] %s5341_s8 }
   0x9   :  { %5366 = sst [smem:[#allocation30_spill]] %s5342_s9 }
   0xa   :  { %5367 = sst [smem:[#allocation31_spill]] %s5343_s10 }
   0xb   :  { %5368 = sst [smem:[#allocation32_spill]] %s5344_s11 }
   0xc   :  { %5369 = sst [smem:[#allocation33_spill]] %s5345_s12 }
   0xd   :  { %s5370_s26 = sld [smem:[#allocation22_spill]] }
  0x13   :  { %s24_s7 = sshll.u32 %s5370_s26, 4  ;;  %s25_s7 = int_to_ptr.vmem [resolvable:$true] %s24_s7 }
  0x14   :  { %27 = dma.vmem_to_smem %s25_s7, 16, %s3781_s0, [#allocation6] }
  0x15   :  { %32 = dma.vmem_to_smem %s30_s29, 16, %s3782_s30, [#allocation6] }
  0x16   :  { %3751 = dma.done.wait [#allocation6], 32 }
  0x17   :  { %3752 = vsyncadd [#allocation6], 4294967264 }
  0x18   :  { %35 = sfence }
  0x19   :  { %36 = vsyncpa [#allocation10], 0 }
  0x1a   :  { %38 = vsyncpa [#allocation10 + $0x1], 0 }
  0x1b   :  { %39 = vsyncpa [#allocation12], 0 }
  0x1c   :  { %41 = vsyncpa [#allocation12 + $0x1], 0 }
  0x1d   :  { %42 = vsyncpa [#allocation15], 0 }
  0x1e   :  { %44 = vsyncpa [#allocation15 + $0x1], 0  ;;  %s3882_s18 = smov 0   ;;  %s3884_s19 = smov 0  }
  0x1f   :  { %s3886_s1 = smov 0   ;;  %s3888_s2 = smov 0  }
  0x20 LB: > { %5371 = sst [smem:[#allocation20_spill]] %s3775_s1  ;;  %s3903_s7 = sadd.s32 4294967295, %s3779_s2   ;;  %s3779_s2 = sphi %s3888_s2, %s5415_s2   ;;  %s3775_s1 = sphi %s3886_s1, %s5412_s1   ;;  %s3771_s19 = sphi %s3884_s19, %s5414_s19   ;;  %s3767_s18 = sphi %s3882_s18, %s5413_s18  }
  0x21   : > { %s5352_s20 = sadd.s32 4294967294, %s3779_s2   ;;  %s3907_s21 = sadd.s32 1, %s3779_s2  }
  0x22   : > { %s339_s22 = sadd.s32 1, %s3775_s1  ;;  %s336_s23 = ssub.s32 %s3779_s2, %s3907_s21 }
  0x23   : > { %p349_p0 = scmp.ne.s32.totalorder %s3775_s1, %s3771_s19  ;;  %p337_p1 = scmp.eq.s32.totalorder %s336_s23, 0 }
  0x24   : > { %p350_p2 = scmp.eq.s32.totalorder %s3903_s7, 7  ;;  %p355_p3 = scmp.ne.s32.totalorder %s3771_s19, %s3767_s18 }
  0x25   : > { %p356_p4 = scmp.eq.s32.totalorder %s5352_s20, 7  ;;  %p3241_p7 = scmp.ge.s32.totalorder %s3779_s2, 1 }
  0x26   : > { %s3920_s24 = scalar_select %p337_p1, %s3775_s1, %s339_s22  }
  0x27   : > { %p3922_p5 = por %p350_p2, %p349_p0  ;;  %p3926_p6 = por %p356_p4, %p355_p3 }
  0x28   : > { %5372 = sst [smem:[#allocation21_spill]] %s3920_s24  ;;  %p518_p8 = scmp.lt.s32.totalorder %s3779_s2, 9 }
  0x2a   : > { %p519_p9 = pnand %p3241_p7, %p518_p8 }
  0x2b   : > { %s5375_s11 = sld [smem:[#allocation32_spill]] (!%p519_p9)  ;;  %p606_p10 = scmp.lt.s32.totalorder (!%p519_p9), %s3903_s7, 7 }
  0x2c   : > { %522 = sbr.rel (%p519_p9) target bundleno = 1287 (0x507), region = 68  ;;  %s5376_s8 = sld [smem:[#allocation29_spill]] (!%p519_p9) }
  0x2d   : > { %s5377_s9 = sld [smem:[#allocation30_spill]] (!%p519_p9) }
  0x2e   : > { %s5378_s12 = sld [smem:[#allocation33_spill]] (!%p519_p9) }
  0x2f   : > { %s5379_s3 = sld [smem:[#allocation24_spill]] (!%p519_p9) }
  0x30   : > { %s5380_s28 = sld [smem:[#allocation23_spill]] (!%p519_p9) }
  0x31   : > { %v953_v0 = vld [vmem:[%s5375_s11 + $0x10] sm:$0xff]  ;;  %v952_v2 = vld [vmem:[%s5375_s11 + $0x8] sm:$0xff]  ;;  %v951_v6 = vld [vmem:[%s5375_s11] sm:$0xff]  ;;  %s607_s30 = scalar_select %p606_p10, %s3903_s7, 7  ;;  %vm703_vm0 = vcmask 64512   ;;  %vm817_vm1 = vcmask 130048  }
  0x32   : > { %v701_v1 = vld [vmem:[%s5376_s8 + $0x8] sm:$0xff]  ;;  %1130 = vmatpush.msra.mxu3 %v953_v0  ;;  %v700_v4 = vld [vmem:[%s5376_s8] sm:$0xff]  ;;  %vm1068_vm2 = vcmask 195584   ;;  %s5381_s6 = sld [smem:[#allocation27_spill]]  ;;  %vm1202_vm3 = vcmask 261120  }
  0x33   : > { %880 = vmatpush.msra.mxu1 %v701_v1  ;;  %v702_v3 = vld [vmem:[%s5377_s9] sm:$0xff]  ;;  %s3955_s22 = sshll.u32 %s607_s30, 7  ;;  %s5382_s5 = sld [smem:[#allocation26_spill]] }
  0x34   : > { %v954_v5 = vld [vmem:[%s5378_s12] sm:$0xff]  ;;  %767 = vmatpush.msra.mxu0 %v702_v3  ;;  %1131 = vmatpush.msra.mxu3 %v952_v2  ;;  %s5383_s10 = sld [smem:[#allocation31_spill]] }
  0x35   : > { %1018 = vmatpush.msra.mxu2 %v954_v5  ;;  %881 = vmatpush.msra.mxu1 %v700_v4  ;;  %s3961_s24 = scalar_lea.vmem %s5379_s3, %s3955_s22  ;;  %s1416_s0 = sld [smem:[#allocation7 + %s3903_s7]] }
  0x36   : > { %1132 = vmatpush.msra.mxu3 %v951_v6  ;;  %s3967_s29 = scalar_lea.vmem %s5380_s28, %s3955_s22  ;;  %v652_v7 = vld [vmem:[%s3961_s24] sm:$0xff]  ;;  %v653_v11 = vld [vmem:[%s3961_s24 + $0x8] sm:$0xff]  ;;  %v654_v15 = vld [vmem:[%s3961_s24 + $0x10] sm:$0xff]  ;;  %s1417_s30 = sld [smem:[#allocation8 + %s3903_s7]] }
  0x37   : > { %v636_v8 = vld [vmem:[%s3967_s29] sm:$0xff]  ;;  %3258 = vmatmul.msk.f32.vlgmr.msra.gmra.mxu0 %vm703_vm0, %v652_v7  ;;  %v637_v12 = vld [vmem:[%s3967_s29 + $0x8] sm:$0xff]  ;;  %v638_v16 = vld [vmem:[%s3967_s29 + $0x10] sm:$0xff]  ;;  %s5388_s4 = sld [smem:[#allocation25_spill]] }
  0x38   : > { %s3975_s8 = scalar_lea.vmem %s5381_s6, %s3955_s22  ;;  %3274 = vmatmul.msk.f32.vlgmr.msra.gmra.mxu1 %vm817_vm1, %v636_v8  ;;  %v655_v19 = vld [vmem:[%s3961_s24 + $0x18] sm:$0xff]  ;;  %v656_v23 = vld [vmem:[%s3961_s24 + $0x20] sm:$0xff]  ;;  %v657_v27 = vld [vmem:[%s3961_s24 + $0x28] sm:$0xff] }
  0x39   : > { %s3981_s23 = scalar_lea.vmem %s5382_s5, %s3955_s22  ;;  %v684_v9 = vld [vmem:[%s3975_s8] sm:$0xff]  ;;  %v685_v13 = vld [vmem:[%s3975_s8 + $0x8] sm:$0xff]  ;;  %v686_v17 = vld [vmem:[%s3975_s8 + $0x10] sm:$0xff] }
  0x3a   : > { %v668_v10 = vld [vmem:[%s3981_s23] sm:$0xff]  ;;  %3290 = vmatmul.msk.f32.vlgmr.msra.gmra.mxu2 %vm703_vm0, %v684_v9  ;;  %v669_v14 = vld [vmem:[%s3981_s23 + $0x8] sm:$0xff]  ;;  %v670_v18 = vld [vmem:[%s3981_s23 + $0x10] sm:$0xff] }
  0x3b   : > { %3306 = vmatmul.msk.f32.vlgmr.msra.gmra.mxu3 %vm1068_vm2, %v668_v10  ;;  %v639_v20 = vld [vmem:[%s3967_s29 + $0x18] sm:$0xff]  ;;  %v640_v24 = vld [vmem:[%s3967_s29 + $0x20] sm:$0xff]  ;;  %v641_v28 = vld [vmem:[%s3967_s29 + $0x28] sm:$0xff] }
  0x3c   : > { %v687_v21 = vld [vmem:[%s3975_s8 + $0x18] sm:$0xff]  ;;  %v688_v25 = vld [vmem:[%s3975_s8 + $0x20] sm:$0xff]  ;;  %v689_v29 = vld [vmem:[%s3975_s8 + $0x28] sm:$0xff] }
  0x3d   : > { %v671_v22 = vld [vmem:[%s3981_s23 + $0x18] sm:$0xff]  ;;  %v672_v26 = vld [vmem:[%s3981_s23 + $0x20] sm:$0xff]  ;;  %v673_v30 = vld [vmem:[%s3981_s23 + $0x28] sm:$0xff] }
  0x3e   : > { %v658_v31 = vld [vmem:[%s3961_s24 + $0x30] sm:$0xff]  ;;  %v659_v35 = vld [vmem:[%s3961_s24 + $0x38] sm:$0xff]  ;;  %v660_v39 = vld [vmem:[%s3961_s24 + $0x40] sm:$0xff] }
  0x3f   : > { %3259 = vmatmul.msk.f32.gmra.mxu0 %vm703_vm0, %v653_v11  ;;  %v642_v32 = vld [vmem:[%s3967_s29 + $0x30] sm:$0xff]  ;;  %v643_v36 = vld [vmem:[%s3967_s29 + $0x38] sm:$0xff]  ;;  %v644_v40 = vld [vmem:[%s3967_s29 + $0x40] sm:$0xff] }
  0x40   : > { %3275 = vmatmul.msk.f32.gmra.mxu1 %vm817_vm1, %v637_v12  ;;  %v690_v33 = vld [vmem:[%s3975_s8 + $0x30] sm:$0xff]  ;;  %v691_v37 = vld [vmem:[%s3975_s8 + $0x38] sm:$0xff]  ;;  %v692_v41 = vld [vmem:[%s3975_s8 + $0x40] sm:$0xff] }
  0x41   : > { %v674_v34 = vld [vmem:[%s3981_s23 + $0x30] sm:$0xff]  ;;  %v675_v38 = vld [vmem:[%s3981_s23 + $0x38] sm:$0xff]  ;;  %v676_v42 = vld [vmem:[%s3981_s23 + $0x40] sm:$0xff] }
  0x42   : > { %3291 = vmatmul.msk.f32.gmra.mxu2 %vm703_vm0, %v685_v13  ;;  %v661_v43 = vld [vmem:[%s3961_s24 + $0x48] sm:$0xff]  ;;  %v662_v47 = vld [vmem:[%s3961_s24 + $0x50] sm:$0xff]  ;;  %v663_v51 = vld [vmem:[%s3961_s24 + $0x58] sm:$0xff] }
  0x43   : > { %3307 = vmatmul.msk.f32.gmra.mxu3 %vm1068_vm2, %v669_v14  ;;  %v645_v44 = vld [vmem:[%s3967_s29 + $0x48] sm:$0xff]  ;;  %v646_v48 = vld [vmem:[%s3967_s29 + $0x50] sm:$0xff]  ;;  %v647_v52 = vld [vmem:[%s3967_s29 + $0x58] sm:$0xff] }
  0x44   : > { %v693_v45 = vld [vmem:[%s3975_s8 + $0x48] sm:$0xff]  ;;  %v694_v49 = vld [vmem:[%s3975_s8 + $0x50] sm:$0xff]  ;;  %v695_v53 = vld [vmem:[%s3975_s8 + $0x58] sm:$0xff] }
  0x45   : > { %v677_v46 = vld [vmem:[%s3981_s23 + $0x48] sm:$0xff]  ;;  %v678_v50 = vld [vmem:[%s3981_s23 + $0x50] sm:$0xff]  ;;  %v679_v54 = vld [vmem:[%s3981_s23 + $0x58] sm:$0xff] }
  0x46   : > { %v664_v55 = vld [vmem:[%s3961_s24 + $0x60] sm:$0xff]  ;;  %v665_v59 = vld [vmem:[%s3961_s24 + $0x68] sm:$0xff]  ;;  %v666_v63 = vld [vmem:[%s3961_s24 + $0x70] sm:$0xff] }
  0x47   : > { %3260 = vmatmul.msk.f32.gmra.mxu0 %vm703_vm0, %v654_v15  ;;  %v648_v56 = vld [vmem:[%s3967_s29 + $0x60] sm:$0xff]  ;;  %v649_v60 = vld [vmem:[%s3967_s29 + $0x68] sm:$0xff]  ;;  %v650_v0 = vld [vmem:[%s3967_s29 + $0x70] sm:$0xff] }
  0x48   : > { %3276 = vmatmul.msk.f32.gmra.mxu1 %vm817_vm1, %v638_v16  ;;  %v696_v57 = vld [vmem:[%s3975_s8 + $0x60] sm:$0xff]  ;;  %v697_v61 = vld [vmem:[%s3975_s8 + $0x68] sm:$0xff]  ;;  %v698_v1 = vld [vmem:[%s3975_s8 + $0x70] sm:$0xff] }
  0x49   : > { %v680_v58 = vld [vmem:[%s3981_s23 + $0x60] sm:$0xff]  ;;  %v681_v62 = vld [vmem:[%s3981_s23 + $0x68] sm:$0xff]  ;;  %v682_v2 = vld [vmem:[%s3981_s23 + $0x70] sm:$0xff] }
  0x4a   : > { %3292 = vmatmul.msk.f32.gmra.mxu2 %vm703_vm0, %v686_v17  ;;  %v667_v3 = vld [vmem:[%s3961_s24 + $0x78] sm:$0xff]  ;;  %v4112_v7 = vld [vmem:[%s5383_s10] ss:$0 sm:$0xff]  ;;  %s3643_s10 = scalar_lea.hbm %s5350_s17, 1024 }
  0x4b   : > { %3308 = vmatmul.msk.f32.gmra.mxu3 %vm1068_vm2, %v670_v18  ;;  %v651_v4 = vld [vmem:[%s3967_s29 + $0x78] sm:$0xff]  ;;  %v4122_v12 = vld [vmem:[%s5346_s13] ss:$0 sm:$0xff]  ;;  %s3783_s29 = smov 96  }
  0x4c   : > { %v699_v5 = vld [vmem:[%s3975_s8 + $0x78] sm:$0xff]  ;;  %s5389_s8 = sld [smem:[#allocation28_spill]] }
  0x4d   : > { %v683_v6 = vld [vmem:[%s3981_s23 + $0x78] sm:$0xff]  ;;  %s4715_s23 = scalar_lea.vmem %s5388_s4, %s3955_s22 }
  0x4f   : > { %3261 = vmatmul.msk.f32.gmra.mxu0 %vm703_vm0, %v655_v19 }
  0x50   : > { %3277 = vmatmul.msk.f32.gmra.mxu1 %vm817_vm1, %v639_v20 }
  0x52   : > { %3293 = vmatmul.msk.f32.gmra.mxu2 %vm703_vm0, %v687_v21  ;;  %s4783_s24 = scalar_lea.vmem %s5389_s8, %s3955_s22  ;;  %s4827_s22 = sand.u32 1, %s3771_s19  }
  0x53   : > { %3309 = vmatmul.msk.f32.gmra.mxu3 %vm1068_vm2, %v671_v22  ;;  %s2954_s3 = scalar_lea.sflag [#allocation15], %s4827_s22 }
  0x57   : > { %3262 = vmatmul.msk.f32.gmra.mxu0 %vm703_vm0, %v656_v23 }
  0x58   : > { %3278 = vmatmul.msk.f32.gmra.mxu1 %vm817_vm1, %v640_v24 }
  0x5a   : > { %3294 = vmatmul.msk.f32.gmra.mxu2 %vm703_vm0, %v688_v25 }
  0x5b   : > { %3310 = vmatmul.msk.f32.gmra.mxu3 %vm1068_vm2, %v672_v26 }
  0x5f   : > { %3263 = vmatmul.msk.f32.gmra.mxu0 %vm703_vm0, %v657_v27 }
  0x60   : > { %3279 = vmatmul.msk.f32.gmra.mxu1 %vm817_vm1, %v641_v28 }
  0x62   : > { %3295 = vmatmul.msk.f32.gmra.mxu2 %vm703_vm0, %v689_v29 }
  0x63   : > { %3311 = vmatmul.msk.f32.gmra.mxu3 %vm1068_vm2, %v673_v30 }
  0x67   : > { %3264 = vmatmul.msk.f32.gmra.mxu0 %vm703_vm0, %v658_v31 }
  0x68   : > { %3280 = vmatmul.msk.f32.gmra.mxu1 %vm817_vm1, %v642_v32 }
  0x6a   : > { %3296 = vmatmul.msk.f32.gmra.mxu2 %vm703_vm0, %v690_v33 }
  0x6b   : > { %3312 = vmatmul.msk.f32.gmra.mxu3 %vm1068_vm2, %v674_v34 }
  0x6f   : > { %3265 = vmatmul.msk.f32.gmra.mxu0 %vm703_vm0, %v659_v35 }
  0x70   : > { %3281 = vmatmul.msk.f32.gmra.mxu1 %vm817_vm1, %v643_v36 }
  0x72   : > { %3297 = vmatmul.msk.f32.gmra.mxu2 %vm703_vm0, %v691_v37 }
  0x73   : > { %3313 = vmatmul.msk.f32.gmra.mxu3 %vm1068_vm2, %v675_v38 }
  0x77   : > { %3266 = vmatmul.msk.f32.gmra.mxu0 %vm703_vm0, %v660_v39 }
  0x78   : > { %3282 = vmatmul.msk.f32.gmra.mxu1 %vm817_vm1, %v644_v40 }
  0x7a   : > { %3298 = vmatmul.msk.f32.gmra.mxu2 %vm703_vm0, %v692_v41 }
  0x7b   : > { %3314 = vmatmul.msk.f32.gmra.mxu3 %vm1068_vm2, %v676_v42 }
  0x7f   : > { %3267 = vmatmul.msk.f32.gmra.mxu0 %vm703_vm0, %v661_v43 }
  0x80   : > { %3283 = vmatmul.msk.f32.gmra.mxu1 %vm817_vm1, %v645_v44 }
  0x82   : > { %3299 = vmatmul.msk.f32.gmra.mxu2 %vm703_vm0, %v693_v45 }
  0x83   : > { %3315 = vmatmul.msk.f32.gmra.mxu3 %vm1068_vm2, %v677_v46 }
  0x87   : > { %3268 = vmatmul.msk.f32.gmra.mxu0 %vm703_vm0, %v662_v47 }
  0x88   : > { %3284 = vmatmul.msk.f32.gmra.mxu1 %vm817_vm1, %v646_v48 }
  0x8a   : > { %3300 = vmatmul.msk.f32.gmra.mxu2 %vm703_vm0, %v694_v49 }
  0x8b   : > { %3316 = vmatmul.msk.f32.gmra.mxu3 %vm1068_vm2, %v678_v50 }
  0x8f   : > { %3269 = vmatmul.msk.f32.gmra.mxu0 %vm703_vm0, %v663_v51 }
  0x90   : > { %3285 = vmatmul.msk.f32.gmra.mxu1 %vm817_vm1, %v647_v52 }
  0x92   : > { %3301 = vmatmul.msk.f32.gmra.mxu2 %vm703_vm0, %v695_v53 }
  0x93   : > { %3317 = vmatmul.msk.f32.gmra.mxu3 %vm1068_vm2, %v679_v54 }
  0x97   : > { %3270 = vmatmul.msk.f32.gmra.mxu0 %vm703_vm0, %v664_v55 }
  0x98   : > { %3286 = vmatmul.msk.f32.gmra.mxu1 %vm817_vm1, %v648_v56 }
  0x9a   : > { %3302 = vmatmul.msk.f32.gmra.mxu2 %vm703_vm0, %v696_v57 }
  0x9b   : > { %3318 = vmatmul.msk.f32.gmra.mxu3 %vm1068_vm2, %v680_v58 }
  0x9f   : > { %3271 = vmatmul.msk.f32.gmra.mxu0 %vm703_vm0, %v665_v59 }
  0xa0   : > { %3287 = vmatmul.msk.f32.gmra.mxu1 %vm817_vm1, %v649_v60 }
  0xa2   : > { %3303 = vmatmul.msk.f32.gmra.mxu2 %vm703_vm0, %v697_v61 }
  0xa3   : > { %3319 = vmatmul.msk.f32.gmra.mxu3 %vm1068_vm2, %v681_v62 }
  0xa7   : > { %3272 = vmatmul.msk.f32.gmra.mxu0 %vm703_vm0, %v666_v63 }
  0xa8   : > { %3288 = vmatmul.msk.f32.gmra.mxu1 %vm817_vm1, %v650_v0 }
  0xaa   : > { %3304 = vmatmul.msk.f32.gmra.mxu2 %vm703_vm0, %v698_v1 }
  0xab   : > { %3320 = vmatmul.msk.f32.gmra.mxu3 %vm1068_vm2, %v682_v2 }
  0xaf   : > { %3273 = vmatmul.msk.f32.gmra.mxu0 %vm703_vm0, %v667_v3 }
  0xb0   : > { %3289 = vmatmul.msk.f32.gmra.mxu1 %vm817_vm1, %v651_v4 }
  0xb2   : > { %3305 = vmatmul.msk.f32.gmra.mxu2 %vm703_vm0, %v699_v5 }
  0xb3   : > { %3321 = vmatmul.msk.f32.gmra.mxu3 %vm1068_vm2, %v683_v6 }
  0xb4   : > { %v769_v8 = vpop.f32.mrf.mxu0 }
  0xb5   : > { %v883_v9 = vpop.f32.mrf.mxu1 }
  0xb6   : > { %v884_v10 = vadd.f32 %v883_v9, %v769_v8 }
  0xb8   : > { %v4115_v11 = vadd.f32 %v4112_v7, %v884_v10 }
  0xba   : > { %1203 = vst.msk [vmem:[#allocation2] sm:$0xff] %vm1202_vm3, %v4115_v11 }
  0xbc   : > { %v772_v16 = vpop.f32.mrf.mxu0 }
  0xbd   : > { %v1020_v13 = vpop.f32.mrf.mxu2  ;;  %v886_v17 = vpop.f32.mrf.mxu1 }
  0xbe   : > { %v1134_v14 = vpop.f32.mrf.mxu3  ;;  %v887_v18 = vadd.f32 %v886_v17, %v772_v16 }
  0xbf   : > { %v1135_v15 = vadd.f32 %v1134_v14, %v1020_v13 }
  0xc0   : > { %v4128_v20 = vadd.f32 %v4112_v7, %v887_v18 }
  0xc1   : > { %v4125_v19 = vadd.f32 %v4122_v12, %v1135_v15 }
  0xc2   : > { %1204 = vst.msk [vmem:[#allocation2 + $0x8] sm:$0xff] %vm1202_vm3, %v4128_v20 }
  0xc3   : > { %1299 = vst.msk [vmem:[#allocation4] sm:$0xff] %vm1202_vm3, %v4125_v19 }
  0xc4   : > { %v775_v24 = vpop.f32.mrf.mxu0 }
  0xc5   : > { %v1023_v21 = vpop.f32.mrf.mxu2  ;;  %v889_v25 = vpop.f32.mrf.mxu1 }
  0xc6   : > { %v1137_v22 = vpop.f32.mrf.mxu3  ;;  %v890_v26 = vadd.f32 %v889_v25, %v775_v24 }
  0xc7   : > { %v1138_v23 = vadd.f32 %v1137_v22, %v1023_v21 }
  0xc8   : > { %v4138_v28 = vadd.f32 %v4112_v7, %v890_v26 }
  0xc9   : > { %v4135_v27 = vadd.f32 %v4122_v12, %v1138_v23 }
  0xca   : > { %1205 = vst.msk [vmem:[#allocation2 + $0x10] sm:$0xff] %vm1202_vm3, %v4138_v28 }
  0xcb   : > { %1300 = vst.msk [vmem:[#allocation4 + $0x8] sm:$0xff] %vm1202_vm3, %v4135_v27 }
  0xcc   : > { %v778_v32 = vpop.f32.mrf.mxu0 }
  0xcd   : > { %v1026_v29 = vpop.f32.mrf.mxu2  ;;  %v892_v33 = vpop.f32.mrf.mxu1 }
  0xce   : > { %v1140_v30 = vpop.f32.mrf.mxu3  ;;  %v893_v34 = vadd.f32 %v892_v33, %v778_v32 }
  0xcf   : > { %v1141_v31 = vadd.f32 %v1140_v30, %v1026_v29 }
  0xd0   : > { %v4148_v36 = vadd.f32 %v4112_v7, %v893_v34 }
  0xd1   : > { %v4145_v35 = vadd.f32 %v4122_v12, %v1141_v31 }
  0xd2   : > { %1206 = vst.msk [vmem:[#allocation2 + $0x18] sm:$0xff] %vm1202_vm3, %v4148_v36 }
  0xd3   : > { %1301 = vst.msk [vmem:[#allocation4 + $0x10] sm:$0xff] %vm1202_vm3, %v4145_v35 }
  0xd4   : > { %v781_v40 = vpop.f32.mrf.mxu0 }
  0xd5   : > { %v1029_v37 = vpop.f32.mrf.mxu2  ;;  %v895_v41 = vpop.f32.mrf.mxu1 }
  0xd6   : > { %v1143_v38 = vpop.f32.mrf.mxu3  ;;  %v896_v42 = vadd.f32 %v895_v41, %v781_v40 }
  0xd7   : > { %v1144_v39 = vadd.f32 %v1143_v38, %v1029_v37 }
  0xd8   : > { %v4158_v44 = vadd.f32 %v4112_v7, %v896_v42 }
  0xd9   : > { %v4155_v43 = vadd.f32 %v4122_v12, %v1144_v39 }
  0xda   : > { %1207 = vst.msk [vmem:[#allocation2 + $0x20] sm:$0xff] %vm1202_vm3, %v4158_v44 }
  0xdb   : > { %1302 = vst.msk [vmem:[#allocation4 + $0x18] sm:$0xff] %vm1202_vm3, %v4155_v43 }
  0xdc   : > { %v784_v48 = vpop.f32.mrf.mxu0 }
  0xdd   : > { %v1032_v45 = vpop.f32.mrf.mxu2  ;;  %v898_v49 = vpop.f32.mrf.mxu1 }
  0xde   : > { %v1146_v46 = vpop.f32.mrf.mxu3  ;;  %v899_v50 = vadd.f32 %v898_v49, %v784_v48 }
  0xdf   : > { %v1147_v47 = vadd.f32 %v1146_v46, %v1032_v45 }
  0xe0   : > { %v4168_v52 = vadd.f32 %v4112_v7, %v899_v50 }
  0xe1   : > { %v4165_v51 = vadd.f32 %v4122_v12, %v1147_v47 }
  0xe2   : > { %1208 = vst.msk [vmem:[#allocation2 + $0x28] sm:$0xff] %vm1202_vm3, %v4168_v52 }
  0xe3   : > { %1303 = vst.msk [vmem:[#allocation4 + $0x20] sm:$0xff] %vm1202_vm3, %v4165_v51 }
  0xe4   : > { %v787_v56 = vpop.f32.mrf.mxu0 }
  0xe5   : > { %v1035_v53 = vpop.f32.mrf.mxu2  ;;  %v901_v57 = vpop.f32.mrf.mxu1 }
  0xe6   : > { %v1149_v54 = vpop.f32.mrf.mxu3  ;;  %v902_v58 = vadd.f32 %v901_v57, %v787_v56 }
  0xe7   : > { %v1150_v55 = vadd.f32 %v1149_v54, %v1035_v53 }
  0xe8   : > { %v4178_v60 = vadd.f32 %v4112_v7, %v902_v58 }
  0xe9   : > { %v4175_v59 = vadd.f32 %v4122_v12, %v1150_v55 }
  0xea   : > { %1209 = vst.msk [vmem:[#allocation2 + $0x30] sm:$0xff] %vm1202_vm3, %v4178_v60 }
  0xeb   : > { %1304 = vst.msk [vmem:[#allocation4 + $0x28] sm:$0xff] %vm1202_vm3, %v4175_v59 }
  0xec   : > { %v790_v0 = vpop.f32.mrf.mxu0 }
  0xed   : > { %v1038_v61 = vpop.f32.mrf.mxu2  ;;  %v904_v1 = vpop.f32.mrf.mxu1 }
  0xee   : > { %v1152_v62 = vpop.f32.mrf.mxu3  ;;  %v905_v2 = vadd.f32 %v904_v1, %v790_v0 }
  0xef   : > { %v1153_v63 = vadd.f32 %v1152_v62, %v1038_v61 }
  0xf0   : > { %v4188_v4 = vadd.f32 %v4112_v7, %v905_v2 }
  0xf1   : > { %v4185_v3 = vadd.f32 %v4122_v12, %v1153_v63 }
  0xf2   : > { %1210 = vst.msk [vmem:[#allocation2 + $0x38] sm:$0xff] %vm1202_vm3, %v4188_v4 }
  0xf3   : > { %1305 = vst.msk [vmem:[#allocation4 + $0x30] sm:$0xff] %vm1202_vm3, %v4185_v3 }
  0xf4   : > { %v793_v9 = vpop.f32.mrf.mxu0 }
  0xf5   : > { %v1041_v5 = vpop.f32.mrf.mxu2  ;;  %v907_v10 = vpop.f32.mrf.mxu1 }
  0xf6   : > { %v1155_v6 = vpop.f32.mrf.mxu3  ;;  %v908_v13 = vadd.f32 %v907_v10, %v793_v9 }
  0xf7   : > { %v1156_v8 = vadd.f32 %v1155_v6, %v1041_v5 }
  0xf8   : > { %v4198_v15 = vadd.f32 %v4112_v7, %v908_v13 }
  0xf9   : > { %v4195_v14 = vadd.f32 %v4122_v12, %v1156_v8 }
  0xfa   : > { %1211 = vst.msk [vmem:[#allocation2 + $0x40] sm:$0xff] %vm1202_vm3, %v4198_v15 }
  0xfb   : > { %1306 = vst.msk [vmem:[#allocation4 + $0x38] sm:$0xff] %vm1202_vm3, %v4195_v14 }
  0xfc   : > { %v796_v21 = vpop.f32.mrf.mxu0 }
  0xfd   : > { %v1044_v16 = vpop.f32.mrf.mxu2  ;;  %v910_v22 = vpop.f32.mrf.mxu1 }
  0xfe   : > { %v1158_v17 = vpop.f32.mrf.mxu3  ;;  %v911_v23 = vadd.f32 %v910_v22, %v796_v21 }
  0xff   : > { %v1159_v18 = vadd.f32 %v1158_v17, %v1044_v16 }
 0x100   : > { %v4208_v25 = vadd.f32 %v4112_v7, %v911_v23 }
 0x101   : > { %v4205_v24 = vadd.f32 %v4122_v12, %v1159_v18 }
 0x102   : > { %1212 = vst.msk [vmem:[#allocation2 + $0x48] sm:$0xff] %vm1202_vm3, %v4208_v25 }
 0x103   : > { %1307 = vst.msk [vmem:[#allocation4 + $0x40] sm:$0xff] %vm1202_vm3, %v4205_v24 }
 0x104   : > { %v799_v31 = vpop.f32.mrf.mxu0 }
 0x105   : > { %v1047_v26 = vpop.f32.mrf.mxu2  ;;  %v913_v32 = vpop.f32.mrf.mxu1 }
 0x106   : > { %v1161_v29 = vpop.f32.mrf.mxu3  ;;  %v914_v33 = vadd.f32 %v913_v32, %v799_v31 }
 0x107   : > { %v1162_v30 = vadd.f32 %v1161_v29, %v1047_v26 }
 0x108   : > { %v4218_v37 = vadd.f32 %v4112_v7, %v914_v33 }
 0x109   : > { %v4215_v34 = vadd.f32 %v4122_v12, %v1162_v30 }
 0x10a   : > { %1213 = vst.msk [vmem:[#allocation2 + $0x50] sm:$0xff] %vm1202_vm3, %v4218_v37 }
 0x10b   : > { %1308 = vst.msk [vmem:[#allocation4 + $0x48] sm:$0xff] %vm1202_vm3, %v4215_v34 }
 0x10c   : > { %v802_v41 = vpop.f32.mrf.mxu0 }
 0x10d   : > { %v1050_v38 = vpop.f32.mrf.mxu2  ;;  %v916_v42 = vpop.f32.mrf.mxu1 }
 0x10e   : > { %v1164_v39 = vpop.f32.mrf.mxu3  ;;  %v917_v45 = vadd.f32 %v916_v42, %v802_v41 }
 0x10f   : > { %v1165_v40 = vadd.f32 %v1164_v39, %v1050_v38 }
 0x110   : > { %v4226_v47 = vadd.f32 %v4112_v7, %v917_v45 }
 0x111   : > { %v1196_v46 = vadd.f32 %v4122_v12, %v1165_v40 }
 0x112   : > { %1214 = vst.msk [vmem:[#allocation2 + $0x58] sm:$0xff] %vm1202_vm3, %v4226_v47 }
 0x113   : > { %1309 = vst.msk [vmem:[#allocation4 + $0x50] sm:$0xff] %vm1202_vm3, %v1196_v46 }
 0x114   : > { %v805_v53 = vpop.f32.mrf.mxu0 }
 0x115   : > { %v1053_v48 = vpop.f32.mrf.mxu2  ;;  %v919_v54 = vpop.f32.mrf.mxu1 }
 0x116   : > { %v1167_v49 = vpop.f32.mrf.mxu3  ;;  %v920_v55 = vadd.f32 %v919_v54, %v805_v53 }
 0x117   : > { %v1168_v50 = vadd.f32 %v1167_v49, %v1053_v48 }
 0x118   : > { %v947_v57 = vadd.f32 %v4112_v7, %v920_v55 }
 0x119   : > { %v1197_v56 = vadd.f32 %v4122_v12, %v1168_v50 }
 0x11a   : > { %1215 = vst.msk [vmem:[#allocation2 + $0x60] sm:$0xff] %vm1202_vm3, %v947_v57 }
 0x11b   : > { %1353 = vrot.lane.b32.xlu2 %v1197_v56, %s3783_s29  ;;  %1310 = vst.msk [vmem:[#allocation4 + $0x58] sm:$0xff] %vm1202_vm3, %v1197_v56 }
 0x11c   : > { %v808_v63 = vpop.f32.mrf.mxu0 }
 0x11d   : > { %v1056_v58 = vpop.f32.mrf.mxu2  ;;  %v922_v0 = vpop.f32.mrf.mxu1 }
 0x11e   : > { %v1170_v61 = vpop.f32.mrf.mxu3  ;;  %v923_v1 = vadd.f32 %v922_v0, %v808_v63 }
 0x11f   : > { %v1171_v62 = vadd.f32 %v1170_v61, %v1056_v58 }
 0x120   : > { %v948_v5 = vadd.f32 %v4112_v7, %v923_v1 }
 0x121   : > { %v1198_v2 = vadd.f32 %v4122_v12, %v1171_v62 }
 0x122   : > { %1216 = vst.msk [vmem:[#allocation2 + $0x68] sm:$0xff] %vm1202_vm3, %v948_v5 }
 0x123   : > { %1355 = vrot.lane.b32.xlu1 %v1198_v2, %s3783_s29  ;;  %1311 = vst.msk [vmem:[#allocation4 + $0x60] sm:$0xff] %vm1202_vm3, %v1198_v2 }
 0x124   : > { %v811_v10 = vpop.f32.mrf.mxu0 }
 0x125   : > { %v1059_v6 = vpop.f32.mrf.mxu2  ;;  %v925_v13 = vpop.f32.mrf.mxu1 }
 0x126   : > { %v1173_v8 = vpop.f32.mrf.mxu3  ;;  %v926_v16 = vadd.f32 %v925_v13, %v811_v10 }
 0x127   : > { %v1174_v9 = vadd.f32 %v1173_v8, %v1059_v6 }
 0x128   : > { %v949_v18 = vadd.f32 %v4112_v7, %v926_v16 }
 0x129   : > { %v1199_v17 = vadd.f32 %v4122_v12, %v1174_v9 }
 0x12a   : > { %1217 = vst.msk [vmem:[#allocation2 + $0x70] sm:$0xff] %vm1202_vm3, %v949_v18 }
 0x12b   : > { %1312 = vst.msk [vmem:[#allocation4 + $0x68] sm:$0xff] %vm1202_vm3, %v1199_v17  ;;  %1357 = vrot.lane.b32.xlu1 %v1199_v17, %s3783_s29 }
 0x12c   : > { %v814_v26 = vpop.f32.mrf.mxu0 }
 0x12d   : > { %v1062_v21 = vpop.f32.mrf.mxu2  ;;  %v928_v29 = vpop.f32.mrf.mxu1 }
 0x12e   : > { %v1176_v22 = vpop.f32.mrf.mxu3  ;;  %v929_v30 = vadd.f32 %v928_v29, %v814_v26 }
 0x12f   : > { %v1177_v23 = vadd.f32 %v1176_v22, %v1062_v21 }
 0x130   : > { %v950_v32 = vadd.f32 %v4112_v7, %v929_v30 }
 0x131   : > { %v1200_v31 = vadd.f32 %v4122_v12, %v1177_v23 }
 0x132   : > { %1218 = vst.msk [vmem:[#allocation2 + $0x78] sm:$0xff] %vm1202_vm3, %v950_v32  ;;  %1265 = vrot.lane.b32.xlu2 %v950_v32, %s3783_s29 }
 0x133   : > { %1359 = vrot.lane.b32.xlu0 %v1200_v31, %s3783_s29  ;;  %1313 = vst.msk [vmem:[#allocation4 + $0x70] sm:$0xff] %vm1202_vm3, %v1200_v31  ;;  %1351 = vrot.lane.b32.xlu1 %v1196_v46, %s3783_s29 }
 0x135   : > { %v1065_v33 = vpop.f32.mrf.mxu2 }
 0x136   : > { %v1179_v38 = vpop.f32.mrf.mxu3 }
 0x137   : > { %v1180_v39 = vadd.f32 %v1179_v38, %v1065_v33  ;;  %v1418_v38 = vld [vmem:[#allocation2] sm:$0xff] }
 0x139   : > { %v1201_v40 = vadd.f32 %v4122_v12, %v1180_v39 }
 0x13a   : > { %1261 = vrot.lane.b32.xlu2 %v948_v5, %s3783_s29 }
 0x13b   : > { %1314 = vst.msk [vmem:[#allocation4 + $0x78] sm:$0xff] %vm1202_vm3, %v1201_v40  ;;  %1361 = vrot.lane.b32.xlu0 %v1201_v40, %s3783_s29  ;;  %1259 = vrot.lane.b32.xlu1 %v947_v57, %s3783_s29 }
 0x142   : > { %1347 = vrot.lane.b32.xlu2 %v4205_v24, %s3783_s29 }
 0x143   : > { %1263 = vrot.lane.b32.xlu0 %v949_v18, %s3783_s29  ;;  %1345 = vrot.lane.b32.xlu1 %v4195_v14, %s3783_s29 }
 0x14a   : > { %1255 = vrot.lane.b32.xlu2 %v4218_v37, %s3783_s29 }
 0x14b   : > { %1349 = vrot.lane.b32.xlu0 %v4215_v34, %s3783_s29  ;;  %1253 = vrot.lane.b32.xlu1 %v4208_v25, %s3783_s29 }
 0x152   : > { %1341 = vrot.lane.b32.xlu2 %v4175_v59, %s3783_s29 }
 0x153   : > { %1257 = vrot.lane.b32.xlu0 %v4226_v47, %s3783_s29  ;;  %1339 = vrot.lane.b32.xlu1 %v4165_v51, %s3783_s29 }
 0x15a   : > { %1249 = vrot.lane.b32.xlu2 %v4188_v4, %s3783_s29 }
 0x15b   : > { %1343 = vrot.lane.b32.xlu0 %v4185_v3, %s3783_s29  ;;  %1247 = vrot.lane.b32.xlu1 %v4178_v60, %s3783_s29 }
 0x162   : > { %1335 = vrot.lane.b32.xlu2 %v4145_v35, %s3783_s29 }
 0x163   : > { %1251 = vrot.lane.b32.xlu0 %v4198_v15, %s3783_s29  ;;  %1333 = vrot.lane.b32.xlu1 %v4135_v27, %s3783_s29 }
 0x16a   : > { %1243 = vrot.lane.b32.xlu2 %v4158_v44, %s3783_s29 }
 0x16b   : > { %1337 = vrot.lane.b32.xlu0 %v4155_v43, %s3783_s29  ;;  %1241 = vrot.lane.b32.xlu1 %v4148_v36, %s3783_s29 }
 0x172   : > { %1239 = vrot.lane.b32.xlu2 %v4138_v28, %s3783_s29 }
 0x173   : > { %1245 = vrot.lane.b32.xlu0 %v4168_v52, %s3783_s29  ;;  %1235 = vrot.lane.b32.xlu1 %v4115_v11, %s3783_s29 }
 0x175   : > { %v1354_v7 = vpop.permute.xlu2 %1353 }
 0x176   : > { %1390 = vst.msk [vmem:[#allocation5 + $0x58] sm:$0xff] %vm1202_vm3, %v1354_v7  ;;  %v1419_v7 = vld [vmem:[#allocation2 + $0x8] sm:$0xff] }
 0x17b   : > { %1331 = vrot.lane.b32.xlu0 %v4125_v19, %s3783_s29 }
 0x17d   : > { %v1477_v48 = vld [vmem:[#allocation5 + $0x58] sm:$0xff] }
 0x183   : > { %1237 = vrot.lane.b32.xlu0 %v4128_v20, %s3783_s29  ;;  %s4830_s29 = sshll.u32 %s4827_s22, 7 }
 0x184   : > { %s5119_s1 = scalar_lea.vmem [#allocation9], %s4830_s29  ;;  %s5125_s20 = scalar_lea.vmem [#allocation11], %s4830_s29 }
 0x18c   : > { %v1266_v12 = vpop.permute.xlu2 %1265 }
 0x18d   : > { %1298 = vst.msk [vmem:[#allocation3 + $0x78] sm:$0xff] %vm1202_vm3, %v1266_v12 }
 0x194   : > { %v1262_v35 = vpop.permute.xlu2 %1261  ;;  %v1449_v11 = vld [vmem:[#allocation3 + $0x78] sm:$0xff] }
 0x195   : > { %v1356_v27 = vpop.permute.xlu1 %1355  ;;  %1296 = vst.msk [vmem:[#allocation3 + $0x68] sm:$0xff] %vm1202_vm3, %v1262_v35  ;;  %3322 = vmatpush.xpose.msk.msrb.mxu0 %vm1202_vm3, %v1449_v11  ;;  %v1420_v35 = vld [vmem:[#allocation2 + $0x10] sm:$0xff]  ;;  %v1451_v11 = vld [vmem:[#allocation4 + $0x8] sm:$0xff] }
 0x196   : > { %1391 = vst.msk [vmem:[#allocation5 + $0x60] sm:$0xff] %vm1202_vm3, %v1356_v27  ;;  %v1450_v27 = vld [vmem:[#allocation4] sm:$0xff] }
 0x19c   : > { %v1348_v36 = vpop.permute.xlu2 %1347  ;;  %v1447_v41 = vld [vmem:[#allocation3 + $0x68] sm:$0xff] }
 0x19d   : > { %v1358_v28 = vpop.permute.xlu1 %1357  ;;  %1387 = vst.msk [vmem:[#allocation5 + $0x40] sm:$0xff] %vm1202_vm3, %v1348_v36  ;;  %v1478_v42 = vld [vmem:[#allocation5 + $0x60] sm:$0xff]  ;;  %v1452_v36 = vld [vmem:[#allocation4 + $0x10] sm:$0xff] }
 0x19e   : > { %1392 = vst.msk [vmem:[#allocation5 + $0x68] sm:$0xff] %vm1202_vm3, %v1358_v28  ;;  %v1421_v28 = vld [vmem:[#allocation2 + $0x18] sm:$0xff] }
 0x1a4   : > { %v1256_v43 = vpop.permute.xlu2 %1255  ;;  %v1474_v61 = vld [vmem:[#allocation5 + $0x40] sm:$0xff] }
 0x1a5   : > { %v1360_v19 = vpop.permute.xlu0 %1359  ;;  %v1352_v20 = vpop.permute.xlu1 %1351  ;;  %1293 = vst.msk [vmem:[#allocation3 + $0x50] sm:$0xff] %vm1202_vm3, %v1256_v43  ;;  %v1479_v34 = vld [vmem:[#allocation5 + $0x68] sm:$0xff] }
 0x1a6   : > { %1393 = vst.msk [vmem:[#allocation5 + $0x70] sm:$0xff] %vm1202_vm3, %v1360_v19  ;;  %v1422_v19 = vld [vmem:[#allocation2 + $0x20] sm:$0xff]  ;;  %v1423_v43 = vld [vmem:[#allocation2 + $0x28] sm:$0xff] }
 0x1a7   : > { %1389 = vst.msk [vmem:[#allocation5 + $0x50] sm:$0xff] %vm1202_vm3, %v1352_v20  ;;  %v1453_v20 = vld [vmem:[#allocation4 + $0x18] sm:$0xff] }
 0x1ac   : > { %v1342_v52 = vpop.permute.xlu2 %1341  ;;  %v1444_v58 = vld [vmem:[#allocation3 + $0x50] sm:$0xff] }
 0x1ad   : > { %v1362_v44 = vpop.permute.xlu0 %1361  ;;  %v1260_v51 = vpop.permute.xlu1 %1259  ;;  %1384 = vst.msk [vmem:[#allocation5 + $0x28] sm:$0xff] %vm1202_vm3, %v1342_v52  ;;  %v1480_v14 = vld [vmem:[#allocation5 + $0x70] sm:$0xff]  ;;  %v1455_v52 = vld [vmem:[#allocation4 + $0x28] sm:$0xff] }
 0x1ae   : > { %1394 = vst.msk [vmem:[#allocation5 + $0x78] sm:$0xff] %vm1202_vm3, %v1362_v44  ;;  %v1476_v50 = vld [vmem:[#allocation5 + $0x50] sm:$0xff]  ;;  %v1454_v44 = vld [vmem:[#allocation4 + $0x20] sm:$0xff] }
 0x1af   : > { %1295 = vst.msk [vmem:[#allocation3 + $0x60] sm:$0xff] %vm1202_vm3, %v1260_v51  ;;  %v1424_v51 = vld [vmem:[#allocation2 + $0x30] sm:$0xff] }
 0x1b4   : > { %v1250_v4 = vpop.permute.xlu2 %1249  ;;  %v1471_v9 = vld [vmem:[#allocation5 + $0x28] sm:$0xff] }
 0x1b5   : > { %v1264_v59 = vpop.permute.xlu0 %1263  ;;  %v1346_v60 = vpop.permute.xlu1 %1345  ;;  %v1481_v3 = vld [vmem:[#allocation5 + $0x78] sm:$0xff]  ;;  %1290 = vst.msk [vmem:[#allocation3 + $0x38] sm:$0xff] %vm1202_vm3, %v1250_v4 }
 0x1b6   : > { %1297 = vst.msk [vmem:[#allocation3 + $0x70] sm:$0xff] %vm1202_vm3, %v1264_v59  ;;  %3354 = vmatpush.xpose.msk.msrb.mxu2 %vm1202_vm3, %v1481_v3  ;;  %v1446_v47 = vld [vmem:[#allocation3 + $0x60] sm:$0xff]  ;;  %v1425_v59 = vld [vmem:[#allocation2 + $0x38] sm:$0xff] }
 0x1b7   : > { %1386 = vst.msk [vmem:[#allocation5 + $0x38] sm:$0xff] %vm1202_vm3, %v1346_v60  ;;  %v1456_v60 = vld [vmem:[#allocation4 + $0x30] sm:$0xff]  ;;  %v1426_v3 = vld [vmem:[#allocation2 + $0x40] sm:$0xff]  ;;  %v1457_v4 = vld [vmem:[#allocation4 + $0x38] sm:$0xff] }
 0x1ba   : > { %3355 = vmatpush.xpose.msk.msrb.mxu2 %vm1202_vm3, %v1480_v14  ;;  %v1427_v14 = vld [vmem:[#allocation2 + $0x48] sm:$0xff] }
 0x1bc   : > { %v1336_v37 = vpop.permute.xlu2 %1335  ;;  %v1441_v10 = vld [vmem:[#allocation3 + $0x38] sm:$0xff] }
 0x1bd   : > { %v1350_v15 = vpop.permute.xlu0 %1349  ;;  %v1254_v24 = vpop.permute.xlu1 %1253  ;;  %v1448_v25 = vld [vmem:[#allocation3 + $0x70] sm:$0xff]  ;;  %1381 = vst.msk [vmem:[#allocation5 + $0x10] sm:$0xff] %vm1202_vm3, %v1336_v37 }
 0x1be   : > { %1388 = vst.msk [vmem:[#allocation5 + $0x48] sm:$0xff] %vm1202_vm3, %v1350_v15  ;;  %3323 = vmatpush.xpose.msk.msrb.mxu0 %vm1202_vm3, %v1448_v25  ;;  %3356 = vmatpush.xpose.msk.msrb.mxu2 %vm1202_vm3, %v1479_v34  ;;  %v1473_v1 = vld [vmem:[#allocation5 + $0x38] sm:$0xff]  ;;  %v1458_v15 = vld [vmem:[#allocation4 + $0x40] sm:$0xff]  ;;  %v1459_v25 = vld [vmem:[#allocation4 + $0x48] sm:$0xff] }
 0x1bf   : > { %1292 = vst.msk [vmem:[#allocation3 + $0x48] sm:$0xff] %vm1202_vm3, %v1254_v24  ;;  %v1428_v24 = vld [vmem:[#allocation2 + $0x50] sm:$0xff]  ;;  %v1429_v34 = vld [vmem:[#allocation2 + $0x58] sm:$0xff] }
 0x1c0   : > { %v1460_v37 = vld [vmem:[#allocation4 + $0x50] sm:$0xff] }
 0x1c2   : > { %3324 = vmatpush.xpose.msk.msrb.mxu0 %vm1202_vm3, %v1447_v41  ;;  %3357 = vmatpush.xpose.msk.msrb.mxu2 %vm1202_vm3, %v1478_v42  ;;  %v1430_v41 = vld [vmem:[#allocation2 + $0x60] sm:$0xff]  ;;  %v1461_v42 = vld [vmem:[#allocation4 + $0x58] sm:$0xff] }
 0x1c4   : > { %v1244_v49 = vpop.permute.xlu2 %1243  ;;  %v1468_v22 = vld [vmem:[#allocation5 + $0x10] sm:$0xff] }
 0x1c5   : > { %v1258_v45 = vpop.permute.xlu0 %1257  ;;  %v1340_v46 = vpop.permute.xlu1 %1339  ;;  %1287 = vst.msk [vmem:[#allocation3 + $0x20] sm:$0xff] %vm1202_vm3, %v1244_v49  ;;  %v1475_v56 = vld [vmem:[#allocation5 + $0x48] sm:$0xff]  ;;  %v1433_v49 = vld [vmem:[#allocation2 + $0x78] sm:$0xff] }
 0x1c6   : > { %1294 = vst.msk [vmem:[#allocation3 + $0x58] sm:$0xff] %vm1202_vm3, %v1258_v45  ;;  %3325 = vmatpush.xpose.msk.msrb.mxu0 %vm1202_vm3, %v1446_v47  ;;  %3358 = vmatpush.xpose.msk.msrb.mxu2 %vm1202_vm3, %v1477_v48  ;;  %v1443_v0 = vld [vmem:[#allocation3 + $0x48] sm:$0xff]  ;;  %v1432_v47 = vld [vmem:[#allocation2 + $0x70] sm:$0xff] }
 0x1c7   : > { %1383 = vst.msk [vmem:[#allocation5 + $0x20] sm:$0xff] %vm1202_vm3, %v1340_v46  ;;  %v1431_v45 = vld [vmem:[#allocation2 + $0x68] sm:$0xff]  ;;  %v1462_v46 = vld [vmem:[#allocation4 + $0x60] sm:$0xff] }
 0x1c8   : > { %v1463_v48 = vld [vmem:[#allocation4 + $0x68] sm:$0xff] }
 0x1ca   : > { %3359 = vmatpush.xpose.msk.msrb.mxu2 %vm1202_vm3, %v1476_v50  ;;  %v1395_v50 = vlaneseq }
 0x1cc   : > { %v1240_v57 = vpop.permute.xlu2 %1239  ;;  %v1438_v30 = vld [vmem:[#allocation3 + $0x20] sm:$0xff] }
 0x1cd   : > { %v1344_v53 = vpop.permute.xlu0 %1343  ;;  %v1248_v54 = vpop.permute.xlu1 %1247  ;;  %v1445_v55 = vld [vmem:[#allocation3 + $0x58] sm:$0xff]  ;;  %1285 = vst.msk [vmem:[#allocation3 + $0x10] sm:$0xff] %vm1202_vm3, %v1240_v57  ;;  %v4405_v57 = vstv %s1416_s0  ;;  %s4844_s0 = scalar_lea.vmem [#allocation13], %s4830_s29 }
 0x1ce   : > { %1385 = vst.msk [vmem:[#allocation5 + $0x30] sm:$0xff] %vm1202_vm3, %v1344_v53  ;;  %3326 = vmatpush.xpose.msk.msrb.mxu0 %vm1202_vm3, %v1445_v55  ;;  %3360 = vmatpush.xpose.msk.msrb.mxu2 %vm1202_vm3, %v1475_v56  ;;  %v1470_v13 = vld [vmem:[#allocation5 + $0x20] sm:$0xff]  ;;  %v1464_v53 = vld [vmem:[#allocation4 + $0x70] sm:$0xff]  ;;  %v4402_v55 = vand.u32 127, %v1395_v50 }
 0x1cf   : > { %1289 = vst.msk [vmem:[#allocation3 + $0x30] sm:$0xff] %vm1202_vm3, %v1248_v54  ;;  %v4400_v54 = vshrl.u32 %v1395_v50, 7 }
 0x1d0   : > { %vm4411_vm4 = vcmp.ge.s32.totalorder %v4402_v55, %v4405_v57  ;;  %vm1414_vm7 = vcmp.ge.s32.totalorder %v4402_v55, 8  ;;  %vm1415_vm12 = vcmp.ge.s32.totalorder %v4402_v55, 16 }
 0x1d1   : > { %v1397_v56 = vadd.s32 8, %v4400_v54  ;;  %vm1805_vm1 = vcmp.ge.s32.totalorder %v4400_v54, %v4405_v57 }
 0x1d2   : > { %3327 = vmatpush.xpose.msk.msrb.mxu0 %vm1202_vm3, %v1444_v58  ;;  %3361 = vmatpush.xpose.msk.msrb.mxu2 %vm1202_vm3, %v1474_v61  ;;  %v4407_v58 = vstv %s1417_s30  ;;  %v2717_v61 = vld [vmem:[%s4715_s23 + $0x28] sm:$0xff]  ;;  %s4922_s30 = scalar_lea.vmem [#allocation14], %s4830_s29 }
 0x1d3   : > { %vm1823_vm5 = vcmp.ge.s32.totalorder %v4400_v54, %v4407_v58  ;;  %vm1806_vm6 = vcmp.ge.s32.totalorder %v1397_v56, %v4405_v57  ;;  %vm4424_vm9 = vcmp.ge.s32.totalorder %v4402_v55, %v4407_v58  ;;  %vm1824_vm14 = vcmp.ge.s32.totalorder %v1397_v56, %v4407_v58  ;;  %v2715_v55 = vld [vmem:[%s4715_s23 + $0x18] sm:$0xff] }
 0x1d4   : > { %v1436_v39 = vld [vmem:[#allocation3 + $0x10] sm:$0xff]  ;;  %vm1942_vm8 = vmxor %vm1823_vm5, %vm4411_vm4 }
 0x1d5   : > { %v1252_v62 = vpop.permute.xlu0 %1251  ;;  %v1334_v63 = vpop.permute.xlu1 %1333  ;;  %v1472_v2 = vld [vmem:[#allocation5 + $0x30] sm:$0xff]  ;;  %vm1875_vm10 = vmxor %vm1806_vm6, %vm4424_vm9 }
 0x1d6   : > { %1291 = vst.msk [vmem:[#allocation3 + $0x40] sm:$0xff] %vm1202_vm3, %v1252_v62  ;;  %3328 = vmatpush.xpose.msk.msrb.mxu0 %vm1202_vm3, %v1443_v0  ;;  %3362 = vmatpush.xpose.msk.msrb.mxu2 %vm1202_vm3, %v1473_v1  ;;  %v1440_v18 = vld [vmem:[#allocation3 + $0x30] sm:$0xff]  ;;  %vm1960_vm11 = vmor %vm1942_vm8, %vm1414_vm7 }
 0x1d7   : > { %1380 = vst.msk [vmem:[#allocation5 + $0x8] sm:$0xff] %vm1202_vm3, %v1334_v63  ;;  %v1465_v63 = vld [vmem:[#allocation4 + $0x78] sm:$0xff]  ;;  %vm1893_vm13 = vmor %vm1875_vm10, %vm1415_vm12 }
 0x1d8   : > { %vm1943_vm15 = vmxor %vm1824_vm14, %vm4411_vm4 }
 0x1d9   : > { %vm1961_vm0 = vmor %vm1943_vm15, %vm1414_vm7 }
 0x1da   : > { %3363 = vmatpush.xpose.msk.msrb.mxu2 %vm1202_vm3, %v1472_v2 }
 0x1dd   : > { %v1338_v5 = vpop.permute.xlu0 %1337  ;;  %v1242_v6 = vpop.permute.xlu1 %1241  ;;  %v1442_v8 = vld [vmem:[#allocation3 + $0x40] sm:$0xff] }
 0x1de   : > { %1382 = vst.msk [vmem:[#allocation5 + $0x18] sm:$0xff] %vm1202_vm3, %v1338_v5  ;;  %3329 = vmatpush.xpose.msk.msrb.mxu0 %vm1202_vm3, %v1442_v8  ;;  %3364 = vmatpush.xpose.msk.msrb.mxu2 %vm1202_vm3, %v1471_v9  ;;  %v1467_v29 = vld [vmem:[#allocation5 + $0x8] sm:$0xff]  ;;  %v1398_v8 = vadd.s32 16, %v4400_v54 }
 0x1df   : > { %1286 = vst.msk [vmem:[#allocation3 + $0x18] sm:$0xff] %vm1202_vm3, %v1242_v6 }
 0x1e0   : > { %vm1825_vm2 = vcmp.ge.s32.totalorder %v1398_v8, %v4407_v58  ;;  %vm1807_vm14 = vcmp.ge.s32.totalorder %v1398_v8, %v4405_v57 }
 0x1e1   : > { %vm1944_vm5 = vmxor %vm1825_vm2, %vm4411_vm4 }
 0x1e2   : > { %3330 = vmatpush.xpose.msk.msrb.mxu0 %vm1202_vm3, %v1441_v10  ;;  %3365 = vmatpush.xpose.msk.msrb.mxu2 %vm1202_vm3, %v1470_v13  ;;  %vm1962_vm8 = vmor %vm1944_vm5, %vm1414_vm7 }
 0x1e5   : > { %v1246_v16 = vpop.permute.xlu0 %1245  ;;  %v1236_v17 = vpop.permute.xlu1 %1235  ;;  %v1469_v21 = vld [vmem:[#allocation5 + $0x18] sm:$0xff] }
 0x1e6   : > { %1288 = vst.msk [vmem:[#allocation3 + $0x28] sm:$0xff] %vm1202_vm3, %v1246_v16  ;;  %3331 = vmatpush.xpose.msk.msrb.mxu0 %vm1202_vm3, %v1440_v18  ;;  %3366 = vmatpush.xpose.msk.msrb.mxu2 %vm1202_vm3, %v1469_v21  ;;  %v1437_v32 = vld [vmem:[#allocation3 + $0x18] sm:$0xff]  ;;  %v1399_v16 = vadd.s32 24, %v4400_v54 }
 0x1e7   : > { %1283 = vst.msk [vmem:[#allocation3] sm:$0xff] %vm1202_vm3, %v1236_v17 }
 0x1e8   : > { %vm1826_vm10 = vcmp.ge.s32.totalorder %v1399_v16, %v4407_v58  ;;  %vm1808_vm5 = vcmp.ge.s32.totalorder %v1399_v16, %v4405_v57 }
 0x1ea   : > { %3367 = vmatpush.xpose.msk.msrb.mxu2 %vm1202_vm3, %v1468_v22 }
 0x1ed   : > { %v1332_v23 = vpop.permute.xlu0 %1331  ;;  %v1439_v26 = vld [vmem:[#allocation3 + $0x28] sm:$0xff] }
 0x1ee   : > { %1379 = vst.msk [vmem:[#allocation5] sm:$0xff] %vm1202_vm3, %v1332_v23  ;;  %3332 = vmatpush.xpose.msk.msrb.mxu0 %vm1202_vm3, %v1439_v26  ;;  %3368 = vmatpush.xpose.msk.msrb.mxu2 %vm1202_vm3, %v1467_v29  ;;  %v1434_v12 = vld [vmem:[#allocation3] sm:$0xff]  ;;  %v1400_v23 = vadd.s32 32, %v4400_v54 }
 0x1f0   : > { %vm1827_vm15 = vcmp.ge.s32.totalorder %v1400_v23, %v4407_v58 }
 0x1f2   : > { %3333 = vmatpush.xpose.msk.msrb.mxu0 %vm1202_vm3, %v1438_v30 }
 0x1f5   : > { %v1238_v31 = vpop.permute.xlu0 %1237  ;;  %v1466_v33 = vld [vmem:[#allocation5] sm:$0xff] }
 0x1f6   : > { %1284 = vst.msk [vmem:[#allocation3 + $0x8] sm:$0xff] %vm1202_vm3, %v1238_v31  ;;  %3334 = vmatpush.xpose.msk.msrb.mxu0 %vm1202_vm3, %v1437_v32  ;;  %3369 = vmatpush.xpose.msk.msrb.mxu2 %vm1202_vm3, %v1466_v33  ;;  %v1401_v31 = vadd.s32 40, %v4400_v54 }
 0x1f9   : > { %3370 = vmatmul.msk.f32.vlgmr.msrb.gmra.mxu2 %vm1202_vm3, %v1418_v38 }
 0x1fa   : > { %3335 = vmatpush.xpose.msk.msrb.mxu0 %vm1202_vm3, %v1436_v39 }
 0x1fd   : > { %v1435_v40 = vld [vmem:[#allocation3 + $0x8] sm:$0xff] }
 0x1fe   : > { %3336 = vmatpush.xpose.msk.msrb.mxu0 %vm1202_vm3, %v1435_v40 }
 0x201   : > { %3371 = vmatmul.msk.f32.gmra.mxu2 %vm1202_vm3, %v1419_v7 }
 0x202   : > { %3337 = vmatpush.xpose.msk.msrb.mxu0 %vm1202_vm3, %v1434_v12 }
 0x205   : > { %3338 = vmatmul.msk.f32.vlgmr.msrb.gmra.mxu0 %vm1202_vm3, %v1450_v27 }
 0x209   : > { %3372 = vmatmul.msk.f32.gmra.mxu2 %vm1202_vm3, %v1420_v35 }
 0x20d   : > { %3339 = vmatmul.msk.f32.gmra.mxu0 %vm1202_vm3, %v1451_v11  ;;  %v1402_v11 = vadd.s32 48, %v4400_v54 }
 0x211   : > { %3373 = vmatmul.msk.f32.gmra.mxu2 %vm1202_vm3, %v1421_v28  ;;  %v1403_v28 = vadd.s32 56, %v4400_v54 }
 0x215   : > { %3340 = vmatmul.msk.f32.gmra.mxu0 %vm1202_vm3, %v1452_v36 }
 0x219   : > { %3374 = vmatmul.msk.f32.gmra.mxu2 %vm1202_vm3, %v1422_v19 }
 0x21d   : > { %3341 = vmatmul.msk.f32.gmra.mxu0 %vm1202_vm3, %v1453_v20 }
 0x221   : > { %3375 = vmatmul.msk.f32.gmra.mxu2 %vm1202_vm3, %v1423_v43  ;;  %v1404_v43 = vadd.s32 64, %v4400_v54 }
 0x225   : > { %3342 = vmatmul.msk.f32.gmra.mxu0 %vm1202_vm3, %v1454_v44  ;;  %v4541_v44 = vadd.s32 72, %v4400_v54 }
 0x229   : > { %3376 = vmatmul.msk.f32.gmra.mxu2 %vm1202_vm3, %v1424_v51 }
 0x22d   : > { %3343 = vmatmul.msk.f32.gmra.mxu0 %vm1202_vm3, %v1455_v52 }
 0x231   : > { %3377 = vmatmul.msk.f32.gmra.mxu2 %vm1202_vm3, %v1425_v59 }
 0x235   : > { %3344 = vmatmul.msk.f32.gmra.mxu0 %vm1202_vm3, %v1456_v60 }
 0x239   : > { %3378 = vmatmul.msk.f32.gmra.mxu2 %vm1202_vm3, %v1426_v3 }
 0x23d   : > { %3345 = vmatmul.msk.f32.gmra.mxu0 %vm1202_vm3, %v1457_v4 }
 0x241   : > { %3379 = vmatmul.msk.f32.gmra.mxu2 %vm1202_vm3, %v1427_v14 }
 0x245   : > { %3346 = vmatmul.msk.f32.gmra.mxu0 %vm1202_vm3, %v1458_v15 }
 0x249   : > { %3380 = vmatmul.msk.f32.gmra.mxu2 %vm1202_vm3, %v1428_v24 }
 0x24d   : > { %3347 = vmatmul.msk.f32.gmra.mxu0 %vm1202_vm3, %v1459_v25 }
 0x251   : > { %3381 = vmatmul.msk.f32.gmra.mxu2 %vm1202_vm3, %v1429_v34 }
 0x255   : > { %3348 = vmatmul.msk.f32.gmra.mxu0 %vm1202_vm3, %v1460_v37 }
 0x259   : > { %3382 = vmatmul.msk.f32.gmra.mxu2 %vm1202_vm3, %v1430_v41 }
 0x25d   : > { %3349 = vmatmul.msk.f32.gmra.mxu0 %vm1202_vm3, %v1461_v42 }
 0x261   : > { %3383 = vmatmul.msk.f32.gmra.mxu2 %vm1202_vm3, %v1431_v45 }
 0x265   : > { %3350 = vmatmul.msk.f32.gmra.mxu0 %vm1202_vm3, %v1462_v46 }
 0x269   : > { %3384 = vmatmul.msk.f32.gmra.mxu2 %vm1202_vm3, %v1432_v47 }
 0x26d   : > { %3351 = vmatmul.msk.f32.gmra.mxu0 %vm1202_vm3, %v1463_v48 }
 0x271   : > { %3385 = vmatmul.msk.f32.gmra.mxu2 %vm1202_vm3, %v1433_v49 }
 0x275   : > { %3352 = vmatmul.msk.f32.gmra.mxu0 %vm1202_vm3, %v1464_v53 }
 0x27c   : > { %v1756_v62 = vpop.f32.mrf.mxu2 }
 0x27d   : > { %3353 = vmatmul.msk.f32.gmra.mxu0 %vm1202_vm3, %v1465_v63  ;;  %vm1874_vm3 = vmxor %vm1805_vm1, %vm4424_vm9 }
 0x27e   : > { %vm1892_vm6 = vmor %vm1874_vm3, %vm1415_vm12 }
 0x27f   : > { %v4465_v21 = vsel %vm1892_vm6, -inf, %v1756_v62  ;;  %vm1946_vm1 = vmxor %vm1827_vm15, %vm4411_vm4  ;;  %vm1828_vm6 = vcmp.ge.s32.totalorder %v1401_v31, %v4407_v58 }
 0x280   : > { %vm1964_vm3 = vmor %vm1946_vm1, %vm1414_vm7  ;;  %vm1809_vm1 = vcmp.ge.s32.totalorder %v1400_v23, %v4405_v57 }
 0x282   : > { %v1595_v1 = vpop.f32.mrf.mxu0 }
 0x283   : > { %v4436_v2 = vsel %vm1960_vm11, -inf, %v1595_v1  ;;  %vm1945_vm11 = vmxor %vm1826_vm10, %vm4411_vm4 }
 0x284   : > { %1992 = vmax.xlane.f32.xlu0 %v4436_v2  ;;  %v1759_v5 = vpop.f32.mrf.mxu2  ;;  %vm1877_vm10 = vmxor %vm1808_vm5, %vm4424_vm9  ;;  %vm1829_vm5 = vcmp.ge.s32.totalorder %v1402_v11, %v4407_v58 }
 0x285   : > { %v4439_v6 = vsel %vm1893_vm13, -inf, %v1759_v5  ;;  %vm1963_vm13 = vmor %vm1945_vm11, %vm1414_vm7 }
 0x286   : > { %2362 = vmax.xlane.f32.xlu1 %v4439_v6  ;;  %vm1947_vm11 = vmxor %vm1828_vm6, %vm4411_vm4  ;;  %vm1830_vm6 = vcmp.ge.s32.totalorder %v1403_v28, %v4407_v58 }
 0x287   : > { %vm1965_vm15 = vmor %vm1947_vm11, %vm1414_vm7 }
 0x28a   : > { %v1598_v9 = vpop.f32.mrf.mxu0 }
 0x28b   : > { %v4450_v10 = vsel %vm1961_vm0, -inf, %v1598_v9  ;;  %vm1876_vm0 = vmxor %vm1807_vm14, %vm4424_vm9 }
 0x28c   : > { %1994 = vmax.xlane.f32.xlu2 %v4450_v10  ;;  %v1762_v13 = vpop.f32.mrf.mxu2  ;;  %vm1894_vm2 = vmor %vm1876_vm0, %vm1415_vm12 }
 0x28d   : > { %v4492_v38 = vsel %vm1894_vm2, -inf, %v1762_v13  ;;  %vm1895_vm14 = vmor %vm1877_vm10, %vm1415_vm12 }
 0x28e   : > { %vm1878_vm2 = vmxor %vm1809_vm1, %vm4424_vm9  ;;  %vm1814_vm1 = vcmp.ge.s32.totalorder %v4541_v44, %v4405_v57 }
 0x28f   : > { %vm1949_vm10 = vmxor %vm1830_vm6, %vm4411_vm4 }
 0x292   : > { %v1601_v17 = vpop.f32.mrf.mxu0 }
 0x293   : > { %v4463_v18 = vsel %vm1962_vm8, -inf, %v1601_v17  ;;  %vm1810_vm8 = vcmp.ge.s32.totalorder %v1401_v31, %v4405_v57 }
 0x294   : > { %1996 = vmax.xlane.f32.xlu0 %v4463_v18  ;;  %2360 = vmax.xlane.f32.xlu2 %v4465_v21  ;;  %v1765_v22 = vpop.f32.mrf.mxu2 }
 0x295   : > { %v4512_v12 = vsel %vm1895_vm14, -inf, %v1765_v22  ;;  %vm1811_vm14 = vcmp.ge.s32.totalorder %v1402_v11, %v4405_v57 }
 0x29a   : > { %v1604_v26 = vpop.f32.mrf.mxu0 }
 0x29b   : > { %v4476_v29 = vsel %vm1963_vm13, -inf, %v1604_v26  ;;  %vm1879_vm13 = vmxor %vm1810_vm8, %vm4424_vm9 }
 0x29c   : > { %1998 = vmax.xlane.f32.xlu2 %v4476_v29  ;;  %v1768_v30 = vpop.f32.mrf.mxu2  ;;  %vm1897_vm0 = vmor %vm1879_vm13, %vm1415_vm12 }
 0x29d   : > { %vm1948_vm8 = vmxor %vm1829_vm5, %vm4411_vm4 }
 0x29e   : > { %vm1966_vm11 = vmor %vm1948_vm8, %vm1414_vm7  ;;  %vm1812_vm8 = vcmp.ge.s32.totalorder %v1403_v28, %v4405_v57 }
 0x29f   : > { %vm1967_vm13 = vmor %vm1949_vm10, %vm1414_vm7 }
 0x2a0   : > { %vm1883_vm5 = vmxor %vm1814_vm1, %vm4424_vm9  ;;  %vm1832_vm1 = vcmp.ge.s32.totalorder %v4541_v44, %v4407_v58 }
 0x2a1   : > { %vm1901_vm10 = vmor %vm1883_vm5, %vm1415_vm12 }
 0x2a2   : > { %v1607_v32 = vpop.f32.mrf.mxu0 }
 0x2a3   : > { %v4490_v33 = vsel %vm1964_vm3, -inf, %v1607_v32  ;;  %vm1896_vm3 = vmor %vm1878_vm2, %vm1415_vm12 }
 0x2a4   : > { %2000 = vmax.xlane.f32.xlu1 %v4490_v33  ;;  %2364 = vmax.xlane.f32.xlu2 %v4492_v38  ;;  %v1771_v39 = vpop.f32.mrf.mxu2  ;;  %v4527_v19 = vsel %vm1896_vm3, -inf, %v1768_v30 }
 0x2a5   : > { %v4516_v27 = vsel %vm1897_vm0, -inf, %v1771_v39  ;;  %vm1880_vm0 = vmxor %vm1811_vm14, %vm4424_vm9 }
 0x2a6   : > { %vm1898_vm3 = vmor %vm1880_vm0, %vm1415_vm12 }
 0x2aa   : > { %v1610_v40 = vpop.f32.mrf.mxu0 }
 0x2ab   : > { %v4510_v7 = vsel %vm1965_vm15, -inf, %v1610_v40  ;;  %vm1831_vm15 = vcmp.ge.s32.totalorder %v1404_v43, %v4407_v58 }
 0x2ac   : > { %2002 = vmax.xlane.f32.xlu0 %v4510_v7  ;;  %2366 = vmax.xlane.f32.xlu1 %v4512_v12  ;;  %v1774_v35 = vpop.f32.mrf.mxu2  ;;  %vm1950_vm2 = vmxor %vm1831_vm15, %vm4411_vm4 }
 0x2ad   : > { %2370 = vmax.xlane.f32.xlu2 %v4516_v27  ;;  %vm1968_vm6 = vmor %vm1950_vm2, %vm1414_vm7  ;;  %v4568_v14 = vsel %vm1898_vm3, -inf, %v1774_v35 }
 0x2ae   : > { %vm1951_vm3 = vmxor %vm1832_vm1, %vm4411_vm4 }
 0x2b2   : > { %v1613_v36 = vpop.f32.mrf.mxu0 }
 0x2b3   : > { %v4546_v59 = vsel %vm1966_vm11, -inf, %v1613_v36  ;;  %vm1813_vm11 = vcmp.ge.s32.totalorder %v1404_v43, %v4405_v57 }
 0x2b4   : > { %2368 = vmax.xlane.f32.xlu0 %v4527_v19  ;;  %v1777_v20 = vpop.f32.mrf.mxu2  ;;  %vm1882_vm14 = vmxor %vm1813_vm11, %vm4424_vm9 }
 0x2b5   : > { %vm1900_vm0 = vmor %vm1882_vm14, %vm1415_vm12 }
 0x2ba   : > { %v1616_v51 = vpop.f32.mrf.mxu0 }
 0x2bb   : > { %v4544_v52 = vsel %vm1967_vm13, -inf, %v1616_v51  ;;  %vm1881_vm13 = vmxor %vm1812_vm8, %vm4424_vm9 }
 0x2bc   : > { %2006 = vmax.xlane.f32.xlu1 %v4544_v52  ;;  %2004 = vmax.xlane.f32.xlu0 %v4546_v59  ;;  %v1780_v60 = vpop.f32.mrf.mxu2  ;;  %vm1899_vm15 = vmor %vm1881_vm13, %vm1415_vm12 }
 0x2bd   : > { %v4583_v25 = vsel %vm1899_vm15, -inf, %v1777_v20  ;;  %v4585_v34 = vsel %vm1900_vm0, -inf, %v1780_v60 }
 0x2c2   : > { %v1619_v3 = vpop.f32.mrf.mxu0 }
 0x2c3   : > { %v4566_v4 = vsel %vm1968_vm6, -inf, %v1619_v3  ;;  %vm1969_vm6 = vmor %vm1951_vm3, %vm1414_vm7 }
 0x2c4   : > { %2008 = vmax.xlane.f32.xlu2 %v4566_v4  ;;  %2372 = vmax.xlane.f32.xlu1 %v4568_v14  ;;  %v1783_v15 = vpop.f32.mrf.mxu2 }
 0x2c5   : > { %v4574_v24 = vsel %vm1901_vm10, -inf, %v1783_v15 }
 0x2c6   : > { %2378 = vmax.xlane.f32.xlu0 %v4574_v24 }
 0x2ca   : > { %v1622_v22 = vpop.f32.mrf.mxu0 }
 0x2cb   : > { %v4628_v35 = vsel %vm1969_vm6, -inf, %v1622_v22 }
 0x2cc   : > { %2374 = vmax.xlane.f32.xlu1 %v4583_v25  ;;  %2376 = vmax.xlane.f32.xlu2 %v4585_v34  ;;  %v1786_v23 = vpop.f32.mrf.mxu2 }
 0x2d2   : > { %v1625_v60 = vpop.f32.mrf.mxu0 }
 0x2d4   : > { %v1789_v28 = vpop.f32.mrf.mxu2 }
 0x2f7   : > { %v1993_v37 = vpop.xlane.xlu0 %1992 }
 0x2f8   : > { %v2024_v41 = vsub.f32 %v4436_v2, %v1993_v37 }
 0x2f9   : > { %v2363_v46 = vpop.xlane.xlu1 %2362 }
 0x2fa   : > { %v2040_v42 = vmul.f32 1.442695, %v2024_v41  ;;  %v2393_v50 = vsub.f32 %v4439_v6, %v2363_v46  ;;  %v1406_v6 = vadd.s32 80, %v4400_v54 }
 0x2fc   : > { %3471 = vpow2.f32 %v2040_v42  ;;  %v2410_v53 = vmul.f32 1.442695, %v2393_v50  ;;  %vm1815_vm2 = vcmp.ge.s32.totalorder %v1406_v6, %v4405_v57  ;;  %vm1833_vm14 = vcmp.ge.s32.totalorder %v1406_v6, %v4407_v58  ;;  %v1628_v50 = vpop.f32.mrf.mxu0 }
 0x2fd   : > { %vm1884_vm5 = vmxor %vm1815_vm2, %vm4424_vm9 }
 0x2fe   : > { %vm1902_vm8 = vmor %vm1884_vm5, %vm1415_vm12 }
 0x2ff   : > { %v1995_v45 = vpop.xlane.xlu2 %1994  ;;  %v4630_v11 = vsel %vm1902_vm8, -inf, %v1786_v23  ;;  %vm1952_vm15 = vmxor %vm1833_vm14, %vm4411_vm4 }
 0x300   : > { %v2025_v47 = vsub.f32 %v4450_v10, %v1995_v45  ;;  %vm1970_vm0 = vmor %vm1952_vm15, %vm1414_vm7 }
 0x301   : > { %v4659_v46 = vsel %vm1970_vm0, -inf, %v1625_v60  ;;  %v2725_v60 = vld [vmem:[%s4715_s23 + $0x68] sm:$0xff] }
 0x302   : > { %v4591_v48 = vpop.eup %3471  ;;  %v2042_v49 = vmul.f32 1.442695, %v2025_v47 }
 0x303   : > { %2072 = vadd.xlane.f32.xlu2 %v4591_v48 }
 0x304   : > { %3473 = vpow2.f32 %v2042_v49  ;;  %v1631_v23 = vpop.f32.mrf.mxu0 }
 0x305   : > { %3475 = vpow2.f32 %v2410_v53 }
 0x307   : > { %v1997_v56 = vpop.xlane.xlu0 %1996  ;;  %v2361_v62 = vpop.xlane.xlu2 %2360 }
 0x308   : > { %v2026_v63 = vsub.f32 %v4463_v18, %v1997_v56  ;;  %v2392_v1 = vsub.f32 %v4465_v21, %v2361_v62  ;;  %v1407_v21 = vadd.s32 88, %v4400_v54 }
 0x30a   : > { %v4597_v2 = vpop.eup %3473  ;;  %v2044_v5 = vmul.f32 1.442695, %v2026_v63  ;;  %v2408_v8 = vmul.f32 1.442695, %v2392_v1  ;;  %vm1816_vm10 = vcmp.ge.s32.totalorder %v1407_v21, %v4405_v57  ;;  %vm1834_vm1 = vcmp.ge.s32.totalorder %v1407_v21, %v4407_v58 }
 0x30b   : > { %2074 = vadd.xlane.f32.xlu0 %v4597_v2  ;;  %v4604_v13 = vpop.eup %3475  ;;  %vm1885_vm11 = vmxor %vm1816_vm10, %vm4424_vm9 }
 0x30c   : > { %3477 = vpow2.f32 %v2044_v5  ;;  %vm1903_vm13 = vmor %vm1885_vm11, %vm1415_vm12  ;;  %v1792_v5 = vpop.f32.mrf.mxu2 }
 0x30d   : > { %3479 = vpow2.f32 %v2408_v8  ;;  %v4646_v51 = vsel %vm1903_vm13, -inf, %v1789_v28  ;;  %vm1953_vm2 = vmxor %vm1834_vm1, %vm4411_vm4 }
 0x30e   : > { %vm1971_vm3 = vmor %vm1953_vm2, %vm1414_vm7 }
 0x30f   : > { %v1999_v9 = vpop.xlane.xlu2 %1998  ;;  %v4678_v1 = vsel %vm1971_vm3, -inf, %v1628_v50 }
 0x310   : > { %v2027_v10 = vsub.f32 %v4476_v29, %v1999_v9 }
 0x312   : > { %v4607_v16 = vpop.eup %3477  ;;  %v2046_v17 = vmul.f32 1.442695, %v2027_v10 }
 0x313   : > { %v4609_v18 = vpop.eup %3479  ;;  %2076 = vadd.xlane.f32.xlu1 %v4607_v16  ;;  %2442 = vadd.xlane.f32.xlu0 %v4604_v13 }
 0x314   : > { %3481 = vpow2.f32 %v2046_v17  ;;  %2440 = vadd.xlane.f32.xlu2 %v4609_v18 }
 0x317   : > { %v2001_v26 = vpop.xlane.xlu1 %2000  ;;  %v2365_v29 = vpop.xlane.xlu2 %2364 }
 0x318   : > { %v2028_v30 = vsub.f32 %v4490_v33, %v2001_v26  ;;  %v2394_v31 = vsub.f32 %v4492_v38, %v2365_v29  ;;  %v1410_v26 = vadd.s32 112, %v4400_v54 }
 0x31a   : > { %v4626_v32 = vpop.eup %3481  ;;  %v2048_v39 = vmul.f32 1.442695, %v2028_v30  ;;  %v2412_v40 = vmul.f32 1.442695, %v2394_v31  ;;  %vm1819_vm2 = vcmp.ge.s32.totalorder %v1410_v26, %v4405_v57 }
 0x31b   : > { %2010 = vmax.xlane.f32.xlu0 %v4628_v35  ;;  %2380 = vmax.xlane.f32.xlu1 %v4630_v11 }
 0x31c   : > { %3483 = vpow2.f32 %v2048_v39  ;;  %2078 = vadd.xlane.f32.xlu2 %v4626_v32 }
 0x31d   : > { %3485 = vpow2.f32 %v2412_v40 }
 0x31f   : > { %v2003_v33 = vpop.xlane.xlu0 %2002  ;;  %v2367_v38 = vpop.xlane.xlu1 %2366 }
 0x320   : > { %v2395_v36 = vsub.f32 %v4512_v12, %v2367_v38  ;;  %v2029_v12 = vsub.f32 %v4510_v7, %v2003_v33  ;;  %v2371_v41 = vpop.xlane.xlu2 %2370  ;;  %v2727_v38 = vld [vmem:[%s4715_s23 + $0x78] sm:$0xff] }
 0x321   : > { %v2397_v7 = vsub.f32 %v4516_v27, %v2371_v41  ;;  %2728 = vmatpush.msrb.mxu1 %v2727_v38  ;;  %v2804_v38 = vld [vmem:[%s4783_s24 + $0x58] sm:$0xff] }
 0x322   : > { %v4640_v20 = vpop.eup %3483  ;;  %v2414_v43 = vmul.f32 1.442695, %v2395_v36  ;;  %v2050_v37 = vmul.f32 1.442695, %v2029_v12  ;;  %v2726_v36 = vld [vmem:[%s4715_s23 + $0x70] sm:$0xff]  ;;  %v1634_v12 = vpop.f32.mrf.mxu0 }
 0x323   : > { %v4643_v44 = vpop.eup %3485  ;;  %2080 = vadd.xlane.f32.xlu0 %v4640_v20  ;;  %v2418_v53 = vmul.f32 1.442695, %v2397_v7  ;;  %2729 = vmatpush.msrb.mxu1 %v2726_v36  ;;  %v2803_v36 = vld [vmem:[%s4783_s24 + $0x50] sm:$0xff] }
 0x324   : > { %2444 = vadd.xlane.f32.xlu1 %v4643_v44  ;;  %2382 = vmax.xlane.f32.xlu2 %v4646_v51  ;;  %3487 = vpow2.f32 %v2414_v43 }
 0x325   : > { %2730 = vmatpush.msrb.mxu1 %v2725_v60  ;;  %v2712_v60 = vld [vmem:[%s4715_s23] sm:$0xff] }
 0x327   : > { %v2369_v3 = vpop.xlane.xlu0 %2368 }
 0x328   : > { %v2396_v15 = vsub.f32 %v4527_v19, %v2369_v3  ;;  %v1408_v19 = vadd.s32 96, %v4400_v54 }
 0x32a   : > { %v2416_v42 = vmul.f32 1.442695, %v2396_v15  ;;  %v4657_v45 = vpop.eup %3487  ;;  %vm1817_vm5 = vcmp.ge.s32.totalorder %v1408_v19, %v4405_v57  ;;  %vm1835_vm10 = vcmp.ge.s32.totalorder %v1408_v19, %v4407_v58  ;;  %v2724_v15 = vld [vmem:[%s4715_s23 + $0x60] sm:$0xff] }
 0x32b   : > { %vm1886_vm6 = vmxor %vm1817_vm5, %vm4424_vm9  ;;  %2731 = vmatpush.msrb.mxu1 %v2724_v15  ;;  %v2799_v15 = vld [vmem:[%s4783_s24 + $0x30] sm:$0xff] }
 0x32c   : > { %3489 = vpow2.f32 %v2416_v42  ;;  %2012 = vmax.xlane.f32.xlu1 %v4659_v46  ;;  %2446 = vadd.xlane.f32.xlu2 %v4657_v45  ;;  %vm1904_vm8 = vmor %vm1886_vm6, %vm1415_vm12  ;;  %v2723_v42 = vld [vmem:[%s4715_s23 + $0x58] sm:$0xff] }
 0x32d   : > { %3491 = vpow2.f32 %v2050_v37  ;;  %v4693_v21 = vsel %vm1904_vm8, -inf, %v1792_v5  ;;  %vm1954_vm13 = vmxor %vm1835_vm10, %vm4411_vm4  ;;  %vm1837_vm10 = vcmp.ge.s32.totalorder %v1410_v26, %v4407_v58  ;;  %2732 = vmatpush.msrb.mxu1 %v2723_v42  ;;  %v2796_v42 = vld [vmem:[%s4783_s24 + $0x18] sm:$0xff] }
 0x32e   : > { %3493 = vpow2.f32 %v2418_v53  ;;  %vm1972_vm15 = vmor %vm1954_vm13, %vm1414_vm7  ;;  %v1411_v53 = vadd.s32 120, %v4400_v54 }
 0x32f   : > { %v4667_v47 = vpop.xlane.xlu1 %2006  ;;  %v2005_v49 = vpop.xlane.xlu0 %2004  ;;  %v4718_v40 = vsel %vm1972_vm15, -inf, %v1631_v23  ;;  %vm1888_vm5 = vmxor %vm1819_vm2, %vm4424_vm9  ;;  %v2718_v23 = vld [vmem:[%s4715_s23 + $0x30] sm:$0xff] }
 0x330   : > { %v2030_v56 = vsub.f32 %v4546_v59, %v2005_v49  ;;  %v1409_v59 = vadd.s32 104, %v4400_v54  ;;  %v2031_v28 = vsub.f32 %v4544_v52, %v4667_v47  ;;  %vm1906_vm8 = vmor %vm1888_vm5, %vm1415_vm12  ;;  %v2722_v49 = vld [vmem:[%s4715_s23 + $0x50] sm:$0xff] }
 0x331   : > { %2733 = vmatpush.msrb.mxu1 %v2722_v49  ;;  %v2795_v49 = vld [vmem:[%s4783_s24 + $0x10] sm:$0xff] }
 0x332   : > { %v4673_v27 = vpop.eup %3489  ;;  %v2052_v62 = vmul.f32 1.442695, %v2030_v56  ;;  %vm1818_vm11 = vcmp.ge.s32.totalorder %v1409_v59, %v4405_v57  ;;  %vm1836_vm1 = vcmp.ge.s32.totalorder %v1409_v59, %v4407_v58  ;;  %v2054_v3 = vmul.f32 1.442695, %v2031_v28  ;;  %v1637_v56 = vpop.f32.mrf.mxu0  ;;  %v2721_v59 = vld [vmem:[%s4715_s23 + $0x48] sm:$0xff]  ;;  %v2714_v28 = vld [vmem:[%s4715_s23 + $0x10] sm:$0xff] }
 0x333   : > { %v4675_v63 = vpop.eup %3491  ;;  %2448 = vadd.xlane.f32.xlu0 %v4673_v27  ;;  %vm1887_vm14 = vmxor %vm1818_vm11, %vm4424_vm9  ;;  %2734 = vmatpush.msrb.mxu1 %v2721_v59 }
 0x334   : > { %2082 = vadd.xlane.f32.xlu1 %v4675_v63  ;;  %2014 = vmax.xlane.f32.xlu2 %v4678_v1  ;;  %3495 = vpow2.f32 %v2052_v62  ;;  %v4691_v10 = vpop.eup %3493  ;;  %vm1905_vm0 = vmor %vm1887_vm14, %vm1415_vm12  ;;  %vm1820_vm14 = vcmp.ge.s32.totalorder %v1411_v53, %v4405_v57 }
 0x335   : > { %vm1955_vm3 = vmxor %vm1836_vm1, %vm4411_vm4  ;;  %vm1838_vm1 = vcmp.ge.s32.totalorder %v1411_v53, %v4407_v58  ;;  %v2719_v58 = vld [vmem:[%s4715_s23 + $0x38] sm:$0xff]  ;;  %v2793_v53 = vld [vmem:[%s4783_s24] sm:$0xff] }
 0x336   : > { %vm1973_vm6 = vmor %vm1955_vm3, %vm1414_vm7 }
 0x337   : > { %v2373_v8 = vpop.xlane.xlu1 %2372  ;;  %v4687_v6 = vpop.xlane.xlu2 %2008  ;;  %v4748_v7 = vsel %vm1973_vm6, -inf, %v1634_v12  ;;  %vm1956_vm11 = vmxor %vm1837_vm10, %vm4411_vm4  ;;  %v2802_v12 = vld [vmem:[%s4783_s24 + $0x48] sm:$0xff] }
 0x338   : > { %v2398_v9 = vsub.f32 %v4568_v14, %v2373_v8  ;;  %v1795_v14 = vpop.f32.mrf.mxu2  ;;  %v2032_v47 = vsub.f32 %v4566_v4, %v4687_v6  ;;  %vm1974_vm13 = vmor %vm1956_vm11, %vm1414_vm7  ;;  %v2720_v6 = vld [vmem:[%s4715_s23 + $0x40] sm:$0xff] }
 0x339   : > { %v4724_v33 = vsel %vm1905_vm0, -inf, %v1795_v14  ;;  %v2379_v41 = vpop.xlane.xlu0 %2378  ;;  %v4769_v54 = vsel %vm1974_vm13, -inf, %v1637_v56  ;;  %vm1889_vm15 = vmxor %vm1820_vm14, %vm4424_vm9  ;;  %2735 = vmatpush.msrb.mxu1 %v2720_v6  ;;  %v2807_v14 = vld [vmem:[%s4783_s24 + $0x70] sm:$0xff] }
 0x33a   : > { %v2420_v17 = vmul.f32 1.442695, %v2398_v9  ;;  %v4696_v22 = vpop.eup %3495  ;;  %v2401_v50 = vsub.f32 %v4574_v24, %v2379_v41  ;;  %v2056_v62 = vmul.f32 1.442695, %v2032_v47  ;;  %vm1907_vm0 = vmor %vm1889_vm15, %vm1415_vm12  ;;  %v1640_v26 = vpop.f32.mrf.mxu0  ;;  %v2797_v41 = vld [vmem:[%s4783_s24 + $0x20] sm:$0xff] }
 0x33b   : > { %2384 = vmax.xlane.f32.xlu0 %v4693_v21  ;;  %vm1957_vm9 = vmxor %vm1838_vm1, %vm4411_vm4  ;;  %2736 = vmatpush.msrb.mxu1 %v2719_v58 }
 0x33c   : > { %2450 = vadd.xlane.f32.xlu1 %v4691_v10  ;;  %2084 = vadd.xlane.f32.xlu2 %v4696_v22  ;;  %3497 = vpow2.f32 %v2420_v17  ;;  %v2426_v4 = vmul.f32 1.442695, %v2401_v50  ;;  %v2808_v17 = vld [vmem:[%s4783_s24 + $0x78] sm:$0xff]  ;;  %vm1975_vm12 = vmor %vm1957_vm9, %vm1414_vm7  ;;  %v2794_v50 = vld [vmem:[%s4783_s24 + $0x8] sm:$0xff] }
 0x33d   : > { %2809 = vmatpush.msrb.mxu3 %v2808_v17  ;;  %2737 = vmatpush.msrb.mxu1 %v2718_v23 }
 0x33f   : > { %v2375_v29 = vpop.xlane.xlu1 %2374  ;;  %v2377_v39 = vpop.xlane.xlu2 %2376  ;;  %2810 = vmatpush.msrb.mxu3 %v2807_v14  ;;  %2738 = vmatpush.msrb.mxu1 %v2717_v61 }
 0x340   : > { %v2399_v30 = vsub.f32 %v4583_v25, %v2375_v29  ;;  %v2400_v43 = vsub.f32 %v4585_v34, %v2377_v39  ;;  %v1798_v52 = vpop.f32.mrf.mxu2  ;;  %v2806_v29 = vld [vmem:[%s4783_s24 + $0x68] sm:$0xff]  ;;  %v2805_v39 = vld [vmem:[%s4783_s24 + $0x60] sm:$0xff] }
 0x341   : > { %v4750_v19 = vsel %vm1906_vm8, -inf, %v1798_v52  ;;  %2811 = vmatpush.msrb.mxu3 %v2806_v29  ;;  %v2801_v52 = vld [vmem:[%s4783_s24 + $0x40] sm:$0xff] }
 0x342   : > { %v2422_v31 = vmul.f32 1.442695, %v2399_v30  ;;  %v4721_v25 = vpop.eup %3497  ;;  %v2424_v37 = vmul.f32 1.442695, %v2400_v43  ;;  %v4805_v30 = vsel %vm1975_vm12, -inf, %v1640_v26  ;;  %v2713_v43 = vld [vmem:[%s4715_s23 + $0x8] sm:$0xff] }
 0x343   : > { %2016 = vmax.xlane.f32.xlu0 %v4718_v40  ;;  %2812 = vmatpush.msrb.mxu3 %v2805_v39 }
 0x344   : > { %3499 = vpow2.f32 %v2422_v31  ;;  %2452 = vadd.xlane.f32.xlu2 %v4721_v25  ;;  %2386 = vmax.xlane.f32.xlu1 %v4724_v33  ;;  %v2716_v31 = vld [vmem:[%s4715_s23 + $0x20] sm:$0xff]  ;;  %s5198_s23 = sshll.u32 %s3903_s7, 7 }
 0x345   : > { %3501 = vpow2.f32 %v2054_v3  ;;  %2739 = vmatpush.msrb.mxu1 %v2716_v31  ;;  %2813 = vmatpush.msrb.mxu3 %v2804_v38  ;;  %v2800_v3 = vld [vmem:[%s4783_s24 + $0x38] sm:$0xff]  ;;  %s3016_s8 = scalar_lea.hbm %s5350_s17, %s5198_s23 }
 0x346   : > { %3503 = vpow2.f32 %v2424_v37  ;;  %v2798_v37 = vld [vmem:[%s4783_s24 + $0x28] sm:$0xff]  ;;  %s3017_s24 = sshll.u32 %s4922_s30, 4  ;;  %s3019_s29 = sshll.u32 %s3016_s8, 4  ;;  %s3018_s24 = int_to_ptr.vmem [resolvable:$true] %s3017_s24  ;;  %s3020_s29 = int_to_ptr.hbm [resolvable:$true] %s3019_s29 }
 0x347   : > { %3505 = vpow2.f32 %v2056_v62  ;;  %2740 = vmatpush.msrb.mxu1 %v2715_v55  ;;  %2814 = vmatpush.msrb.mxu3 %v2803_v36  ;;  %s3637_s4 = sshra.s32 %s3020_s29, 4  ;;  %s3638_s4 = int_to_ptr.hbm [resolvable:$true] %s3637_s4 }
 0x348   : > { %3507 = vpow2.f32 %v2426_v4  ;;  %v1801_v57 = vpop.f32.mrf.mxu2  ;;  %s3639_s5 = scalar_lea.hbm %s3638_s4, 128  ;;  %p3644_p0 = scmp.lt.s32.totalorder %s3638_s4, %s5350_s17 }
 0x349   : > { %v4787_v8 = vsel %vm1907_vm0, -inf, %v1801_v57  ;;  %2741 = vmatpush.msrb.mxu1 %v2714_v28  ;;  %2815 = vmatpush.msrb.mxu3 %v2802_v12  ;;  %p3640_p11 = scmp.ne.s32.totalorder %s3638_s4, %s3639_s5  ;;  %p3645_p1 = scmp.lt.s32.totalorder %s3643_s10, %s3639_s5 }
 0x34a   : > { %v4743_v34 = vpop.eup %3499 }
 0x34b   : > { %2454 = vadd.xlane.f32.xlu0 %v4743_v34  ;;  %v4764_v5 = vpop.eup %3501  ;;  %2742 = vmatpush.msrb.mxu1 %v2713_v43  ;;  %p3641_p12 = pnand %p3640_p11, %p3922_p5  ;;  %p3646_p2 = por %p3645_p1, %p3644_p0 }
 0x34c   : > { %2018 = vmax.xlane.f32.xlu1 %v4748_v7  ;;  %2388 = vmax.xlane.f32.xlu2 %v4750_v19  ;;  %v4766_v24 = vpop.eup %3503 }
 0x34d   : > { %v4785_v0 = vpop.eup %3505  ;;  %2743 = vmatpush.msrb.mxu1 %v2712_v60  ;;  %2816 = vmatpush.msrb.mxu3 %v2801_v52  ;;  %p3642_p13 = pneg %p3641_p12 }
 0x34e   : > { %v4790_v9 = vpop.eup %3507 }
 0x34f   : > { %2817 = vmatpush.msrb.mxu3 %v2800_v3  ;;  %p3647_p3 = pnand %p3646_p2, %p3642_p13 }
 0x351   : > { %2818 = vmatpush.msrb.mxu3 %v2799_v15 }
 0x353   : > { %2086 = vadd.xlane.f32.xlu0 %v4764_v5  ;;  %2819 = vmatpush.msrb.mxu3 %v2798_v37 }
 0x354   : > { %2456 = vadd.xlane.f32.xlu1 %v4766_v24  ;;  %2020 = vmax.xlane.f32.xlu2 %v4769_v54 }
 0x355   : > { %2820 = vmatpush.msrb.mxu3 %v2797_v41 }
 0x357   : > { %2821 = vmatpush.msrb.mxu3 %v2796_v42 }
 0x359   : > { %2822 = vmatpush.msrb.mxu3 %v2795_v49 }
 0x35b   : > { %2390 = vmax.xlane.f32.xlu0 %v4787_v8  ;;  %2823 = vmatpush.msrb.mxu3 %v2794_v50 }
 0x35c   : > { %2088 = vadd.xlane.f32.xlu1 %v4785_v0  ;;  %2458 = vadd.xlane.f32.xlu2 %v4790_v9 }
 0x35d   : > { %2824 = vmatpush.msrb.mxu3 %v2793_v53 }
 0x363   : > { %2022 = vmax.xlane.f32.xlu0 %v4805_v30 }
 0x376   : > { %v2073_v47 = vpop.xlane.xlu2 %2072 }
 0x377   : > { %3509 = vrcp.f32 %v2073_v47  ;;  %v2115_v59 = vand.u32 2147483648, %v2073_v47  ;;  %v2113_v58 = vand.u32 2147483647, %v2073_v47  ;;  %vm2109_vm7 = vweird.f32 %v2073_v47 }
 0x379   : > { %v2116_v14 = vor.u32 1.1754944e-38, %v2115_v59  ;;  %vm2114_vm3 = vcmp.eq.f32.partialorder %v2113_v58, 8.507059e+37 }
 0x37d   : > { %v3510_v56 = vpop.eup %3509 }
 0x37e   : > { %v2105_v62 = vmul.f32 %v3510_v56, %v2073_v47  ;;  %v2075_v4 = vpop.xlane.xlu0 %2074  ;;  %vm2110_vm4 = vweird.f32 %v3510_v56 }
 0x37f   : > { %3511 = vrcp.f32 %v2075_v4  ;;  %vm2111_vm2 = vmor %vm2109_vm7, %vm2110_vm4  ;;  %v2127_v28 = vand.u32 2147483647, %v2075_v4  ;;  %v2129_v43 = vand.u32 2147483648, %v2075_v4  ;;  %vm2123_vm6 = vweird.f32 %v2075_v4 }
 0x380   : > { %v2106_v57 = vsub.f32 1.0, %v2105_v62 }
 0x381   : > { %vm4847_vm8 = vcmp.eq.f32.partialorder %v2127_v28, 8.507059e+37  ;;  %v2130_v41 = vor.u32 1.1754944e-38, %v2129_v43 }
 0x382   : > { %v2107_v6 = vmul.f32 %v3510_v56, %v2106_v57 }
 0x384   : > { %v2108_v17 = vadd.f32 %v3510_v56, %v2107_v6 }
 0x385   : > { %v3512_v23 = vpop.eup %3511 }
 0x386   : > { %v2119_v26 = vmul.f32 %v3512_v23, %v2075_v4  ;;  %v4832_v61 = vpop.xlane.xlu1 %2076  ;;  %v4834_v29 = vpop.xlane.xlu0 %2442  ;;  %v2112_v31 = vsel %vm2111_vm2, %v3510_v56, %v2108_v17  ;;  %vm2124_vm5 = vweird.f32 %v3512_v23 }
 0x387   : > { %3513 = vrcp.f32 %v4832_v61  ;;  %v4837_v39 = vpop.xlane.xlu2 %2440  ;;  %v2117_v55 = vsel %vm2114_vm3, %v2116_v14, %v2112_v31  ;;  %v2141_v60 = vand.u32 2147483647, %v4832_v61  ;;  %vm4853_vm11 = vmor %vm2123_vm6, %vm2124_vm5  ;;  %vm2137_vm13 = vweird.f32 %v4832_v61 }
 0x388   : > { %v2120_v38 = vsub.f32 1.0, %v2119_v26  ;;  %3515 = vrcp.f32 %v4837_v39  ;;  %v2328_v36 = vmul.f32 %v4591_v48, %v2117_v55  ;;  %vm2477_vm10 = vweird.f32 %v4837_v39 }
 0x389   : > { %3517 = vrcp.f32 %v4834_v29  ;;  %v2483_v48 = vand.u32 2147483648, %v4837_v39  ;;  %vm4861_vm14 = vcmp.eq.f32.partialorder %v2141_v60, 8.507059e+37  ;;  %v2481_v62 = vand.u32 2147483647, %v4837_v39 }
 0x38a   : > { %v2121_v12 = vmul.f32 %v3512_v23, %v2120_v38  ;;  %2744 = vmatmul.f32.vlgmr.msrb.gmra.mxu1 %v2328_v36  ;;  %2906 = vst [vmem:[%s4844_s0] sm:$0xff] %v2328_v36  ;;  %v2143_v28 = vand.u32 2147483648, %v4832_v61  ;;  %vm2491_vm1 = vweird.f32 %v4834_v29 }
 0x38b   : > { %vm2482_vm7 = vcmp.eq.f32.partialorder %v2481_v62, 8.507059e+37 }
 0x38c   : > { %v2122_v52 = vadd.f32 %v3512_v23, %v2121_v12  ;;  %v2484_v12 = vor.u32 1.1754944e-38, %v2483_v48  ;;  %v2144_v3 = vor.u32 1.1754944e-38, %v2143_v28  ;;  %v2495_v48 = vand.u32 2147483647, %v4834_v29 }
 0x38d   : > { %v3514_v15 = vpop.eup %3513 }
 0x38e   : > { %v3516_v42 = vpop.eup %3515  ;;  %v2133_v47 = vmul.f32 %v3514_v15, %v4832_v61  ;;  %v2011_v49 = vpop.xlane.xlu0 %2010  ;;  %v2126_v53 = vsel %vm4853_vm11, %v3512_v23, %v2122_v52  ;;  %vm2138_vm15 = vweird.f32 %v3514_v15  ;;  %vm2496_vm3 = vcmp.eq.f32.partialorder %v2495_v48, 8.507059e+37 }
 0x38f   : > { %v2381_v50 = vpop.xlane.xlu1 %2380  ;;  %v4866_v4 = vpop.eup %3517  ;;  %v2473_v57 = vmul.f32 %v3516_v42, %v4837_v39  ;;  %v2033_v6 = vsub.f32 %v4628_v35, %v2011_v49  ;;  %v2131_v17 = vsel %vm4847_vm8, %v2130_v41, %v2126_v53  ;;  %vm2478_vm0 = vweird.f32 %v3516_v42  ;;  %vm4886_vm9 = vmor %vm2137_vm13, %vm2138_vm15 }
 0x390   : > { %v4869_v59 = vpop.xlane.xlu2 %2078  ;;  %v2402_v58 = vsub.f32 %v4630_v11, %v2381_v50  ;;  %v2134_v23 = vsub.f32 1.0, %v2133_v47  ;;  %v2487_v14 = vmul.f32 %v4866_v4, %v4834_v29  ;;  %v2329_v26 = vmul.f32 %v4597_v2, %v2131_v17  ;;  %vm2479_vm4 = vmor %vm2477_vm10, %vm2478_vm0 }
 0x391   : > { %3519 = vrcp.f32 %v4869_v59  ;;  %v2474_v31 = vsub.f32 1.0, %v2473_v57  ;;  %v2058_v55 = vmul.f32 1.442695, %v2033_v6  ;;  %v2497_v11 = vand.u32 2147483648, %v4834_v29 }
 0x392   : > { %v2428_v38 = vmul.f32 1.442695, %v2402_v58  ;;  %v2135_v36 = vmul.f32 %v3514_v15, %v2134_v23  ;;  %v2488_v35 = vsub.f32 1.0, %v2487_v14  ;;  %2907 = vst [vmem:[%s4844_s0 + $0x8] sm:$0xff] %v2329_v26  ;;  %2747 = vmatmul.f32.gmra.mxu1 %v2329_v26  ;;  %vm2492_vm12 = vweird.f32 %v4866_v4 }
 0x393   : > { %v2475_v43 = vmul.f32 %v3516_v42, %v2474_v31  ;;  %3521 = vpow2.f32 %v2058_v55  ;;  %v2498_v50 = vor.u32 1.1754944e-38, %v2497_v11  ;;  %vm2493_vm2 = vmor %vm2491_vm1, %vm2492_vm12  ;;  %vm2151_vm6 = vweird.f32 %v4869_v59 }
 0x394   : > { %v2489_v60 = vmul.f32 %v4866_v4, %v2488_v35  ;;  %3523 = vpow2.f32 %v2428_v38  ;;  %v2136_v2 = vadd.f32 %v3514_v15, %v2135_v36 }
 0x395   : > { %v2476_v37 = vadd.f32 %v3516_v42, %v2475_v43 }
 0x396   : > { %v4892_v47 = vpop.xlane.xlu0 %2080  ;;  %v2140_v49 = vsel %vm4886_vm9, %v3514_v15, %v2136_v2  ;;  %v2490_v61 = vadd.f32 %v4866_v4, %v2489_v60 }
 0x397   : > { %v3520_v41 = vpop.eup %3519  ;;  %3525 = vrcp.f32 %v4892_v47  ;;  %v4901_v57 = vpop.xlane.xlu1 %2444  ;;  %v2145_v58 = vsel %vm4861_vm14, %v2144_v3, %v2140_v49  ;;  %v2480_v17 = vsel %vm2479_vm4, %v3516_v42, %v2476_v37  ;;  %v2171_v48 = vand.u32 2147483648, %v4892_v47 }
 0x398   : > { %v2147_v53 = vmul.f32 %v3520_v41, %v4869_v59  ;;  %v2383_v6 = vpop.xlane.xlu2 %2382  ;;  %3527 = vrcp.f32 %v4901_v57  ;;  %v2330_v15 = vmul.f32 %v4607_v16, %v2145_v58  ;;  %v2485_v62 = vsel %vm2482_vm7, %v2484_v12, %v2480_v17 }
 0x399   : > { %v2403_v39 = vsub.f32 %v4646_v51, %v2383_v6  ;;  %v4912_v23 = vpop.eup %3521  ;;  %v2696_v56 = vmul.f32 %v4609_v18, %v2485_v62  ;;  %v2494_v42 = vsel %vm2493_vm2, %v4866_v4, %v2490_v61  ;;  %v2157_v16 = vand.u32 2147483648, %v4869_v59 }
 0x39a   : > { %v2148_v14 = vsub.f32 1.0, %v2147_v53  ;;  %v4916_v26 = vpop.eup %3523  ;;  %2908 = vst [vmem:[%s4844_s0 + $0x10] sm:$0xff] %v2330_v15  ;;  %2090 = vadd.xlane.f32.xlu1 %v4912_v23  ;;  %v2499_v31 = vsel %vm2496_vm3, %v2498_v50, %v2494_v42  ;;  %2750 = vmatmul.f32.gmra.mxu1 %v2330_v15  ;;  %vm2152_vm5 = vweird.f32 %v3520_v41  ;;  %v2155_v18 = vand.u32 2147483647, %v4869_v59 }
 0x39b   : > { %v2430_v51 = vmul.f32 1.442695, %v2403_v39  ;;  %2825 = vmatmul.f32.vlgmr.msrb.gmra.mxu3 %v2696_v56  ;;  %2922 = vst [vmem:[%s4922_s30] sm:$0xff] %v2696_v56  ;;  %v2697_v4 = vmul.f32 %v4604_v13, %v2499_v31  ;;  %2460 = vadd.xlane.f32.xlu2 %v4916_v26  ;;  %vm2153_vm8 = vmor %vm2151_vm6, %vm2152_vm5  ;;  %v2158_v35 = vor.u32 1.1754944e-38, %v2157_v16  ;;  %v2169_v13 = vand.u32 2147483647, %v4892_v47 }
 0x39c   : > { %v2149_v29 = vmul.f32 %v3520_v41, %v2148_v14  ;;  %vm2156_vm10 = vcmp.eq.f32.partialorder %v2155_v18, 8.507059e+37  ;;  %v2509_v49 = vand.u32 2147483647, %v4901_v57  ;;  %v2511_v53 = vand.u32 2147483648, %v4901_v57 }
 0x39d   : > { %3529 = vpow2.f32 %v2430_v51  ;;  %v3526_v55 = vpop.eup %3525  ;;  %2923 = vst [vmem:[%s4922_s30 + $0x8] sm:$0xff] %v2697_v4  ;;  %vm2165_vm14 = vweird.f32 %v4892_v47  ;;  %v2172_v58 = vor.u32 1.1754944e-38, %v2171_v48  ;;  %vm2505_vm0 = vweird.f32 %v4901_v57 }
 0x39e   : > { %v2150_v38 = vadd.f32 %v3520_v41, %v2149_v29  ;;  %v3528_v28 = vpop.eup %3527  ;;  %v2161_v36 = vmul.f32 %v3526_v55, %v4892_v47  ;;  %vm2166_vm11 = vweird.f32 %v3526_v55  ;;  %vm2170_vm1 = vcmp.eq.f32.partialorder %v2169_v13, 8.507059e+37 }
 0x39f   : > { %v2501_v11 = vmul.f32 %v3528_v28, %v4901_v57  ;;  %v2013_v43 = vpop.xlane.xlu1 %2012  ;;  %vm2506_vm13 = vweird.f32 %v3528_v28  ;;  %vm4946_vm15 = vmor %vm2165_vm14, %vm2166_vm11  ;;  %vm2510_vm12 = vcmp.eq.f32.partialorder %v2509_v49, 8.507059e+37  ;;  %v2512_v14 = vor.u32 1.1754944e-38, %v2511_v53 }
 0x3a0   : > { %v4932_v12 = vpop.xlane.xlu2 %2446  ;;  %v2154_v60 = vsel %vm2153_vm8, %v3520_v41, %v2150_v38  ;;  %v2162_v2 = vsub.f32 1.0, %v2161_v36  ;;  %v2034_v52 = vsub.f32 %v4659_v46, %v2013_v43  ;;  %vm2507_vm9 = vmor %vm2505_vm0, %vm2506_vm13 }
 0x3a1   : > { %3531 = vrcp.f32 %v4932_v12  ;;  %v2159_v59 = vsel %vm2156_vm10, %v2158_v35, %v2154_v60  ;;  %v2502_v3 = vsub.f32 1.0, %v2501_v11  ;;  %v2523_v36 = vand.u32 2147483647, %v4932_v12 }
 0x3a2   : > { %v2331_v37 = vmul.f32 %v4626_v32, %v2159_v59  ;;  %v2163_v41 = vmul.f32 %v3526_v55, %v2162_v2  ;;  %v2060_v50 = vmul.f32 1.442695, %v2034_v52  ;;  %v2525_v35 = vand.u32 2147483648, %v4932_v12 }
 0x3a3   : > { %v4940_v61 = vpop.eup %3529  ;;  %v2503_v6 = vmul.f32 %v3528_v28, %v2502_v3  ;;  %2828 = vmatmul.f32.gmra.mxu3 %v2697_v4  ;;  %vm2519_vm7 = vweird.f32 %v4932_v12  ;;  %vm2524_vm3 = vcmp.eq.f32.partialorder %v2523_v36, 8.507059e+37 }
 0x3a4   : > { %2753 = vmatmul.f32.gmra.mxu1 %v2331_v37  ;;  %2909 = vst [vmem:[%s4844_s0 + $0x18] sm:$0xff] %v2331_v37  ;;  %3533 = vpow2.f32 %v2060_v50  ;;  %2462 = vadd.xlane.f32.xlu1 %v4940_v61  ;;  %v2164_v32 = vadd.f32 %v3526_v55, %v2163_v41  ;;  %v2526_v60 = vor.u32 1.1754944e-38, %v2525_v35 }
 0x3a5   : > { %v2504_v17 = vadd.f32 %v3528_v28, %v2503_v6 }
 0x3a6   : > { %v4951_v15 = vpop.xlane.xlu0 %2448  ;;  %v2168_v62 = vsel %vm4946_vm15, %v3526_v55, %v2164_v32 }
 0x3a7   : > { %v3532_v39 = vpop.eup %3531  ;;  %3535 = vrcp.f32 %v4951_v15  ;;  %v4957_v56 = vpop.xlane.xlu1 %2082  ;;  %v2173_v51 = vsel %vm2170_vm1, %v2172_v58, %v2168_v62  ;;  %v2508_v57 = vsel %vm2507_vm9, %v3528_v28, %v2504_v17  ;;  %v2539_v49 = vand.u32 2147483648, %v4951_v15 }
 0x3a8   : > { %v2515_v47 = vmul.f32 %v3532_v39, %v4932_v12  ;;  %v2015_v42 = vpop.xlane.xlu2 %2014  ;;  %3537 = vrcp.f32 %v4957_v56  ;;  %v2332_v31 = vmul.f32 %v4640_v20, %v2173_v51  ;;  %v2513_v29 = vsel %vm2510_vm12, %v2512_v14, %v2508_v57 }
 0x3a9   : > { %v2035_v16 = vsub.f32 %v4678_v1, %v2015_v42  ;;  %v2698_v4 = vmul.f32 %v4643_v44, %v2513_v29  ;;  %vm2520_vm4 = vweird.f32 %v3532_v39  ;;  %v2183_v37 = vand.u32 2147483647, %v4957_v56 }
 0x3aa   : > { %v2516_v18 = vsub.f32 1.0, %v2515_v47  ;;  %v4963_v55 = vpop.eup %3533  ;;  %2910 = vst [vmem:[%s4844_s0 + $0x20] sm:$0xff] %v2332_v31  ;;  %vm2521_vm2 = vmor %vm2519_vm7, %vm2520_vm4  ;;  %v2537_v46 = vand.u32 2147483647, %v4951_v15  ;;  %vm2533_vm8 = vweird.f32 %v4951_v15  ;;  %vm2179_vm10 = vweird.f32 %v4957_v56 }
 0x3ab   : > { %v2062_v38 = vmul.f32 1.442695, %v2035_v16  ;;  %2831 = vmatmul.f32.gmra.mxu3 %v2698_v4  ;;  %2924 = vst [vmem:[%s4922_s30 + $0x10] sm:$0xff] %v2698_v4  ;;  %2092 = vadd.xlane.f32.xlu0 %v4963_v55  ;;  %vm4991_vm11 = vcmp.eq.f32.partialorder %v2183_v37, 8.507059e+37  ;;  %v2540_v14 = vor.u32 1.1754944e-38, %v2539_v49 }
 0x3ac   : > { %v2517_v11 = vmul.f32 %v3532_v39, %v2516_v18  ;;  %2756 = vmatmul.f32.gmra.mxu1 %v2332_v31  ;;  %vm2538_vm15 = vcmp.eq.f32.partialorder %v2537_v46, 8.507059e+37 }
 0x3ad   : > { %3539 = vpow2.f32 %v2062_v38  ;;  %v3536_v20 = vpop.eup %3535 }
 0x3ae   : > { %v2518_v1 = vadd.f32 %v3532_v39, %v2517_v11  ;;  %v3538_v44 = vpop.eup %3537  ;;  %v2529_v28 = vmul.f32 %v3536_v20, %v4951_v15  ;;  %v2385_v43 = vpop.xlane.xlu0 %2384  ;;  %vm2534_vm5 = vweird.f32 %v3536_v20 }
 0x3af   : > { %v2175_v13 = vmul.f32 %v3538_v44, %v4957_v56  ;;  %v4973_v2 = vpop.xlane.xlu1 %2450  ;;  %v2404_v59 = vsub.f32 %v4693_v21, %v2385_v43  ;;  %v2185_v21 = vand.u32 2147483648, %v4957_v56  ;;  %vm2180_vm6 = vweird.f32 %v3538_v44  ;;  %vm4995_vm13 = vmor %vm2533_vm8, %vm2534_vm5 }
 0x3b0   : > { %v4975_v52 = vpop.xlane.xlu2 %2084  ;;  %v2522_v3 = vsel %vm2521_vm2, %v3532_v39, %v2518_v1  ;;  %v2530_v48 = vsub.f32 1.0, %v2529_v28  ;;  %3541 = vrcp.f32 %v4973_v2  ;;  %vm4999_vm14 = vmor %vm2179_vm10, %vm2180_vm6  ;;  %v2551_v37 = vand.u32 2147483647, %v4973_v2 }
 0x3b1   : > { %v2527_v12 = vsel %vm2524_vm3, %v2526_v60, %v2522_v3  ;;  %v2176_v41 = vsub.f32 1.0, %v2175_v13  ;;  %3543 = vrcp.f32 %v4975_v52  ;;  %v2432_v50 = vmul.f32 1.442695, %v2404_v59 }
 0x3b2   : > { %v2699_v53 = vmul.f32 %v4657_v45, %v2527_v12  ;;  %v2531_v32 = vmul.f32 %v3536_v20, %v2530_v48  ;;  %v2186_v57 = vor.u32 1.1754944e-38, %v2185_v21  ;;  %v2197_v56 = vand.u32 2147483647, %v4975_v52 }
 0x3b3   : > { %v4983_v6 = vpop.eup %3539  ;;  %v2177_v58 = vmul.f32 %v3538_v44, %v2176_v41  ;;  %3545 = vpow2.f32 %v2432_v50  ;;  %v2199_v59 = vand.u32 2147483648, %v4975_v52  ;;  %vm2193_vm9 = vweird.f32 %v4975_v52 }
 0x3b4   : > { %2834 = vmatmul.f32.gmra.mxu3 %v2699_v53  ;;  %2925 = vst [vmem:[%s4922_s30 + $0x18] sm:$0xff] %v2699_v53  ;;  %2094 = vadd.xlane.f32.xlu2 %v4983_v6  ;;  %v2532_v17 = vadd.f32 %v3536_v20, %v2531_v32  ;;  %vm2547_vm12 = vweird.f32 %v4973_v2  ;;  %vm5031_vm4 = vcmp.eq.f32.partialorder %v2197_v56, 8.507059e+37  ;;  %vm2552_vm3 = vcmp.eq.f32.partialorder %v2551_v37, 8.507059e+37 }
 0x3b5   : > { %v2178_v39 = vadd.f32 %v3538_v44, %v2177_v58  ;;  %v2200_v50 = vor.u32 1.1754944e-38, %v2199_v59 }
 0x3b6   : > { %v3542_v47 = vpop.eup %3541  ;;  %v2017_v42 = vpop.xlane.xlu0 %2016  ;;  %v2536_v15 = vsel %vm4995_vm13, %v3536_v20, %v2532_v17 }
 0x3b7   : > { %v3544_v16 = vpop.eup %3543  ;;  %v2543_v31 = vmul.f32 %v3542_v47, %v4973_v2  ;;  %v2036_v18 = vsub.f32 %v4718_v40, %v2017_v42  ;;  %v2387_v4 = vpop.xlane.xlu1 %2386  ;;  %v2182_v38 = vsel %vm4999_vm14, %v3538_v44, %v2178_v39  ;;  %v2541_v36 = vsel %vm2538_vm15, %v2540_v14, %v2536_v15 }
 0x3b8   : > { %v5007_v29 = vpop.xlane.xlu2 %2452  ;;  %v2189_v35 = vmul.f32 %v3544_v16, %v4975_v52  ;;  %v2405_v11 = vsub.f32 %v4724_v33, %v2387_v4  ;;  %v2187_v20 = vsel %vm4991_vm11, %v2186_v57, %v2182_v38  ;;  %v2700_v44 = vmul.f32 %v4673_v27, %v2541_v36 }
 0x3b9   : > { %3547 = vrcp.f32 %v5007_v29  ;;  %v5017_v1 = vpop.eup %3545  ;;  %v2544_v28 = vsub.f32 1.0, %v2543_v31  ;;  %v2064_v43 = vmul.f32 1.442695, %v2036_v18  ;;  %v2333_v40 = vmul.f32 %v4675_v63, %v2187_v20 }
 0x3ba   : > { %v2190_v60 = vsub.f32 1.0, %v2189_v35  ;;  %v2434_v13 = vmul.f32 1.442695, %v2405_v11  ;;  %2464 = vadd.xlane.f32.xlu0 %v5017_v1  ;;  %v2553_v33 = vand.u32 2147483648, %v4973_v2  ;;  %vm2548_vm0 = vweird.f32 %v3542_v47  ;;  %2926 = vst [vmem:[%s4922_s30 + $0x20] sm:$0xff] %v2700_v44 }
 0x3bb   : > { %v2545_v3 = vmul.f32 %v3542_v47, %v2544_v28  ;;  %3549 = vpow2.f32 %v2064_v43  ;;  %2759 = vmatmul.f32.gmra.mxu1 %v2333_v40  ;;  %2911 = vst [vmem:[%s4844_s0 + $0x28] sm:$0xff] %v2333_v40  ;;  %vm2194_vm1 = vweird.f32 %v3544_v16  ;;  %vm2549_vm7 = vmor %vm2547_vm12, %vm2548_vm0  ;;  %vm2561_vm6 = vweird.f32 %v5007_v29 }
 0x3bc   : > { %2837 = vmatmul.f32.gmra.mxu3 %v2700_v44  ;;  %v2191_v63 = vmul.f32 %v3544_v16, %v2190_v60  ;;  %3551 = vpow2.f32 %v2434_v13  ;;  %v2554_v53 = vor.u32 1.1754944e-38, %v2553_v33  ;;  %vm2195_vm2 = vmor %vm2193_vm9, %vm2194_vm1 }
 0x3bd   : > { %v2546_v27 = vadd.f32 %v3542_v47, %v2545_v3 }
 0x3be   : > { %v5029_v12 = vpop.xlane.xlu0 %2454  ;;  %v2192_v49 = vadd.f32 %v3544_v16, %v2191_v63 }
 0x3bf   : > { %v3548_v48 = vpop.eup %3547  ;;  %3553 = vrcp.f32 %v5029_v12  ;;  %v2019_v21 = vpop.xlane.xlu1 %2018  ;;  %v2550_v2 = vsel %vm2549_vm7, %v3542_v47, %v2546_v27  ;;  %v2581_v20 = vand.u32 2147483648, %v5029_v12  ;;  %v2579_v44 = vand.u32 2147483647, %v5029_v12 }
 0x3c0   : > { %v2557_v32 = vmul.f32 %v3548_v48, %v5007_v29  ;;  %v2389_v52 = vpop.xlane.xlu2 %2388  ;;  %v2037_v46 = vsub.f32 %v4748_v7, %v2019_v21  ;;  %v2196_v17 = vsel %vm2195_vm2, %v3544_v16, %v2192_v49  ;;  %v2555_v39 = vsel %vm2552_vm3, %v2554_v53, %v2550_v2 }
 0x3c1   : > { %v2406_v58 = vsub.f32 %v4750_v19, %v2389_v52  ;;  %v5040_v45 = vpop.eup %3549  ;;  %v2201_v14 = vsel %vm5031_vm4, %v2200_v50, %v2196_v17  ;;  %v2701_v42 = vmul.f32 %v4691_v10, %v2555_v39  ;;  %vm2562_vm5 = vweird.f32 %v3548_v48 }
 0x3c2   : > { %v2558_v62 = vsub.f32 1.0, %v2557_v32  ;;  %v5045_v51 = vpop.eup %3551  ;;  %v2066_v47 = vmul.f32 1.442695, %v2037_v46  ;;  %v2334_v15 = vmul.f32 %v4696_v22, %v2201_v14  ;;  %2096 = vadd.xlane.f32.xlu1 %v5040_v45  ;;  %v2567_v19 = vand.u32 2147483648, %v5007_v29  ;;  %vm2563_vm8 = vmor %vm2561_vm6, %vm2562_vm5 }
 0x3c3   : > { %v2436_v57 = vmul.f32 1.442695, %v2406_v58  ;;  %2927 = vst [vmem:[%s4922_s30 + $0x28] sm:$0xff] %v2701_v42  ;;  %2466 = vadd.xlane.f32.xlu2 %v5045_v51  ;;  %v2565_v10 = vand.u32 2147483647, %v5007_v29  ;;  %vm2575_vm13 = vweird.f32 %v5029_v12  ;;  %v2582_v33 = vor.u32 1.1754944e-38, %v2581_v20 }
 0x3c4   : > { %v2559_v7 = vmul.f32 %v3548_v48, %v2558_v62  ;;  %2840 = vmatmul.f32.gmra.mxu3 %v2701_v42  ;;  %3555 = vpow2.f32 %v2066_v47  ;;  %2762 = vmatmul.f32.gmra.mxu1 %v2334_v15  ;;  %2912 = vst [vmem:[%s4844_s0 + $0x30] sm:$0xff] %v2334_v15  ;;  %v2568_v36 = vor.u32 1.1754944e-38, %v2567_v19  ;;  %vm2580_vm15 = vcmp.eq.f32.partialorder %v2579_v44, 8.507059e+37 }
 0x3c5   : > { %v3554_v56 = vpop.eup %3553  ;;  %3557 = vpow2.f32 %v2436_v57  ;;  %vm2566_vm10 = vcmp.eq.f32.partialorder %v2565_v10, 8.507059e+37 }
 0x3c6   : > { %v2560_v16 = vadd.f32 %v3548_v48, %v2559_v7  ;;  %v2571_v22 = vmul.f32 %v3554_v56, %v5029_v12  ;;  %v5056_v31 = vpop.xlane.xlu0 %2086  ;;  %vm2576_vm11 = vweird.f32 %v3554_v56 }
 0x3c7   : > { %3559 = vrcp.f32 %v5056_v31  ;;  %v5059_v18 = vpop.xlane.xlu1 %2456  ;;  %vm2577_vm14 = vmor %vm2575_vm13, %vm2576_vm11  ;;  %v2211_v32 = vand.u32 2147483647, %v5056_v31  ;;  %v2213_v52 = vand.u32 2147483648, %v5056_v31  ;;  %vm2207_vm9 = vweird.f32 %v5056_v31 }
 0x3c8   : > { %v2021_v4 = vpop.xlane.xlu2 %2020  ;;  %v2564_v38 = vsel %vm2563_vm8, %v3548_v48, %v2560_v16  ;;  %v2572_v35 = vsub.f32 1.0, %v2571_v22  ;;  %3561 = vrcp.f32 %v5059_v18  ;;  %v2595_v53 = vand.u32 2147483648, %v5059_v18 }
 0x3c9   : > { %v2038_v11 = vsub.f32 %v4769_v54, %v2021_v4  ;;  %v2569_v29 = vsel %vm2566_vm10, %v2568_v36, %v2564_v38  ;;  %v2593_v2 = vand.u32 2147483647, %v5059_v18  ;;  %vm2589_vm12 = vweird.f32 %v5059_v18 }
 0x3ca   : > { %v5064_v28 = vpop.eup %3555  ;;  %v2573_v43 = vmul.f32 %v3554_v56, %v2572_v35  ;;  %v2702_v40 = vmul.f32 %v4721_v25, %v2569_v29  ;;  %v2214_v14 = vor.u32 1.1754944e-38, %v2213_v52  ;;  %vm2212_vm7 = vcmp.eq.f32.partialorder %v2211_v32, 8.507059e+37 }
 0x3cb   : > { %v5068_v60 = vpop.eup %3557  ;;  %v2068_v13 = vmul.f32 1.442695, %v2038_v11  ;;  %2098 = vadd.xlane.f32.xlu0 %v5064_v28  ;;  %vm2594_vm3 = vcmp.eq.f32.partialorder %v2593_v2, 8.507059e+37 }
 0x3cc   : > { %2843 = vmatmul.f32.gmra.mxu3 %v2702_v40  ;;  %2928 = vst [vmem:[%s4922_s30 + $0x30] sm:$0xff] %v2702_v40  ;;  %2468 = vadd.xlane.f32.xlu1 %v5068_v60  ;;  %v2574_v54 = vadd.f32 %v3554_v56, %v2573_v43 }
 0x3cd   : > { %v3560_v59 = vpop.eup %3559  ;;  %3563 = vpow2.f32 %v2068_v13 }
 0x3ce   : > { %v3562_v25 = vpop.eup %3561  ;;  %v2203_v3 = vmul.f32 %v3560_v59, %v5056_v31  ;;  %v2391_v37 = vpop.xlane.xlu0 %2390  ;;  %v2578_v63 = vsel %vm2577_vm14, %v3554_v56, %v2574_v54  ;;  %vm2208_vm0 = vweird.f32 %v3560_v59 }
 0x3cf   : > { %v2585_v27 = vmul.f32 %v3562_v25, %v5059_v18  ;;  %v5076_v48 = vpop.xlane.xlu1 %2088  ;;  %v2407_v41 = vsub.f32 %v4787_v8, %v2391_v37  ;;  %v2583_v50 = vsel %vm2580_vm15, %v2582_v33, %v2578_v63  ;;  %vm2590_vm1 = vweird.f32 %v3562_v25  ;;  %vm2209_vm4 = vmor %vm2207_vm9, %vm2208_vm0 }
 0x3d0   : > { %v5078_v49 = vpop.xlane.xlu2 %2458  ;;  %v2204_v12 = vsub.f32 1.0, %v2203_v3  ;;  %3565 = vrcp.f32 %v5076_v48  ;;  %v2703_v8 = vmul.f32 %v4743_v34, %v2583_v50  ;;  %v2596_v34 = vor.u32 1.1754944e-38, %v2595_v53  ;;  %vm2591_vm2 = vmor %vm2589_vm12, %vm2590_vm1 }
 0x3d1   : > { %v2586_v21 = vsub.f32 1.0, %v2585_v27  ;;  %3567 = vrcp.f32 %v5078_v49  ;;  %v2438_v58 = vmul.f32 1.442695, %v2407_v41  ;;  %v2227_v11 = vand.u32 2147483648, %v5076_v48 }
 0x3d2   : > { %v2205_v46 = vmul.f32 %v3560_v59, %v2204_v12  ;;  %2929 = vst [vmem:[%s4922_s30 + $0x38] sm:$0xff] %v2703_v8  ;;  %v2609_v20 = vand.u32 2147483648, %v5078_v49  ;;  %vm2221_vm8 = vweird.f32 %v5076_v48  ;;  %vm2603_vm10 = vweird.f32 %v5078_v49 }
 0x3d3   : > { %v5088_v17 = vpop.eup %3563  ;;  %v2587_v39 = vmul.f32 %v3562_v25, %v2586_v21  ;;  %3569 = vpow2.f32 %v2438_v58  ;;  %v2228_v44 = vor.u32 1.1754944e-38, %v2227_v11 }
 0x3d4   : > { %2846 = vmatmul.f32.gmra.mxu3 %v2703_v8  ;;  %2100 = vadd.xlane.f32.xlu2 %v5088_v17  ;;  %v2206_v62 = vadd.f32 %v3560_v59, %v2205_v46  ;;  %v2610_v54 = vor.u32 1.1754944e-38, %v2609_v20 }
 0x3d5   : > { %v2588_v42 = vadd.f32 %v3562_v25, %v2587_v39 }
 0x3d6   : > { %v3566_v47 = vpop.eup %3565  ;;  %v2023_v57 = vpop.xlane.xlu0 %2022  ;;  %v2210_v15 = vsel %vm2209_vm4, %v3560_v59, %v2206_v62 }
 0x3d7   : > { %v3568_v7 = vpop.eup %3567  ;;  %v2217_v19 = vmul.f32 %v3566_v47, %v5076_v48  ;;  %v2039_v10 = vsub.f32 %v4805_v30, %v2023_v57  ;;  %v2215_v56 = vsel %vm2212_vm7, %v2214_v14, %v2210_v15  ;;  %v2592_v16 = vsel %vm2591_vm2, %v3562_v25, %v2588_v42 }
 0x3d8   : > { %v2599_v22 = vmul.f32 %v3568_v7, %v5078_v49  ;;  %v2335_v31 = vmul.f32 %v4764_v5, %v2215_v56  ;;  %v2597_v18 = vsel %vm2594_vm3, %v2596_v34, %v2592_v16  ;;  %vm2222_vm5 = vweird.f32 %v3566_v47 }
 0x3d9   : > { %v2218_v4 = vsub.f32 1.0, %v2217_v19  ;;  %v2070_v38 = vmul.f32 1.442695, %v2039_v10  ;;  %v2704_v36 = vmul.f32 %v4766_v24, %v2597_v18  ;;  %v5100_v35 = vpop.eup %3569  ;;  %v2225_v5 = vand.u32 2147483647, %v5076_v48  ;;  %vm2223_vm11 = vmor %vm2221_vm8, %vm2222_vm5 }
 0x3da   : > { %v2600_v29 = vsub.f32 1.0, %v2599_v22  ;;  %2765 = vmatmul.f32.gmra.mxu1 %v2335_v31  ;;  %2913 = vst [vmem:[%s4844_s0 + $0x38] sm:$0xff] %v2335_v31  ;;  %2470 = vadd.xlane.f32.xlu0 %v5100_v35  ;;  %vm2604_vm6 = vweird.f32 %v3568_v7  ;;  %v2607_v24 = vand.u32 2147483647, %v5078_v49 }
 0x3db   : > { %v2219_v30 = vmul.f32 %v3566_v47, %v2218_v4  ;;  %3571 = vpow2.f32 %v2070_v38  ;;  %2930 = vst [vmem:[%s4922_s30 + $0x40] sm:$0xff] %v2704_v36  ;;  %vm2226_vm13 = vcmp.eq.f32.partialorder %v2225_v5, 8.507059e+37  ;;  %vm2605_vm14 = vmor %vm2603_vm10, %vm2604_vm6 }
 0x3dc   : > { %v2601_v43 = vmul.f32 %v3568_v7, %v2600_v29  ;;  %2849 = vmatmul.f32.gmra.mxu3 %v2704_v36  ;;  %vm2608_vm15 = vcmp.eq.f32.partialorder %v2607_v24, 8.507059e+37 }
 0x3dd   : > { %v2220_v40 = vadd.f32 %v3566_v47, %v2219_v30 }
 0x3de   : > { %v2602_v13 = vadd.f32 %v3568_v7, %v2601_v43 }
 0x3df   : > { %v2224_v59 = vsel %vm2223_vm11, %v3566_v47, %v2220_v40 }
 0x3e0   : > { %v2229_v33 = vsel %vm2226_vm13, %v2228_v44, %v2224_v59  ;;  %v2606_v25 = vsel %vm2605_vm14, %v3568_v7, %v2602_v13 }
 0x3e1   : > { %v5111_v3 = vpop.eup %3571  ;;  %v2336_v37 = vmul.f32 %v4785_v0, %v2229_v33  ;;  %v2611_v63 = vsel %vm2608_vm15, %v2610_v54, %v2606_v25 }
 0x3e2   : > { %v2705_v27 = vmul.f32 %v4790_v9, %v2611_v63  ;;  %2102 = vadd.xlane.f32.xlu1 %v5111_v3 }
 0x3e3   : > { %2768 = vmatmul.f32.gmra.mxu1 %v2336_v37  ;;  %2914 = vst [vmem:[%s4844_s0 + $0x40] sm:$0xff] %v2336_v37 }
 0x3e4   : > { %2852 = vmatmul.f32.gmra.mxu3 %v2705_v27  ;;  %2931 = vst [vmem:[%s4922_s30 + $0x48] sm:$0xff] %v2705_v27 }
 0x407   : > { %v2745_v48 = vpop.f32.mrf.mxu1 }
 0x408   : > { %2874 = vst [vmem:[%s5119_s1] sm:$0xff] %v2745_v48 }
 0x40d   : > { %v2091_v49 = vpop.xlane.xlu1 %2090 }
 0x40e   : > { %3573 = vrcp.f32 %v2091_v49  ;;  %v2461_v41 = vpop.xlane.xlu2 %2460  ;;  %v2241_v52 = vand.u32 2147483648, %v2091_v49  ;;  %v2239_v8 = vand.u32 2147483647, %v2091_v49  ;;  %vm2235_vm1 = vweird.f32 %v2091_v49 }
 0x40f   : > { %3575 = vrcp.f32 %v2461_v41  ;;  %v2748_v0 = vpop.f32.mrf.mxu1  ;;  %v2623_v39 = vand.u32 2147483648, %v2461_v41  ;;  %v2621_v42 = vand.u32 2147483647, %v2461_v41  ;;  %vm2617_vm4 = vweird.f32 %v2461_v41 }
 0x410   : > { %2875 = vst [vmem:[%s5119_s1 + $0x8] sm:$0xff] %v2748_v0  ;;  %v2242_v47 = vor.u32 1.1754944e-38, %v2241_v52  ;;  %vm2240_vm7 = vcmp.eq.f32.partialorder %v2239_v8, 8.507059e+37 }
 0x411   : > { %v2624_v7 = vor.u32 1.1754944e-38, %v2623_v39  ;;  %vm2622_vm3 = vcmp.eq.f32.partialorder %v2621_v42, 8.507059e+37 }
 0x414   : > { %v3574_v9 = vpop.eup %3573 }
 0x415   : > { %v2231_v50 = vmul.f32 %v3574_v9, %v2091_v49  ;;  %v3576_v12 = vpop.eup %3575  ;;  %vm2236_vm0 = vweird.f32 %v3574_v9 }
 0x416   : > { %v2613_v32 = vmul.f32 %v3576_v12, %v2461_v41  ;;  %vm2618_vm9 = vweird.f32 %v3576_v12  ;;  %vm2237_vm12 = vmor %vm2235_vm1, %vm2236_vm0 }
 0x417   : > { %v2232_v53 = vsub.f32 1.0, %v2231_v50  ;;  %v2463_v21 = vpop.xlane.xlu1 %2462  ;;  %v2751_v2 = vpop.f32.mrf.mxu1  ;;  %vm2619_vm2 = vmor %vm2617_vm4, %vm2618_vm9 }
 0x418   : > { %3577 = vrcp.f32 %v2463_v21  ;;  %v2614_v58 = vsub.f32 1.0, %v2613_v32  ;;  %2876 = vst [vmem:[%s5119_s1 + $0x10] sm:$0xff] %v2751_v2  ;;  %v2637_v29 = vand.u32 2147483648, %v2463_v21  ;;  %v2635_v20 = vand.u32 2147483647, %v2463_v21 }
 0x419   : > { %v2233_v46 = vmul.f32 %v3574_v9, %v2232_v53  ;;  %vm2631_vm6 = vweird.f32 %v2463_v21 }
 0x41a   : > { %v2615_v62 = vmul.f32 %v3576_v12, %v2614_v58  ;;  %v2638_v24 = vor.u32 1.1754944e-38, %v2637_v29  ;;  %vm2636_vm10 = vcmp.eq.f32.partialorder %v2635_v20, 8.507059e+37 }
 0x41b   : > { %v2234_v14 = vadd.f32 %v3574_v9, %v2233_v46 }
 0x41c   : > { %v2616_v57 = vadd.f32 %v3576_v12, %v2615_v62 }
 0x41d   : > { %v2238_v34 = vsel %vm2237_vm12, %v3574_v9, %v2234_v14 }
 0x41e   : > { %v3578_v15 = vpop.eup %3577  ;;  %v2826_v19 = vpop.f32.mrf.mxu3  ;;  %v2243_v10 = vsel %vm2240_vm7, %v2242_v47, %v2238_v34  ;;  %v2620_v31 = vsel %vm2619_vm2, %v3576_v12, %v2616_v57 }
 0x41f   : > { %v2627_v56 = vmul.f32 %v3578_v15, %v2463_v21  ;;  %2890 = vst [vmem:[%s5125_s20] sm:$0xff] %v2826_v19  ;;  %v2093_v16 = vpop.xlane.xlu0 %2092  ;;  %v2337_v22 = vmul.f32 %v4912_v23, %v2243_v10  ;;  %v2625_v4 = vsel %vm2622_vm3, %v2624_v7, %v2620_v31  ;;  %vm2632_vm5 = vweird.f32 %v3578_v15 }
 0x420   : > { %3579 = vrcp.f32 %v2093_v16  ;;  %v2706_v36 = vmul.f32 %v4916_v26, %v2625_v4  ;;  %vm2633_vm8 = vmor %vm2631_vm6, %vm2632_vm5  ;;  %v2255_v59 = vand.u32 2147483648, %v2093_v16  ;;  %v2253_v37 = vand.u32 2147483647, %v2093_v16 }
 0x421   : > { %v2754_v18 = vpop.f32.mrf.mxu1  ;;  %v2628_v38 = vsub.f32 1.0, %v2627_v56  ;;  %2771 = vmatmul.f32.gmra.mxu1 %v2337_v22  ;;  %2915 = vst [vmem:[%s4844_s0 + $0x48] sm:$0xff] %v2337_v22  ;;  %vm2249_vm13 = vweird.f32 %v2093_v16 }
 0x422   : > { %2877 = vst [vmem:[%s5119_s1 + $0x18] sm:$0xff] %v2754_v18  ;;  %2855 = vmatmul.f32.gmra.mxu3 %v2706_v36  ;;  %v2256_v49 = vor.u32 1.1754944e-38, %v2255_v59  ;;  %vm2254_vm15 = vcmp.eq.f32.partialorder %v2253_v37, 8.507059e+37 }
 0x423   : > { %v2629_v11 = vmul.f32 %v3578_v15, %v2628_v38  ;;  %2932 = vst [vmem:[%s4922_s30 + $0x50] sm:$0xff] %v2706_v36 }
 0x425   : > { %v2630_v23 = vadd.f32 %v3578_v15, %v2629_v11 }
 0x426   : > { %v3580_v30 = vpop.eup %3579  ;;  %v2829_v5 = vpop.f32.mrf.mxu3 }
 0x427   : > { %v2095_v43 = vpop.xlane.xlu2 %2094  ;;  %v2245_v40 = vmul.f32 %v3580_v30, %v2093_v16  ;;  %2891 = vst [vmem:[%s5125_s20 + $0x8] sm:$0xff] %v2829_v5  ;;  %v2634_v44 = vsel %vm2633_vm8, %v3578_v15, %v2630_v23  ;;  %vm2250_vm11 = vweird.f32 %v3580_v30 }
 0x428   : > { %3581 = vrcp.f32 %v2095_v43  ;;  %v2639_v54 = vsel %vm2636_vm10, %v2638_v24, %v2634_v44  ;;  %vm2251_vm14 = vmor %vm2249_vm13, %vm2250_vm11  ;;  %v2269_v32 = vand.u32 2147483648, %v2095_v43  ;;  %v2267_v21 = vand.u32 2147483647, %v2095_v43 }
 0x429   : > { %v2757_v26 = vpop.f32.mrf.mxu1  ;;  %v2246_v13 = vsub.f32 1.0, %v2245_v40  ;;  %v2707_v33 = vmul.f32 %v4940_v61, %v2639_v54  ;;  %vm2263_vm1 = vweird.f32 %v2095_v43 }
 0x42a   : > { %2878 = vst [vmem:[%s5119_s1 + $0x20] sm:$0xff] %v2757_v26  ;;  %v2270_v8 = vor.u32 1.1754944e-38, %v2269_v32  ;;  %vm2268_vm12 = vcmp.eq.f32.partialorder %v2267_v21, 8.507059e+37 }
 0x42b   : > { %v2247_v25 = vmul.f32 %v3580_v30, %v2246_v13  ;;  %2858 = vmatmul.f32.gmra.mxu3 %v2707_v33  ;;  %2933 = vst [vmem:[%s4922_s30 + $0x58] sm:$0xff] %v2707_v33 }
 0x42d   : > { %v2465_v27 = vpop.xlane.xlu0 %2464  ;;  %v2248_v48 = vadd.f32 %v3580_v30, %v2247_v25 }
 0x42e   : > { %v3582_v63 = vpop.eup %3581  ;;  %v2832_v0 = vpop.f32.mrf.mxu3  ;;  %3583 = vrcp.f32 %v2465_v27  ;;  %v2651_v42 = vand.u32 2147483648, %v2465_v27  ;;  %v2649_v7 = vand.u32 2147483647, %v2465_v27  ;;  %vm2645_vm7 = vweird.f32 %v2465_v27 }
 0x42f   : > { %v2259_v41 = vmul.f32 %v3582_v63, %v2095_v43  ;;  %2892 = vst [vmem:[%s5125_s20 + $0x10] sm:$0xff] %v2832_v0  ;;  %v2252_v9 = vsel %vm2251_vm14, %v3580_v30, %v2248_v48  ;;  %vm2264_vm0 = vweird.f32 %v3582_v63 }
 0x430   : > { %v2257_v61 = vsel %vm2254_vm15, %v2256_v49, %v2252_v9  ;;  %vm2265_vm9 = vmor %vm2263_vm1, %vm2264_vm0  ;;  %v2652_v56 = vor.u32 1.1754944e-38, %v2651_v42  ;;  %vm2650_vm3 = vcmp.eq.f32.partialorder %v2649_v7, 8.507059e+37 }
 0x431   : > { %v2260_v50 = vsub.f32 1.0, %v2259_v41  ;;  %v2338_v12 = vmul.f32 %v4963_v55, %v2257_v61 }
 0x433   : > { %v2261_v53 = vmul.f32 %v3582_v63, %v2260_v50  ;;  %2774 = vmatmul.f32.gmra.mxu1 %v2338_v12  ;;  %2916 = vst [vmem:[%s4844_s0 + $0x50] sm:$0xff] %v2338_v12 }
 0x434   : > { %v3584_v52 = vpop.eup %3583 }
 0x435   : > { %v2262_v2 = vadd.f32 %v3582_v63, %v2261_v53  ;;  %v2641_v46 = vmul.f32 %v3584_v52, %v2465_v27  ;;  %v5140_v58 = vpop.xlane.xlu1 %2096  ;;  %vm2646_vm4 = vweird.f32 %v3584_v52 }
 0x436   : > { %3585 = vrcp.f32 %v5140_v58  ;;  %v5143_v55 = vpop.xlane.xlu2 %2466  ;;  %vm2647_vm2 = vmor %vm2645_vm7, %vm2646_vm4  ;;  %v2283_v29 = vand.u32 2147483648, %v5140_v58  ;;  %v2281_v24 = vand.u32 2147483647, %v5140_v58  ;;  %vm2277_vm8 = vweird.f32 %v5140_v58 }
 0x437   : > { %v2835_v39 = vpop.f32.mrf.mxu3  ;;  %v2266_v62 = vsel %vm2265_vm9, %v3582_v63, %v2262_v2  ;;  %v2642_v14 = vsub.f32 1.0, %v2641_v46  ;;  %3587 = vrcp.f32 %v5143_v55  ;;  %v2665_v23 = vand.u32 2147483648, %v5143_v55 }
 0x438   : > { %2893 = vst [vmem:[%s5125_s20 + $0x18] sm:$0xff] %v2835_v39  ;;  %v2760_v47 = vpop.f32.mrf.mxu1  ;;  %v2271_v34 = vsel %vm2268_vm12, %v2270_v8, %v2266_v62  ;;  %v2663_v26 = vand.u32 2147483647, %v5143_v55  ;;  %v2284_v13 = vor.u32 1.1754944e-38, %v2283_v29  ;;  %vm2659_vm10 = vweird.f32 %v5143_v55 }
 0x439   : > { %v2643_v57 = vmul.f32 %v3584_v52, %v2642_v14  ;;  %2879 = vst [vmem:[%s5119_s1 + $0x28] sm:$0xff] %v2760_v47  ;;  %v2339_v15 = vmul.f32 %v4983_v6, %v2271_v34  ;;  %v2666_v59 = vor.u32 1.1754944e-38, %v2665_v23  ;;  %vm2282_vm13 = vcmp.eq.f32.partialorder %v2281_v24, 8.507059e+37 }
 0x43a   : > { %vm2664_vm15 = vcmp.eq.f32.partialorder %v2663_v26, 8.507059e+37 }
 0x43b   : > { %2777 = vmatmul.f32.gmra.mxu1 %v2339_v15  ;;  %2917 = vst [vmem:[%s4844_s0 + $0x58] sm:$0xff] %v2339_v15  ;;  %v2644_v19 = vadd.f32 %v3584_v52, %v2643_v57 }
 0x43c   : > { %v3586_v10 = vpop.eup %3585 }
 0x43d   : > { %v3588_v16 = vpop.eup %3587  ;;  %v2273_v22 = vmul.f32 %v3586_v10, %v5140_v58  ;;  %v2648_v31 = vsel %vm2647_vm2, %v3584_v52, %v2644_v19  ;;  %vm2278_vm5 = vweird.f32 %v3586_v10 }
 0x43e   : > { %v2655_v18 = vmul.f32 %v3588_v16, %v5143_v55  ;;  %v5152_v38 = vpop.xlane.xlu0 %2098  ;;  %v2653_v6 = vsel %vm2650_vm3, %v2652_v56, %v2648_v31  ;;  %vm2660_vm6 = vweird.f32 %v3588_v16  ;;  %vm2279_vm11 = vmor %vm2277_vm8, %vm2278_vm5 }
 0x43f   : > { %v2838_v4 = vpop.f32.mrf.mxu3  ;;  %v2274_v36 = vsub.f32 1.0, %v2273_v22  ;;  %v5155_v11 = vpop.xlane.xlu1 %2468  ;;  %3589 = vrcp.f32 %v5152_v38  ;;  %v2708_v43 = vmul.f32 %v5017_v1, %v2653_v6  ;;  %vm2661_vm14 = vmor %vm2659_vm10, %vm2660_vm6  ;;  %v2297_v32 = vand.u32 2147483648, %v5152_v38 }
 0x440   : > { %2894 = vst [vmem:[%s5125_s20 + $0x20] sm:$0xff] %v2838_v4  ;;  %v2656_v20 = vsub.f32 1.0, %v2655_v18  ;;  %3591 = vrcp.f32 %v5155_v11  ;;  %v2679_v52 = vand.u32 2147483648, %v5155_v11  ;;  %v2295_v2 = vand.u32 2147483647, %v5152_v38 }
 0x441   : > { %v2275_v30 = vmul.f32 %v3586_v10, %v2274_v36  ;;  %v2763_v5 = vpop.f32.mrf.mxu1  ;;  %2861 = vmatmul.f32.gmra.mxu3 %v2708_v43  ;;  %2934 = vst [vmem:[%s4922_s30 + $0x60] sm:$0xff] %v2708_v43  ;;  %vm2291_vm1 = vweird.f32 %v5152_v38  ;;  %v2677_v46 = vand.u32 2147483647, %v5155_v11  ;;  %vm2673_vm4 = vweird.f32 %v5155_v11 }
 0x442   : > { %v2657_v40 = vmul.f32 %v3588_v16, %v2656_v20  ;;  %2880 = vst [vmem:[%s5119_s1 + $0x30] sm:$0xff] %v2763_v5  ;;  %v2298_v8 = vor.u32 1.1754944e-38, %v2297_v32  ;;  %v2680_v62 = vor.u32 1.1754944e-38, %v2679_v52  ;;  %vm2296_vm7 = vcmp.eq.f32.partialorder %v2295_v2, 8.507059e+37 }
 0x443   : > { %v2276_v44 = vadd.f32 %v3586_v10, %v2275_v30  ;;  %vm2678_vm3 = vcmp.eq.f32.partialorder %v2677_v46, 8.507059e+37 }
 0x444   : > { %v2658_v54 = vadd.f32 %v3588_v16, %v2657_v40 }
 0x445   : > { %v3590_v1 = vpop.eup %3589  ;;  %v2280_v33 = vsel %vm2279_vm11, %v3586_v10, %v2276_v44 }
 0x446   : > { %v3592_v25 = vpop.eup %3591  ;;  %v2287_v37 = vmul.f32 %v3590_v1, %v5152_v38  ;;  %v2285_v27 = vsel %vm2282_vm13, %v2284_v13, %v2280_v33  ;;  %v2662_v48 = vsel %vm2661_vm14, %v3588_v16, %v2658_v54  ;;  %vm2292_vm0 = vweird.f32 %v3590_v1 }
 0x447   : > { %v2841_v63 = vpop.f32.mrf.mxu3  ;;  %v2669_v49 = vmul.f32 %v3592_v25, %v5155_v11  ;;  %v2101_v41 = vpop.xlane.xlu2 %2100  ;;  %v2340_v0 = vmul.f32 %v5040_v45, %v2285_v27  ;;  %v2667_v9 = vsel %vm2664_vm15, %v2666_v59, %v2662_v48  ;;  %vm2674_vm9 = vweird.f32 %v3592_v25  ;;  %vm2293_vm12 = vmor %vm2291_vm1, %vm2292_vm0 }
 0x448   : > { %2895 = vst [vmem:[%s5125_s20 + $0x28] sm:$0xff] %v2841_v63  ;;  %v2288_v50 = vsub.f32 1.0, %v2287_v37  ;;  %3593 = vrcp.f32 %v2101_v41  ;;  %v2709_v12 = vmul.f32 %v5045_v51, %v2667_v9  ;;  %vm2675_vm2 = vmor %vm2673_vm4, %vm2674_vm9  ;;  %v2311_v19 = vand.u32 2147483648, %v2101_v41 }
 0x449   : > { %v2670_v61 = vsub.f32 1.0, %v2669_v49  ;;  %2780 = vmatmul.f32.gmra.mxu1 %v2340_v0  ;;  %2918 = vst [vmem:[%s4844_s0 + $0x60] sm:$0xff] %v2340_v0  ;;  %v2309_v16 = vand.u32 2147483647, %v2101_v41  ;;  %vm2305_vm6 = vweird.f32 %v2101_v41 }
 0x44a   : > { %v2289_v53 = vmul.f32 %v3590_v1, %v2288_v50  ;;  %2864 = vmatmul.f32.gmra.mxu3 %v2709_v12  ;;  %2935 = vst [vmem:[%s4922_s30 + $0x68] sm:$0xff] %v2709_v12  ;;  %v2312_v4 = vor.u32 1.1754944e-38, %v2311_v19 }
 0x44b   : > { %v2671_v21 = vmul.f32 %v3592_v25, %v2670_v61  ;;  %vm2310_vm10 = vcmp.eq.f32.partialorder %v2309_v16, 8.507059e+37 }
 0x44c   : > { %v2290_v45 = vadd.f32 %v3590_v1, %v2289_v53 }
 0x44d   : > { %v2672_v51 = vadd.f32 %v3592_v25, %v2671_v21  ;;  %v2471_v39 = vpop.xlane.xlu0 %2470 }
 0x44e   : > { %v3594_v58 = vpop.eup %3593  ;;  %v2294_v55 = vsel %vm2293_vm12, %v3590_v1, %v2290_v45  ;;  %3595 = vrcp.f32 %v2471_v39  ;;  %v2693_v29 = vand.u32 2147483648, %v2471_v39  ;;  %v2691_v30 = vand.u32 2147483647, %v2471_v39 }
 0x44f   : > { %v2301_v14 = vmul.f32 %v3594_v58, %v2101_v41  ;;  %v2844_v42 = vpop.f32.mrf.mxu3  ;;  %v2299_v47 = vsel %vm2296_vm7, %v2298_v8, %v2294_v55  ;;  %v2676_v34 = vsel %vm2675_vm2, %v3592_v25, %v2672_v51  ;;  %vm2306_vm5 = vweird.f32 %v3594_v58 }
 0x450   : > { %2896 = vst [vmem:[%s5125_s20 + $0x30] sm:$0xff] %v2844_v42  ;;  %v2341_v15 = vmul.f32 %v5064_v28, %v2299_v47  ;;  %v2681_v7 = vsel %vm2678_vm3, %v2680_v62, %v2676_v34  ;;  %vm2307_vm8 = vmor %vm2305_vm6, %vm2306_vm5  ;;  %vm2687_vm13 = vweird.f32 %v2471_v39  ;;  %v2694_v24 = vor.u32 1.1754944e-38, %v2693_v29 }
 0x451   : > { %v2302_v57 = vsub.f32 1.0, %v2301_v14  ;;  %v2710_v10 = vmul.f32 %v5068_v60, %v2681_v7  ;;  %vm2692_vm15 = vcmp.eq.f32.partialorder %v2691_v30, 8.507059e+37 }
 0x452   : > { %2783 = vmatmul.f32.gmra.mxu1 %v2341_v15  ;;  %2919 = vst [vmem:[%s4844_s0 + $0x68] sm:$0xff] %v2341_v15 }
 0x453   : > { %v2303_v56 = vmul.f32 %v3594_v58, %v2302_v57  ;;  %2867 = vmatmul.f32.gmra.mxu3 %v2710_v10  ;;  %2936 = vst [vmem:[%s4922_s30 + $0x70] sm:$0xff] %v2710_v10 }
 0x454   : > { %v3596_v22 = vpop.eup %3595 }
 0x455   : > { %v2304_v31 = vadd.f32 %v3594_v58, %v2303_v56  ;;  %v2103_v18 = vpop.xlane.xlu1 %2102  ;;  %v2683_v28 = vmul.f32 %v3596_v22, %v2471_v39  ;;  %vm2688_vm11 = vweird.f32 %v3596_v22 }
 0x456   : > { %3597 = vrcp.f32 %v2103_v18  ;;  %vm2689_vm14 = vmor %vm2687_vm13, %vm2688_vm11  ;;  %v2323_v25 = vand.u32 2147483647, %v2103_v18  ;;  %vm2319_vm1 = vweird.f32 %v2103_v18 }
 0x457   : > { %v2847_v60 = vpop.f32.mrf.mxu3  ;;  %v2766_v38 = vpop.f32.mrf.mxu1  ;;  %v2308_v6 = vsel %vm2307_vm8, %v3594_v58, %v2304_v31  ;;  %v2684_v36 = vsub.f32 1.0, %v2683_v28 }
 0x458   : > { %2897 = vst [vmem:[%s5125_s20 + $0x38] sm:$0xff] %v2847_v60  ;;  %v2313_v11 = vsel %vm2310_vm10, %v2312_v4, %v2308_v6  ;;  %vm2324_vm12 = vcmp.eq.f32.partialorder %v2323_v25, 8.507059e+37 }
 0x459   : > { %2881 = vst [vmem:[%s5119_s1 + $0x38] sm:$0xff] %v2766_v38  ;;  %v2342_v20 = vmul.f32 %v5088_v17, %v2313_v11  ;;  %v2685_v23 = vmul.f32 %v3596_v22, %v2684_v36  ;;  %v2325_v17 = vand.u32 2147483648, %v2103_v18 }
 0x45b   : > { %2786 = vmatmul.f32.gmra.mxu1 %v2342_v20  ;;  %2920 = vst [vmem:[%s4844_s0 + $0x70] sm:$0xff] %v2342_v20  ;;  %v2686_v43 = vadd.f32 %v3596_v22, %v2685_v23  ;;  %v2326_v63 = vor.u32 1.1754944e-38, %v2325_v17 }
 0x45c   : > { %v3598_v5 = vpop.eup %3597 }
 0x45d   : > { %v2315_v40 = vmul.f32 %v3598_v5, %v2103_v18  ;;  %v2690_v26 = vsel %vm2689_vm14, %v3596_v22, %v2686_v43  ;;  %vm2320_vm0 = vweird.f32 %v3598_v5 }
 0x45e   : > { %v2695_v54 = vsel %vm2692_vm15, %v2694_v24, %v2690_v26  ;;  %vm2321_vm9 = vmor %vm2319_vm1, %vm2320_vm0 }
 0x45f   : > { %v2316_v44 = vsub.f32 1.0, %v2315_v40  ;;  %v2850_v13 = vpop.f32.mrf.mxu3  ;;  %v2711_v59 = vmul.f32 %v5100_v35, %v2695_v54 }
 0x460   : > { %2898 = vst [vmem:[%s5125_s20 + $0x40] sm:$0xff] %v2850_v13  ;;  %v2769_v1 = vpop.f32.mrf.mxu1 }
 0x461   : > { %v2317_v33 = vmul.f32 %v3598_v5, %v2316_v44  ;;  %2882 = vst [vmem:[%s5119_s1 + $0x40] sm:$0xff] %v2769_v1  ;;  %2870 = vmatmul.f32.gmra.mxu3 %v2711_v59 }
 0x462   : > { %2937 = vst [vmem:[%s4922_s30 + $0x78] sm:$0xff] %v2711_v59 }
 0x463   : > { %v2318_v37 = vadd.f32 %v3598_v5, %v2317_v33 }
 0x465   : > { %v2322_v27 = vsel %vm2321_vm9, %v3598_v5, %v2318_v37 }
 0x466   : > { %v2327_v48 = vsel %vm2324_vm12, %v2326_v63, %v2322_v27 }
 0x467   : > { %v2853_v49 = vpop.f32.mrf.mxu3  ;;  %v2343_v35 = vmul.f32 %v5111_v3, %v2327_v48 }
 0x468   : > { %2899 = vst [vmem:[%s5125_s20 + $0x48] sm:$0xff] %v2853_v49 }
 0x469   : > { %2789 = vmatmul.f32.gmra.mxu1 %v2343_v35  ;;  %2921 = vst [vmem:[%s4844_s0 + $0x78] sm:$0xff] %v2343_v35 }
 0x46a   : > { %3650 = shalt.err (!%p3647_p3)
}
 0x46b   : > { %s5354_s30 = smov 128   ;;  %s5356_s27 = smov 8  }
 0x46c   : > { %3413 = dma.vmem_to_hbm [thread:$0]  (%p3922_p5), %s3018_s24, 2048, %s3020_s29, %s2954_s3, %s5354_s30, %s5354_s30, %s5356_s27  }
 0x46d   : > { %s2943_s3 = sand.u32 1, %s3903_s7   ;;  %s2982_s6 = scalar_lea.hbm %s5348_s15, %s5198_s23 }
 0x46e   : > { %s2965_s11 = scalar_lea.hbm %s5347_s14, %s5198_s23  ;;  %s2999_s8 = scalar_lea.hbm %s5349_s16, %s5198_s23 }
 0x46f   : > { %s2983_s24 = sshll.u32 %s5125_s20, 4  ;;  %s5244_s29 = sshll.u32 %s2982_s6, 4  ;;  %s2984_s24 = int_to_ptr.vmem [resolvable:$true] %s2983_s24  ;;  %s2986_s29 = int_to_ptr.hbm [resolvable:$true] %s5244_s29 }
 0x470   : > { %s2966_s30 = sshll.u32 %s5119_s1, 4  ;;  %s5247_s27 = sshll.u32 %s2965_s11, 4  ;;  %s5254_s30 = int_to_ptr.vmem [resolvable:$true] %s2966_s30  ;;  %s2969_s27 = int_to_ptr.hbm [resolvable:$true] %s5247_s27 }
 0x471   : > { %s5249_s7 = sshll.u32 %s2999_s8, 4  ;;  %s3000_s4 = sshll.u32 %s4844_s0, 4  ;;  %s3003_s7 = int_to_ptr.hbm [resolvable:$true] %s5249_s7  ;;  %s5259_s4 = int_to_ptr.vmem [resolvable:$true] %s3000_s4 }
 0x472   : > { %s5261_s23 = scalar_lea.sflag [#allocation12], %s2943_s3  ;;  %s3665_s5 = sshra.s32 %s2986_s29, 4  ;;  %s3666_s5 = int_to_ptr.hbm [resolvable:$true] %s3665_s5 }
 0x473   : > { %s3667_s6 = scalar_lea.hbm %s3666_s5, 128  ;;  %p3672_p9 = scmp.lt.s32.totalorder %s3666_s5, %s5348_s15 }
 0x474   : > { %p3668_p4 = scmp.ne.s32.totalorder %s3666_s5, %s3667_s6 }
 0x476   : > { %p3669_p7 = pnand %p3668_p4, %p3922_p5 }
 0x478   : > { %p3670_p8 = pneg %p3669_p7 }
 0x49e   : > { %v2772_v3 = vpop.f32.mrf.mxu1 }
 0x49f   : > { %2883 = vst [vmem:[%s5119_s1 + $0x48] sm:$0xff] %v2772_v3 }
 0x4a5   : > { %v2856_v41 = vpop.f32.mrf.mxu3 }
 0x4a6   : > { %2900 = vst [vmem:[%s5125_s20 + $0x50] sm:$0xff] %v2856_v41 }
 0x4ae   : > { %v2859_v0 = vpop.f32.mrf.mxu3 }
 0x4af   : > { %2901 = vst [vmem:[%s5125_s20 + $0x58] sm:$0xff] %v2859_v0 }
 0x4b0   : > { %v2775_v9 = vpop.f32.mrf.mxu1 }
 0x4b1   : > { %2884 = vst [vmem:[%s5119_s1 + $0x50] sm:$0xff] %v2775_v9 }
 0x4b8   : > { %v2778_v50 = vpop.f32.mrf.mxu1 }
 0x4b9   : > { %2885 = vst [vmem:[%s5119_s1 + $0x58] sm:$0xff] %v2778_v50 }
 0x4c4   : > { %v2862_v61 = vpop.f32.mrf.mxu3 }
 0x4c5   : > { %2902 = vst [vmem:[%s5125_s20 + $0x60] sm:$0xff] %v2862_v61 }
 0x4c6   : > { %v2781_v12 = vpop.f32.mrf.mxu1 }
 0x4c7   : > { %2886 = vst [vmem:[%s5119_s1 + $0x60] sm:$0xff] %v2781_v12 }
 0x4cd   : > { %v2865_v53 = vpop.f32.mrf.mxu3 }
 0x4ce   : > { %2903 = vst [vmem:[%s5125_s20 + $0x68] sm:$0xff] %v2865_v53 }
 0x4cf   : > { %v2784_v32 = vpop.f32.mrf.mxu1 }
 0x4d0   : > { %2887 = vst [vmem:[%s5119_s1 + $0x68] sm:$0xff] %v2784_v32 }
 0x4d6   : > { %v2868_v21 = vpop.f32.mrf.mxu3 }
 0x4d7   : > { %2904 = vst [vmem:[%s5125_s20 + $0x70] sm:$0xff] %v2868_v21 }
 0x4d8   : > { %v2787_v52 = vpop.f32.mrf.mxu1 }
 0x4d9   : > { %2888 = vst [vmem:[%s5119_s1 + $0x70] sm:$0xff] %v2787_v52 }
 0x4e4   : > { %v2871_v2 = vpop.f32.mrf.mxu3 }
 0x4e5   : > { %2905 = vst [vmem:[%s5125_s20 + $0x78] sm:$0xff] %v2871_v2  ;;  %s3671_s20 = scalar_lea.hbm %s5348_s15, 1024 }
 0x4e6   : > { %v2790_v45 = vpop.f32.mrf.mxu1  ;;  %p3673_p10 = scmp.lt.s32.totalorder %s3671_s20, %s3667_s6 }
 0x4e7   : > { %2889 = vst [vmem:[%s5119_s1 + $0x78] sm:$0xff] %v2790_v45 }
 0x4e8   : > { %p3674_p11 = por %p3673_p10, %p3672_p9 }
 0x4ea   : > { %p3675_p12 = pnand %p3674_p11, %p3670_p8 }
 0x4ec   : > { %3678 = shalt.err (!%p3675_p12)
}
 0x4ed   : > { %s5408_s1 = smov 8   ;;  %s5409_s3 = smov 128  }
 0x4ee   : > { %3411 = dma.vmem_to_hbm [thread:$0]  (%p3922_p5), %s2984_s24, 2048, %s2986_s29, %s5261_s23, %s5409_s3, %s5409_s3, %s5408_s1  }
 0x4ef   : > { %s2939_s12 = scalar_lea.sflag [#allocation10], %s4827_s22  ;;  %s3693_s28 = sshra.s32 %s2969_s27, 4  ;;  %s3694_s28 = int_to_ptr.hbm [resolvable:$true] %s3693_s28 }
 0x4f0   : > { %s3695_s8 = scalar_lea.hbm %s3694_s28, 128  ;;  %s3699_s0 = scalar_lea.hbm %s5347_s14, 1024 }
 0x4f1   : > { %p3696_p13 = scmp.ne.s32.totalorder %s3694_s28, %s3695_s8  ;;  %p3700_p2 = scmp.lt.s32.totalorder %s3694_s28, %s5347_s14 }
 0x4f2   : > { %p3701_p3 = scmp.lt.s32.totalorder %s3699_s0, %s3695_s8 }
 0x4f3   : > { %p3697_p0 = pnand %p3696_p13, %p3922_p5 }
 0x4f4   : > { %p3702_p4 = por %p3701_p3, %p3700_p2 }
 0x4f5   : > { %p3698_p1 = pneg %p3697_p0 }
 0x4f7   : > { %p3703_p7 = pnand %p3702_p4, %p3698_p1 }
 0x4f9   : > { %3706 = shalt.err (!%p3703_p7)
}
 0x4fa   : > { %3410 = dma.vmem_to_hbm [thread:$0]  (%p3922_p5), %s5254_s30, 2048, %s2969_s27, %s2939_s12, %s5409_s3, %s5409_s3, %s5408_s1  }
 0x4fb   : > { %s3721_s22 = sshra.s32 %s3003_s7, 4  ;;  %s3727_s11 = scalar_lea.hbm %s5349_s16, 1024  ;;  %s3722_s22 = int_to_ptr.hbm [resolvable:$true] %s3721_s22 }
 0x4fc   : > { %s3723_s24 = scalar_lea.hbm %s3722_s22, 128  ;;  %p3728_p11 = scmp.lt.s32.totalorder %s3722_s22, %s5349_s16 }
 0x4fd   : > { %p3724_p8 = scmp.ne.s32.totalorder %s3722_s22, %s3723_s24  ;;  %p3729_p12 = scmp.lt.s32.totalorder %s3727_s11, %s3723_s24 }
 0x4ff   : > { %p3725_p9 = pnand %p3724_p8, %p3922_p5  ;;  %p3730_p13 = por %p3729_p12, %p3728_p11 }
 0x501   : > { %p3726_p10 = pneg %p3725_p9 }
 0x503   : > { %p3731_p0 = pnand %p3730_p13, %p3726_p10 }
 0x505   : > { %3734 = shalt.err (!%p3731_p0)
}
 0x506   : > { %3412 = dma.vmem_to_hbm [thread:$0]  (%p3922_p5), %s5259_s4, 2048, %s3003_s7, %s5261_s23, %s5409_s3, %s5409_s3, %s5408_s1  }
 0x507 PF: > { %p3431_p1 = scmp.ge.s32.totalorder %s3779_s2, 2  ;;  %s3034_s30 = sand.u32 1, %s3767_s18  }
 0x508   : > { %s3035_s27 = scalar_lea.sflag [#allocation10], %s3034_s30 }
 0x509   : > { %p3419_p2 = pnand %p3431_p1, %p3926_p6 }
 0x50b   : > { %p3420_p3 = pneg %p3419_p2 }
 0x50d   : > { %3754 = dma.done.wait (%p3420_p3), %s3035_s27, 2048  }
 0x50e   : > { %3756 = vsyncadd (%p3420_p3), %s3035_s27, 4294965248  ;;  %s5410_s25 = sadd.s32 4294967294, %s3779_s2  }
 0x50f   : > { %s3044_s12 = sand.u32 1, %s5410_s25  }
 0x510   : > { %s3045_s5 = scalar_lea.sflag [#allocation12], %s3044_s12 }
 0x511   : > { %3758 = dma.done.wait (%p3420_p3), %s3045_s5, 4096  }
 0x512   : > { %3760 = vsyncadd (%p3420_p3), %s3045_s5, 4294963200  ;;  %s3065_s6 = scalar_lea.sflag [#allocation15], %s3034_s30 }
 0x513   : > { %3762 = dma.done.wait (%p3420_p3), %s3065_s6, 2048  }
 0x514   : > { %3764 = vsyncadd (%p3420_p3), %s3065_s6, 4294965248  ;;  %s5411_s7 = sld [smem:[#allocation20_spill]]  ;;  %p47_p5 = scmp.ge.s32.totalorder %s3907_s21, 10  }
 0x515   : > { %s5412_s1 = sld [smem:[#allocation21_spill]]  ;;  %s5413_s18 = smov %s3771_s19 }
 0x516   : > { %s5415_s2 = smov %s3907_s21  ;;  %49 = sbr.rel (!%p47_p5) target bundleno = 32 (0x20), region = 167 }
 0x51a   : > { %s5414_s19 = smov %s5411_s7 }
 0x51b   :  { %3071 = vsyncpa [#allocation10], 1 }
 0x51c   :  { %3073 = vsyncpa [#allocation10 + $0x1], 1 }
 0x51d   :  { %3074 = vsyncpa [#allocation12], 1 }
 0x51e   :  { %3076 = vsyncpa [#allocation12 + $0x1], 1 }
 0x51f   :  { %3077 = vsyncpa [#allocation15], 1 }
 0x520   :  { %3079 = vsyncpa [#allocation15 + $0x1], 1 }

</bundles_post_ra>
